<compile_context>
chip_gen: v7x
topology: tpu7x:2x2x1
jax: 0.10.0
libtpu: 0.0.40
codegen_flags: <defaults>
</compile_context>

<pallas_src>
import math

import jax
import jax.numpy as jnp
from jax.experimental import pallas as pl
from jax.experimental.pallas import tpu as pltpu

# ----------------------------- config (small synthetic BioGPT) ---------------
HIDDEN = 128       # lane-aligned synthetic hidden size (real BioGPT: 1024)
VOCAB = 128        # lane-aligned synthetic vocab      (real BioGPT: 42384)
N_LAYERS = 2
N_HEADS = 4
HEAD_DIM = HIDDEN // N_HEADS
FFN = 256
LORA_R = 16
LORA_ALPHA = 32.0
LORA_SCALE = LORA_ALPHA / LORA_R
MAX_POS = 64
BATCH = 2
TGT_LEN = 8        # target_ids sequence length
SEQ = TGT_LEN + 1
NEG_INF = -1e30    # f32 causal-mask constant


# ----------------------------- the fused per-sequence kernel -----------------
def _fused_forward_kernel(
    x_emb_ref, tok_ref, pos_ref, oh_ref,
    proj_w_ref, proj_b_ref,
    ln1_g_ref, ln1_b_ref, ln2_g_ref, ln2_b_ref,
    wqkv_ref, bqkv_ref, wo_ref, bo_ref,
    w1_ref, b1_ref, w2_ref, b2_ref,
    lnf_g_ref, lnf_b_ref, embed_ref,
    logits_ref, loss_ref,
):
    f32 = jnp.float32
    S, H, NH, Dh = SEQ, HIDDEN, N_HEADS, HEAD_DIM

    def layernorm(v, g, b):
        mu = jnp.mean(v, axis=-1, keepdims=True)
        var = jnp.mean((v - mu) ** 2, axis=-1, keepdims=True)
        return (v - mu) * jax.lax.rsqrt(var + 1e-5) * g + b

    def mm(a, b):
        return jnp.dot(a, b, preferred_element_type=f32)

    # 1) input_projection(input_embeddings) row + token-embedding rows.
    #    Pure SSA slab assembly (no scratch, no masked partial stores).
    proj = mm(x_emb_ref[...], proj_w_ref[...]) + proj_b_ref[...]          # [1, H]
    emb_scale = math.sqrt(float(H))
    x = jnp.concatenate([proj, tok_ref[...]], axis=0) * emb_scale + pos_ref[...]  # [S, H]

    # shared causal mask
    row = jax.lax.broadcasted_iota(jnp.int32, (S, S), 0)
    col = jax.lax.broadcasted_iota(jnp.int32, (S, S), 1)
    causal = col <= row
    attn_scale = 1.0 / math.sqrt(float(Dh))

    # 2) decoder layers (pre-LN, LoRA already folded into the weights), unrolled.
    for l in range(N_LAYERS):
        h = layernorm(x, ln1_g_ref[l], ln1_b_ref[l])

        # fused QKV projection: one wide [H, 3H] matmul
        qkv = mm(h, wqkv_ref[l]) + bqkv_ref[l]                            # [S, 3H]

        # multi-head causal self-attention; per-head static lane slices,
        # outputs accumulated in registers and lane-concatenated.
        heads = []
        for hd in range(NH):
            c0 = hd * Dh
            qh = qkv[:, c0:c0 + Dh]
            kh = qkv[:, H + c0:H + c0 + Dh]
            vh = qkv[:, 2 * H + c0:2 * H + c0 + Dh]
            s = jax.lax.dot_general(
                qh, kh, (((1,), (1,)), ((), ())),
                preferred_element_type=f32) * attn_scale                  # [S, S]
            s = jnp.where(causal, s, NEG_INF)
            m = jnp.max(s, axis=-1, keepdims=True)
            p = jnp.exp(s - m)
            inv = pl.reciprocal(jnp.sum(p, axis=-1, keepdims=True), approx=True)
            heads.append(mm(p, vh) * inv)                                 # [S, Dh]
        a = jnp.concatenate(heads, axis=1)                                # [S, H]

        x = x + mm(a, wo_ref[l]) + bo_ref[l]

        # pre-LN FFN
        h2 = layernorm(x, ln2_g_ref[l], ln2_b_ref[l])
        # TODO(synk): HF BioGPT uses exact erf GELU; tanh approximation used here.
        ff = jax.nn.gelu(mm(h2, w1_ref[l]) + b1_ref[l], approximate=True)
        x = x + mm(ff, w2_ref[l]) + b2_ref[l]

    # 3) final LN + tied LM head (contract against embed in stored [V, H] layout)
    xf = layernorm(x, lnf_g_ref[...], lnf_b_ref[...])
    logits = jax.lax.dot_general(
        xf, embed_ref[...], (((1,), (1,)), ((), ())),
        preferred_element_type=f32)                                       # [S, V]
    logits_ref[...] = logits

    # 4) HF causal-LM loss pieces: full-slab masked CE reduction.
    #    One-hot labels are pre-aligned to logits rows; the last row (and any
    #    -100 label) is an all-zero row -> valid = 0 excludes it exactly.
    oh = oh_ref[...]                                                      # [S, V]
    m = jnp.max(logits, axis=-1, keepdims=True)
    lse = jnp.log(jnp.sum(jnp.exp(logits - m), axis=-1, keepdims=True)) + m
    tgt = jnp.sum(oh * logits, axis=-1, keepdims=True)
    valid = jnp.sum(oh, axis=-1, keepdims=True)                           # [S, 1]
    nll = (lse - tgt) * valid
    loss_ref[...] = jnp.concatenate(
        [jnp.sum(nll, axis=(0, 1), keepdims=True),
         jnp.sum(valid, axis=(0, 1), keepdims=True)], axis=1)             # [1, 2]


# ----------------------------- params ----------------------------------------
def init_params(key):
    def nrm(k, shape, scale=0.02):
        return scale * jax.random.normal(k, shape, jnp.float32)

    keys = iter(jax.random.split(key, 128))

    def stackn(shape):
        return jnp.stack([nrm(next(keys), shape) for _ in range(N_LAYERS)])

    L = N_LAYERS
    p = {}
    p["proj_w"] = nrm(next(keys), (HIDDEN, HIDDEN))        # input_projection
    p["proj_b"] = jnp.zeros((1, HIDDEN), jnp.float32)
    p["embed"] = nrm(next(keys), (VOCAB, HIDDEN))          # token emb (tied LM head)
    p["pos_emb"] = nrm(next(keys), (MAX_POS, HIDDEN))

    # per-projection base weights (q_proj / k_proj / v_proj / out_proj)
    p["wq"] = stackn((HIDDEN, HIDDEN))
    p["wk"] = stackn((HIDDEN, HIDDEN))
    p["wv"] = stackn((HIDDEN, HIDDEN))
    p["wo"] = stackn((HIDDEN, HIDDEN))
    # LoRA A (normal init) and B (zeros -> adapter is identity at init, PEFT default)
    p["aq"] = stackn((HIDDEN, LORA_R))
    p["ak"] = stackn((HIDDEN, LORA_R))
    p["av"] = stackn((HIDDEN, LORA_R))
    p["ao"] = stackn((HIDDEN, LORA_R))
    zeros_b = jnp.zeros((L, LORA_R, HIDDEN), jnp.float32)
    p["bq"] = zeros_b
    p["bk"] = zeros_b
    p["bv"] = zeros_b
    p["bo_lora"] = zeros_b

    p["bqkv"] = jnp.zeros((L, 1, 3 * HIDDEN), jnp.float32)
    p["bo"] = jnp.zeros((L, 1, HIDDEN), jnp.float32)
    p["ln1_g"] = jnp.ones((L, 1, HIDDEN), jnp.float32)
    p["ln1_b"] = jnp.zeros((L, 1, HIDDEN), jnp.float32)
    p["ln2_g"] = jnp.ones((L, 1, HIDDEN), jnp.float32)
    p["ln2_b"] = jnp.zeros((L, 1, HIDDEN), jnp.float32)
    p["w1"] = stackn((HIDDEN, FFN))
    p["b1"] = jnp.zeros((L, 1, FFN), jnp.float32)
    p["w2"] = stackn((FFN, HIDDEN))
    p["b2"] = jnp.zeros((L, 1, HIDDEN), jnp.float32)
    p["lnf_g"] = jnp.ones((1, HIDDEN), jnp.float32)
    p["lnf_b"] = jnp.zeros((1, HIDDEN), jnp.float32)
    return p


# ----------------------------- forward wrapper --------------------------------
@jax.jit
def forward(params, input_embeddings, target_ids):
    """Mirrors MedicalReportGenerator.forward(input_embeddings, target_ids)."""
    B, H = input_embeddings.shape
    T = target_ids.shape[1]
    S = T + 1
    L = N_LAYERS

    # XLA-side (cheap, data-dependent / trace-time) preprocessing:
    #  - token-id embedding gather
    #  - one-hot label encoding aligned to logits rows (last row all-zero;
    #    a -100 / out-of-range label also becomes an all-zero row)
    #  - exact LoRA fold: W_eff = W + (alpha/r) * A @ B
    tok = jnp.take(params["embed"], target_ids, axis=0)                   # [B, T, H]
    onehot = jax.nn.one_hot(target_ids, VOCAB, dtype=jnp.float32)         # [B, T, V]
    onehot = jnp.concatenate(
        [onehot, jnp.zeros((B, 1, VOCAB), jnp.float32)], axis=1)          # [B, S, V]
    pos = params["pos_emb"][:S]                                           # [S, H]

    def fold(w, a, b):
        return w + LORA_SCALE * jnp.einsum("lhr,lrd->lhd", a, b)

    wq = fold(params["wq"], params["aq"], params["bq"])
    wk = fold(params["wk"], params["ak"], params["bk"])
    wv = fold(params["wv"], params["av"], params["bv"])
    wqkv = jnp.concatenate([wq, wk, wv], axis=2)                          # [L, H, 3H]
    wo = fold(params["wo"], params["ao"], params["bo_lora"])              # [L, H, H]

    x_emb = input_embeddings[:, None, :]                                  # [B, 1, H]

    # TODO(synk): LoRA dropout (p=0.1) omitted (deterministic / eval semantics).
    full = lambda shape: pl.BlockSpec(shape, lambda b: (0,) * len(shape))
    per_layer = lambda shape: full((L,) + shape)

    logits, loss_parts = pl.pallas_call(
        _fused_forward_kernel,
        grid=(B,),
        in_specs=[
            pl.BlockSpec((None, 1, HIDDEN), lambda b: (b, 0, 0)),         # x_emb
            pl.BlockSpec((None, T, HIDDEN), lambda b: (b, 0, 0)),         # tok
            full((S, HIDDEN)),                                            # pos
            pl.BlockSpec((None, S, VOCAB), lambda b: (b, 0, 0)),          # onehot
            full((HIDDEN, HIDDEN)),                                       # proj_w
            full((1, HIDDEN)),                                            # proj_b
            per_layer((1, HIDDEN)),                                       # ln1_g
            per_layer((1, HIDDEN)),                                       # ln1_b
            per_layer((1, HIDDEN)),                                       # ln2_g
            per_layer((1, HIDDEN)),                                       # ln2_b
            per_layer((HIDDEN, 3 * HIDDEN)),                              # wqkv
            per_layer((1, 3 * HIDDEN)),                                   # bqkv
            per_layer((HIDDEN, HIDDEN)),                                  # wo
            per_layer((1, HIDDEN)),                                       # bo
            per_layer((HIDDEN, FFN)),                                     # w1
            per_layer((1, FFN)),                                          # b1
            per_layer((FFN, HIDDEN)),                                     # w2
            per_layer((1, HIDDEN)),                                       # b2
            full((1, HIDDEN)),                                            # lnf_g
            full((1, HIDDEN)),                                            # lnf_b
            full((VOCAB, HIDDEN)),                                        # embed
        ],
        out_specs=(
            pl.BlockSpec((None, S, VOCAB), lambda b: (b, 0, 0)),          # logits
            pl.BlockSpec((None, 1, 2), lambda b: (b, 0, 0)),              # [sum_nll, n_valid]
        ),
        out_shape=(
            jax.ShapeDtypeStruct((B, S, VOCAB), jnp.float32),
            jax.ShapeDtypeStruct((B, 1, 2), jnp.float32),
        ),
        compiler_params=pltpu.CompilerParams(
            dimension_semantics=("parallel",),
            vmem_limit_bytes=32 * 1024 * 1024,
        ),
    )(
        x_emb, tok, pos, onehot,
        params["proj_w"], params["proj_b"],
        params["ln1_g"], params["ln1_b"], params["ln2_g"], params["ln2_b"],
        wqkv, params["bqkv"], wo, params["bo"],
        params["w1"], params["b1"], params["w2"], params["b2"],
        params["lnf_g"], params["lnf_b"], params["embed"],
    )

    # HF mean-over-valid-tokens reduction (trivial scalar op in XLA).
    loss = jnp.sum(loss_parts[:, 0, 0]) / jnp.maximum(jnp.sum(loss_parts[:, 0, 1]), 1.0)
    return loss, logits


if __name__ == "__main__":
    key = jax.random.PRNGKey(0)
    k_params, k_emb, k_ids = jax.random.split(key, 3)

    params = init_params(k_params)
    input_embeddings = jax.random.normal(k_emb, (BATCH, HIDDEN), jnp.float32)
    target_ids = jax.random.randint(k_ids, (BATCH, TGT_LEN), 0, VOCAB, jnp.int32)

    loss, logits = forward(params, input_embeddings, target_ids)
    jax.block_until_ready((loss, logits))

    assert logits.shape == (BATCH, TGT_LEN + 1, VOCAB)
    assert loss.shape == ()
    assert bool(jnp.isfinite(loss))
    print("KERNEL_OK")
</pallas_src>

<mosaic_0001>
module attributes {stable_mosaic.version = 11 : i64} {
  func.func @_fused_forward_kernel(%arg0: i32, %arg1: memref<1x1x128xf32, #tpu.memory_space<vmem>>, %arg2: memref<1x8x128xf32, #tpu.memory_space<vmem>>, %arg3: memref<9x128xf32, #tpu.memory_space<vmem>>, %arg4: memref<1x9x128xf32, #tpu.memory_space<vmem>>, %arg5: memref<128x128xf32, #tpu.memory_space<vmem>>, %arg6: memref<1x128xf32, #tpu.memory_space<vmem>>, %arg7: memref<2x1x128xf32, #tpu.memory_space<vmem>>, %arg8: memref<2x1x128xf32, #tpu.memory_space<vmem>>, %arg9: memref<2x1x128xf32, #tpu.memory_space<vmem>>, %arg10: memref<2x1x128xf32, #tpu.memory_space<vmem>>, %arg11: memref<2x128x384xf32, #tpu.memory_space<vmem>>, %arg12: memref<2x1x384xf32, #tpu.memory_space<vmem>>, %arg13: memref<2x128x128xf32, #tpu.memory_space<vmem>>, %arg14: memref<2x1x128xf32, #tpu.memory_space<vmem>>, %arg15: memref<2x128x256xf32, #tpu.memory_space<vmem>>, %arg16: memref<2x1x256xf32, #tpu.memory_space<vmem>>, %arg17: memref<2x256x128xf32, #tpu.memory_space<vmem>>, %arg18: memref<2x1x128xf32, #tpu.memory_space<vmem>>, %arg19: memref<1x128xf32, #tpu.memory_space<vmem>>, %arg20: memref<1x128xf32, #tpu.memory_space<vmem>>, %arg21: memref<128x128xf32, #tpu.memory_space<vmem>>, %arg22: memref<1x9x128xf32, #tpu.memory_space<vmem>>, %arg23: memref<1x1x2xf32, #tpu.memory_space<vmem>>) attributes {dimension_semantics = [#tpu.dimension_semantics<parallel>], iteration_bounds = array<i64: 2>, scalar_prefetch = 0 : i64, scratch_operands = 0 : i64, tpu.core_type = #tpu.core_type<tc>, window_params = [{transform_indices = @transform_0, window_bounds = array<i64: 1, 1, 128>}, {transform_indices = @transform_1, window_bounds = array<i64: 1, 8, 128>}, {pipeline_mode = #tpu.pipeline_mode<synchronous>, transform_indices = @transform_2, window_bounds = array<i64: 9, 128>}, {transform_indices = @transform_3, window_bounds = array<i64: 1, 9, 128>}, {pipeline_mode = #tpu.pipeline_mode<synchronous>, transform_indices = @transform_4, window_bounds = array<i64: 128, 128>}, {pipeline_mode = #tpu.pipeline_mode<synchronous>, transform_indices = @transform_5, window_bounds = array<i64: 1, 128>}, {pipeline_mode = #tpu.pipeline_mode<synchronous>, transform_indices = @transform_6, window_bounds = array<i64: 2, 1, 128>}, {pipeline_mode = #tpu.pipeline_mode<synchronous>, transform_indices = @transform_7, window_bounds = array<i64: 2, 1, 128>}, {pipeline_mode = #tpu.pipeline_mode<synchronous>, transform_indices = @transform_8, window_bounds = array<i64: 2, 1, 128>}, {pipeline_mode = #tpu.pipeline_mode<synchronous>, transform_indices = @transform_9, window_bounds = array<i64: 2, 1, 128>}, {pipeline_mode = #tpu.pipeline_mode<synchronous>, transform_indices = @transform_10, window_bounds = array<i64: 2, 128, 384>}, {pipeline_mode = #tpu.pipeline_mode<synchronous>, transform_indices = @transform_11, window_bounds = array<i64: 2, 1, 384>}, {pipeline_mode = #tpu.pipeline_mode<synchronous>, transform_indices = @transform_12, window_bounds = array<i64: 2, 128, 128>}, {pipeline_mode = #tpu.pipeline_mode<synchronous>, transform_indices = @transform_13, window_bounds = array<i64: 2, 1, 128>}, {pipeline_mode = #tpu.pipeline_mode<synchronous>, transform_indices = @transform_14, window_bounds = array<i64: 2, 128, 256>}, {pipeline_mode = #tpu.pipeline_mode<synchronous>, transform_indices = @transform_15, window_bounds = array<i64: 2, 1, 256>}, {pipeline_mode = #tpu.pipeline_mode<synchronous>, transform_indices = @transform_16, window_bounds = array<i64: 2, 256, 128>}, {pipeline_mode = #tpu.pipeline_mode<synchronous>, transform_indices = @transform_17, window_bounds = array<i64: 2, 1, 128>}, {pipeline_mode = #tpu.pipeline_mode<synchronous>, transform_indices = @transform_18, window_bounds = array<i64: 1, 128>}, {pipeline_mode = #tpu.pipeline_mode<synchronous>, transform_indices = @transform_19, window_bounds = array<i64: 1, 128>}, {pipeline_mode = #tpu.pipeline_mode<synchronous>, transform_indices = @transform_20, window_bounds = array<i64: 128, 128>}, {transform_indices = @transform_21, window_bounds = array<i64: 1, 9, 128>}, {transform_indices = @transform_22, window_bounds = array<i64: 1, 1, 2>}]} {
    %c0 = arith.constant 0 : index
    %c0_0 = arith.constant 0 : index
    %c0_1 = arith.constant 0 : index
    %0 = vector.load %arg1[%c0, %c0_0, %c0_1] : memref<1x1x128xf32, #tpu.memory_space<vmem>>, vector<1x1x128xf32>
    %1 = vector.shape_cast %0 : vector<1x1x128xf32> to vector<1x128xf32>
    %c0_2 = arith.constant 0 : index
    %c0_3 = arith.constant 0 : index
    %2 = vector.load %arg5[%c0_2, %c0_3] : memref<128x128xf32, #tpu.memory_space<vmem>>, vector<128x128xf32>
    %cst = arith.constant dense<0.000000e+00> : vector<1x128xf32>
    %3 = tpu.matmul %1, %2, %cst {dimension_numbers = #tpu.dot_dimension_numbers<[1], [0], [0], [1], [0, 0, 1, 1], [], []>} : vector<1x128xf32>, vector<128x128xf32>, vector<1x128xf32> -> vector<1x128xf32>
    %c0_4 = arith.constant 0 : index
    %c0_5 = arith.constant 0 : index
    %4 = vector.load %arg6[%c0_4, %c0_5] : memref<1x128xf32, #tpu.memory_space<vmem>>, vector<1x128xf32>
    %5 = arith.addf %3, %4 : vector<1x128xf32>
    %c0_6 = arith.constant 0 : index
    %c0_7 = arith.constant 0 : index
    %c0_8 = arith.constant 0 : index
    %6 = vector.load %arg2[%c0_6, %c0_7, %c0_8] : memref<1x8x128xf32, #tpu.memory_space<vmem>>, vector<1x8x128xf32>
    %7 = vector.shape_cast %6 : vector<1x8x128xf32> to vector<8x128xf32>
    %8 = tpu.concatenate %5, %7 in 0 : vector<1x128xf32>, vector<8x128xf32> -> vector<9x128xf32>
    %cst_9 = arith.constant 11.3137083 : f32
    %9 = vector.broadcast %cst_9 : f32 to vector<9x128xf32>
    %10 = arith.mulf %8, %9 : vector<9x128xf32>
    %c0_10 = arith.constant 0 : index
    %c0_11 = arith.constant 0 : index
    %11 = vector.load %arg3[%c0_10, %c0_11] : memref<9x128xf32, #tpu.memory_space<vmem>>, vector<9x128xf32>
    %12 = arith.addf %10, %11 : vector<9x128xf32>
    %13 = tpu.iota {dimensions = array<i32: 0>} : vector<9x9xi32>
    %14 = tpu.iota {dimensions = array<i32: 1>} : vector<9x9xi32>
    %15 = arith.cmpi sle, %14, %13 : vector<9x9xi32>
    %c0_12 = arith.constant 0 : index
    %c0_13 = arith.constant 0 : index
    %c0_14 = arith.constant 0 : index
    %16 = vector.load %arg7[%c0_12, %c0_13, %c0_14] : memref<2x1x128xf32, #tpu.memory_space<vmem>>, vector<1x1x128xf32>
    %17 = vector.shape_cast %16 : vector<1x1x128xf32> to vector<1x128xf32>
    %c0_15 = arith.constant 0 : index
    %c0_16 = arith.constant 0 : index
    %c0_17 = arith.constant 0 : index
    %18 = vector.load %arg8[%c0_15, %c0_16, %c0_17] : memref<2x1x128xf32, #tpu.memory_space<vmem>>, vector<1x1x128xf32>
    %19 = vector.shape_cast %18 : vector<1x1x128xf32> to vector<1x128xf32>
    %cst_18 = arith.constant dense<0.000000e+00> : vector<9xf32>
    %20 = vector.multi_reduction <add>, %12, %cst_18 [1] : vector<9x128xf32> to vector<9xf32>
    %21 = vector.shape_cast %20 : vector<9xf32> to vector<9x1xf32>
    %cst_19 = arith.constant 1.280000e+02 : f32
    %22 = vector.broadcast %cst_19 : f32 to vector<9x1xf32>
    %23 = arith.divf %21, %22 : vector<9x1xf32>
    %24 = vector.broadcast %23 : vector<9x1xf32> to vector<9x128xf32>
    %25 = arith.subf %12, %24 : vector<9x128xf32>
    %26 = arith.mulf %25, %25 : vector<9x128xf32>
    %cst_20 = arith.constant dense<0.000000e+00> : vector<9xf32>
    %27 = vector.multi_reduction <add>, %26, %cst_20 [1] : vector<9x128xf32> to vector<9xf32>
    %28 = vector.shape_cast %27 : vector<9xf32> to vector<9x1xf32>
    %cst_21 = arith.constant 1.280000e+02 : f32
    %29 = vector.broadcast %cst_21 : f32 to vector<9x1xf32>
    %30 = arith.divf %28, %29 : vector<9x1xf32>
    %31 = vector.broadcast %23 : vector<9x1xf32> to vector<9x128xf32>
    %32 = arith.subf %12, %31 : vector<9x128xf32>
    %cst_22 = arith.constant 9.99999974E-6 : f32
    %33 = vector.broadcast %cst_22 : f32 to vector<9x1xf32>
    %34 = arith.addf %30, %33 : vector<9x1xf32>
    %35 = math.rsqrt %34 : vector<9x1xf32>
    %36 = vector.broadcast %35 : vector<9x1xf32> to vector<9x128xf32>
    %37 = arith.mulf %32, %36 : vector<9x128xf32>
    %38 = vector.broadcast %17 : vector<1x128xf32> to vector<9x128xf32>
    %39 = arith.mulf %37, %38 : vector<9x128xf32>
    %40 = vector.broadcast %19 : vector<1x128xf32> to vector<9x128xf32>
    %41 = arith.addf %39, %40 : vector<9x128xf32>
    %c0_23 = arith.constant 0 : index
    %c0_24 = arith.constant 0 : index
    %c0_25 = arith.constant 0 : index
    %42 = vector.load %arg11[%c0_23, %c0_24, %c0_25] : memref<2x128x384xf32, #tpu.memory_space<vmem>>, vector<1x128x384xf32>
    %43 = vector.shape_cast %42 : vector<1x128x384xf32> to vector<128x384xf32>
    %cst_26 = arith.constant dense<0.000000e+00> : vector<9x384xf32>
    %44 = tpu.matmul %41, %43, %cst_26 {dimension_numbers = #tpu.dot_dimension_numbers<[1], [0], [0], [1], [0, 0, 1, 1], [], []>} : vector<9x128xf32>, vector<128x384xf32>, vector<9x384xf32> -> vector<9x384xf32>
    %c0_27 = arith.constant 0 : index
    %c0_28 = arith.constant 0 : index
    %c0_29 = arith.constant 0 : index
    %45 = vector.load %arg12[%c0_27, %c0_28, %c0_29] : memref<2x1x384xf32, #tpu.memory_space<vmem>>, vector<1x1x384xf32>
    %46 = vector.shape_cast %45 : vector<1x1x384xf32> to vector<1x384xf32>
    %47 = vector.broadcast %46 : vector<1x384xf32> to vector<9x384xf32>
    %48 = arith.addf %44, %47 : vector<9x384xf32>
    %49 = vector.extract_strided_slice %48 {offsets = [0, 0], sizes = [9, 32], strides = [1, 1]} : vector<9x384xf32> to vector<9x32xf32>
    %50 = vector.extract_strided_slice %48 {offsets = [0, 128], sizes = [9, 32], strides = [1, 1]} : vector<9x384xf32> to vector<9x32xf32>
    %51 = vector.extract_strided_slice %48 {offsets = [0, 256], sizes = [9, 32], strides = [1, 1]} : vector<9x384xf32> to vector<9x32xf32>
    %cst_30 = arith.constant dense<0.000000e+00> : vector<9x9xf32>
    %52 = tpu.matmul %49, %50, %cst_30 {dimension_numbers = #tpu.dot_dimension_numbers<[1], [1], [0], [0], [0, 0, 1, 0], [], []>} : vector<9x32xf32>, vector<9x32xf32>, vector<9x9xf32> -> vector<9x9xf32>
    %cst_31 = arith.constant 0.176776692 : f32
    %53 = vector.broadcast %cst_31 : f32 to vector<9x9xf32>
    %54 = arith.mulf %52, %53 : vector<9x9xf32>
    %cst_32 = arith.constant -1.000000e+30 : f32
    %55 = vector.broadcast %cst_32 : f32 to vector<9x9xf32>
    %56 = arith.select %15, %54, %55 : vector<9x9xi1>, vector<9x9xf32>
    %cst_33 = arith.constant dense<0xFF800000> : vector<9xf32>
    %57 = vector.multi_reduction <maximumf>, %56, %cst_33 [1] : vector<9x9xf32> to vector<9xf32>
    %58 = vector.shape_cast %57 : vector<9xf32> to vector<9x1xf32>
    %59 = vector.broadcast %58 : vector<9x1xf32> to vector<9x9xf32>
    %60 = arith.subf %56, %59 : vector<9x9xf32>
    %61 = math.exp %60 : vector<9x9xf32>
    %cst_34 = arith.constant dense<0.000000e+00> : vector<9xf32>
    %62 = vector.multi_reduction <add>, %61, %cst_34 [1] : vector<9x9xf32> to vector<9xf32>
    %63 = vector.shape_cast %62 : vector<9xf32> to vector<9x1xf32>
    %64 = tpu.reciprocal %63 {approx = true} : vector<9x1xf32> -> vector<9x1xf32>
    %cst_35 = arith.constant dense<0.000000e+00> : vector<9x32xf32>
    %65 = tpu.matmul %61, %51, %cst_35 {dimension_numbers = #tpu.dot_dimension_numbers<[1], [0], [0], [1], [0, 0, 1, 1], [], []>} : vector<9x9xf32>, vector<9x32xf32>, vector<9x32xf32> -> vector<9x32xf32>
    %66 = vector.broadcast %64 : vector<9x1xf32> to vector<9x32xf32>
    %67 = arith.mulf %65, %66 : vector<9x32xf32>
    %68 = vector.extract_strided_slice %48 {offsets = [0, 32], sizes = [9, 32], strides = [1, 1]} : vector<9x384xf32> to vector<9x32xf32>
    %69 = vector.extract_strided_slice %48 {offsets = [0, 160], sizes = [9, 32], strides = [1, 1]} : vector<9x384xf32> to vector<9x32xf32>
    %70 = vector.extract_strided_slice %48 {offsets = [0, 288], sizes = [9, 32], strides = [1, 1]} : vector<9x384xf32> to vector<9x32xf32>
    %cst_36 = arith.constant dense<0.000000e+00> : vector<9x9xf32>
    %71 = tpu.matmul %68, %69, %cst_36 {dimension_numbers = #tpu.dot_dimension_numbers<[1], [1], [0], [0], [0, 0, 1, 0], [], []>} : vector<9x32xf32>, vector<9x32xf32>, vector<9x9xf32> -> vector<9x9xf32>
    %cst_37 = arith.constant 0.176776692 : f32
    %72 = vector.broadcast %cst_37 : f32 to vector<9x9xf32>
    %73 = arith.mulf %71, %72 : vector<9x9xf32>
    %cst_38 = arith.constant -1.000000e+30 : f32
    %74 = vector.broadcast %cst_38 : f32 to vector<9x9xf32>
    %75 = arith.select %15, %73, %74 : vector<9x9xi1>, vector<9x9xf32>
    %cst_39 = arith.constant dense<0xFF800000> : vector<9xf32>
    %76 = vector.multi_reduction <maximumf>, %75, %cst_39 [1] : vector<9x9xf32> to vector<9xf32>
    %77 = vector.shape_cast %76 : vector<9xf32> to vector<9x1xf32>
    %78 = vector.broadcast %77 : vector<9x1xf32> to vector<9x9xf32>
    %79 = arith.subf %75, %78 : vector<9x9xf32>
    %80 = math.exp %79 : vector<9x9xf32>
    %cst_40 = arith.constant dense<0.000000e+00> : vector<9xf32>
    %81 = vector.multi_reduction <add>, %80, %cst_40 [1] : vector<9x9xf32> to vector<9xf32>
    %82 = vector.shape_cast %81 : vector<9xf32> to vector<9x1xf32>
    %83 = tpu.reciprocal %82 {approx = true} : vector<9x1xf32> -> vector<9x1xf32>
    %cst_41 = arith.constant dense<0.000000e+00> : vector<9x32xf32>
    %84 = tpu.matmul %80, %70, %cst_41 {dimension_numbers = #tpu.dot_dimension_numbers<[1], [0], [0], [1], [0, 0, 1, 1], [], []>} : vector<9x9xf32>, vector<9x32xf32>, vector<9x32xf32> -> vector<9x32xf32>
    %85 = vector.broadcast %83 : vector<9x1xf32> to vector<9x32xf32>
    %86 = arith.mulf %84, %85 : vector<9x32xf32>
    %87 = vector.extract_strided_slice %48 {offsets = [0, 64], sizes = [9, 32], strides = [1, 1]} : vector<9x384xf32> to vector<9x32xf32>
    %88 = vector.extract_strided_slice %48 {offsets = [0, 192], sizes = [9, 32], strides = [1, 1]} : vector<9x384xf32> to vector<9x32xf32>
    %89 = vector.extract_strided_slice %48 {offsets = [0, 320], sizes = [9, 32], strides = [1, 1]} : vector<9x384xf32> to vector<9x32xf32>
    %cst_42 = arith.constant dense<0.000000e+00> : vector<9x9xf32>
    %90 = tpu.matmul %87, %88, %cst_42 {dimension_numbers = #tpu.dot_dimension_numbers<[1], [1], [0], [0], [0, 0, 1, 0], [], []>} : vector<9x32xf32>, vector<9x32xf32>, vector<9x9xf32> -> vector<9x9xf32>
    %cst_43 = arith.constant 0.176776692 : f32
    %91 = vector.broadcast %cst_43 : f32 to vector<9x9xf32>
    %92 = arith.mulf %90, %91 : vector<9x9xf32>
    %cst_44 = arith.constant -1.000000e+30 : f32
    %93 = vector.broadcast %cst_44 : f32 to vector<9x9xf32>
    %94 = arith.select %15, %92, %93 : vector<9x9xi1>, vector<9x9xf32>
    %cst_45 = arith.constant dense<0xFF800000> : vector<9xf32>
    %95 = vector.multi_reduction <maximumf>, %94, %cst_45 [1] : vector<9x9xf32> to vector<9xf32>
    %96 = vector.shape_cast %95 : vector<9xf32> to vector<9x1xf32>
    %97 = vector.broadcast %96 : vector<9x1xf32> to vector<9x9xf32>
    %98 = arith.subf %94, %97 : vector<9x9xf32>
    %99 = math.exp %98 : vector<9x9xf32>
    %cst_46 = arith.constant dense<0.000000e+00> : vector<9xf32>
    %100 = vector.multi_reduction <add>, %99, %cst_46 [1] : vector<9x9xf32> to vector<9xf32>
    %101 = vector.shape_cast %100 : vector<9xf32> to vector<9x1xf32>
    %102 = tpu.reciprocal %101 {approx = true} : vector<9x1xf32> -> vector<9x1xf32>
    %cst_47 = arith.constant dense<0.000000e+00> : vector<9x32xf32>
    %103 = tpu.matmul %99, %89, %cst_47 {dimension_numbers = #tpu.dot_dimension_numbers<[1], [0], [0], [1], [0, 0, 1, 1], [], []>} : vector<9x9xf32>, vector<9x32xf32>, vector<9x32xf32> -> vector<9x32xf32>
    %104 = vector.broadcast %102 : vector<9x1xf32> to vector<9x32xf32>
    %105 = arith.mulf %103, %104 : vector<9x32xf32>
    %106 = vector.extract_strided_slice %48 {offsets = [0, 96], sizes = [9, 32], strides = [1, 1]} : vector<9x384xf32> to vector<9x32xf32>
    %107 = vector.extract_strided_slice %48 {offsets = [0, 224], sizes = [9, 32], strides = [1, 1]} : vector<9x384xf32> to vector<9x32xf32>
    %108 = vector.extract_strided_slice %48 {offsets = [0, 352], sizes = [9, 32], strides = [1, 1]} : vector<9x384xf32> to vector<9x32xf32>
    %cst_48 = arith.constant dense<0.000000e+00> : vector<9x9xf32>
    %109 = tpu.matmul %106, %107, %cst_48 {dimension_numbers = #tpu.dot_dimension_numbers<[1], [1], [0], [0], [0, 0, 1, 0], [], []>} : vector<9x32xf32>, vector<9x32xf32>, vector<9x9xf32> -> vector<9x9xf32>
    %cst_49 = arith.constant 0.176776692 : f32
    %110 = vector.broadcast %cst_49 : f32 to vector<9x9xf32>
    %111 = arith.mulf %109, %110 : vector<9x9xf32>
    %cst_50 = arith.constant -1.000000e+30 : f32
    %112 = vector.broadcast %cst_50 : f32 to vector<9x9xf32>
    %113 = arith.select %15, %111, %112 : vector<9x9xi1>, vector<9x9xf32>
    %cst_51 = arith.constant dense<0xFF800000> : vector<9xf32>
    %114 = vector.multi_reduction <maximumf>, %113, %cst_51 [1] : vector<9x9xf32> to vector<9xf32>
    %115 = vector.shape_cast %114 : vector<9xf32> to vector<9x1xf32>
    %116 = vector.broadcast %115 : vector<9x1xf32> to vector<9x9xf32>
    %117 = arith.subf %113, %116 : vector<9x9xf32>
    %118 = math.exp %117 : vector<9x9xf32>
    %cst_52 = arith.constant dense<0.000000e+00> : vector<9xf32>
    %119 = vector.multi_reduction <add>, %118, %cst_52 [1] : vector<9x9xf32> to vector<9xf32>
    %120 = vector.shape_cast %119 : vector<9xf32> to vector<9x1xf32>
    %121 = tpu.reciprocal %120 {approx = true} : vector<9x1xf32> -> vector<9x1xf32>
    %cst_53 = arith.constant dense<0.000000e+00> : vector<9x32xf32>
    %122 = tpu.matmul %118, %108, %cst_53 {dimension_numbers = #tpu.dot_dimension_numbers<[1], [0], [0], [1], [0, 0, 1, 1], [], []>} : vector<9x9xf32>, vector<9x32xf32>, vector<9x32xf32> -> vector<9x32xf32>
    %123 = vector.broadcast %121 : vector<9x1xf32> to vector<9x32xf32>
    %124 = arith.mulf %122, %123 : vector<9x32xf32>
    %125 = tpu.concatenate %67, %86, %105, %124 in 1 : vector<9x32xf32>, vector<9x32xf32>, vector<9x32xf32>, vector<9x32xf32> -> vector<9x128xf32>
    %c0_54 = arith.constant 0 : index
    %c0_55 = arith.constant 0 : index
    %c0_56 = arith.constant 0 : index
    %126 = vector.load %arg13[%c0_54, %c0_55, %c0_56] : memref<2x128x128xf32, #tpu.memory_space<vmem>>, vector<1x128x128xf32>
    %127 = vector.shape_cast %126 : vector<1x128x128xf32> to vector<128x128xf32>
    %cst_57 = arith.constant dense<0.000000e+00> : vector<9x128xf32>
    %128 = tpu.matmul %125, %127, %cst_57 {dimension_numbers = #tpu.dot_dimension_numbers<[1], [0], [0], [1], [0, 0, 1, 1], [], []>} : vector<9x128xf32>, vector<128x128xf32>, vector<9x128xf32> -> vector<9x128xf32>
    %129 = arith.addf %12, %128 : vector<9x128xf32>
    %c0_58 = arith.constant 0 : index
    %c0_59 = arith.constant 0 : index
    %c0_60 = arith.constant 0 : index
    %130 = vector.load %arg14[%c0_58, %c0_59, %c0_60] : memref<2x1x128xf32, #tpu.memory_space<vmem>>, vector<1x1x128xf32>
    %131 = vector.shape_cast %130 : vector<1x1x128xf32> to vector<1x128xf32>
    %132 = vector.broadcast %131 : vector<1x128xf32> to vector<9x128xf32>
    %133 = arith.addf %129, %132 : vector<9x128xf32>
    %c0_61 = arith.constant 0 : index
    %c0_62 = arith.constant 0 : index
    %c0_63 = arith.constant 0 : index
    %134 = vector.load %arg9[%c0_61, %c0_62, %c0_63] : memref<2x1x128xf32, #tpu.memory_space<vmem>>, vector<1x1x128xf32>
    %135 = vector.shape_cast %134 : vector<1x1x128xf32> to vector<1x128xf32>
    %c0_64 = arith.constant 0 : index
    %c0_65 = arith.constant 0 : index
    %c0_66 = arith.constant 0 : index
    %136 = vector.load %arg10[%c0_64, %c0_65, %c0_66] : memref<2x1x128xf32, #tpu.memory_space<vmem>>, vector<1x1x128xf32>
    %137 = vector.shape_cast %136 : vector<1x1x128xf32> to vector<1x128xf32>
    %cst_67 = arith.constant dense<0.000000e+00> : vector<9xf32>
    %138 = vector.multi_reduction <add>, %133, %cst_67 [1] : vector<9x128xf32> to vector<9xf32>
    %139 = vector.shape_cast %138 : vector<9xf32> to vector<9x1xf32>
    %cst_68 = arith.constant 1.280000e+02 : f32
    %140 = vector.broadcast %cst_68 : f32 to vector<9x1xf32>
    %141 = arith.divf %139, %140 : vector<9x1xf32>
    %142 = vector.broadcast %141 : vector<9x1xf32> to vector<9x128xf32>
    %143 = arith.subf %133, %142 : vector<9x128xf32>
    %144 = arith.mulf %143, %143 : vector<9x128xf32>
    %cst_69 = arith.constant dense<0.000000e+00> : vector<9xf32>
    %145 = vector.multi_reduction <add>, %144, %cst_69 [1] : vector<9x128xf32> to vector<9xf32>
    %146 = vector.shape_cast %145 : vector<9xf32> to vector<9x1xf32>
    %cst_70 = arith.constant 1.280000e+02 : f32
    %147 = vector.broadcast %cst_70 : f32 to vector<9x1xf32>
    %148 = arith.divf %146, %147 : vector<9x1xf32>
    %149 = vector.broadcast %141 : vector<9x1xf32> to vector<9x128xf32>
    %150 = arith.subf %133, %149 : vector<9x128xf32>
    %cst_71 = arith.constant 9.99999974E-6 : f32
    %151 = vector.broadcast %cst_71 : f32 to vector<9x1xf32>
    %152 = arith.addf %148, %151 : vector<9x1xf32>
    %153 = math.rsqrt %152 : vector<9x1xf32>
    %154 = vector.broadcast %153 : vector<9x1xf32> to vector<9x128xf32>
    %155 = arith.mulf %150, %154 : vector<9x128xf32>
    %156 = vector.broadcast %135 : vector<1x128xf32> to vector<9x128xf32>
    %157 = arith.mulf %155, %156 : vector<9x128xf32>
    %158 = vector.broadcast %137 : vector<1x128xf32> to vector<9x128xf32>
    %159 = arith.addf %157, %158 : vector<9x128xf32>
    %c0_72 = arith.constant 0 : index
    %c0_73 = arith.constant 0 : index
    %c0_74 = arith.constant 0 : index
    %160 = vector.load %arg15[%c0_72, %c0_73, %c0_74] : memref<2x128x256xf32, #tpu.memory_space<vmem>>, vector<1x128x256xf32>
    %161 = vector.shape_cast %160 : vector<1x128x256xf32> to vector<128x256xf32>
    %cst_75 = arith.constant dense<0.000000e+00> : vector<9x256xf32>
    %162 = tpu.matmul %159, %161, %cst_75 {dimension_numbers = #tpu.dot_dimension_numbers<[1], [0], [0], [1], [0, 0, 1, 1], [], []>} : vector<9x128xf32>, vector<128x256xf32>, vector<9x256xf32> -> vector<9x256xf32>
    %c0_76 = arith.constant 0 : index
    %c0_77 = arith.constant 0 : index
    %c0_78 = arith.constant 0 : index
    %163 = vector.load %arg16[%c0_76, %c0_77, %c0_78] : memref<2x1x256xf32, #tpu.memory_space<vmem>>, vector<1x1x256xf32>
    %164 = vector.shape_cast %163 : vector<1x1x256xf32> to vector<1x256xf32>
    %165 = vector.broadcast %164 : vector<1x256xf32> to vector<9x256xf32>
    %166 = arith.addf %162, %165 : vector<9x256xf32>
    %167 = arith.mulf %166, %166 : vector<9x256xf32>
    %168 = arith.mulf %166, %167 : vector<9x256xf32>
    %cst_79 = arith.constant 4.471500e-02 : f32
    %169 = vector.broadcast %cst_79 : f32 to vector<9x256xf32>
    %170 = arith.mulf %169, %168 : vector<9x256xf32>
    %171 = arith.addf %166, %170 : vector<9x256xf32>
    %cst_80 = arith.constant 0.797884583 : f32
    %172 = vector.broadcast %cst_80 : f32 to vector<9x256xf32>
    %173 = arith.mulf %172, %171 : vector<9x256xf32>
    %174 = math.tanh %173 : vector<9x256xf32>
    %cst_81 = arith.constant 1.000000e+00 : f32
    %175 = vector.broadcast %cst_81 : f32 to vector<9x256xf32>
    %176 = arith.addf %175, %174 : vector<9x256xf32>
    %cst_82 = arith.constant 5.000000e-01 : f32
    %177 = vector.broadcast %cst_82 : f32 to vector<9x256xf32>
    %178 = arith.mulf %177, %176 : vector<9x256xf32>
    %179 = arith.mulf %166, %178 : vector<9x256xf32>
    %c0_83 = arith.constant 0 : index
    %c0_84 = arith.constant 0 : index
    %c0_85 = arith.constant 0 : index
    %180 = vector.load %arg17[%c0_83, %c0_84, %c0_85] : memref<2x256x128xf32, #tpu.memory_space<vmem>>, vector<1x256x128xf32>
    %181 = vector.shape_cast %180 : vector<1x256x128xf32> to vector<256x128xf32>
    %cst_86 = arith.constant dense<0.000000e+00> : vector<9x128xf32>
    %182 = tpu.matmul %179, %181, %cst_86 {dimension_numbers = #tpu.dot_dimension_numbers<[1], [0], [0], [1], [0, 0, 1, 1], [], []>} : vector<9x256xf32>, vector<256x128xf32>, vector<9x128xf32> -> vector<9x128xf32>
    %183 = arith.addf %133, %182 : vector<9x128xf32>
    %c0_87 = arith.constant 0 : index
    %c0_88 = arith.constant 0 : index
    %c0_89 = arith.constant 0 : index
    %184 = vector.load %arg18[%c0_87, %c0_88, %c0_89] : memref<2x1x128xf32, #tpu.memory_space<vmem>>, vector<1x1x128xf32>
    %185 = vector.shape_cast %184 : vector<1x1x128xf32> to vector<1x128xf32>
    %186 = vector.broadcast %185 : vector<1x128xf32> to vector<9x128xf32>
    %187 = arith.addf %183, %186 : vector<9x128xf32>
    %c1 = arith.constant 1 : index
    %c0_90 = arith.constant 0 : index
    %c0_91 = arith.constant 0 : index
    %188 = vector.load %arg7[%c1, %c0_90, %c0_91] : memref<2x1x128xf32, #tpu.memory_space<vmem>>, vector<1x1x128xf32>
    %189 = vector.shape_cast %188 : vector<1x1x128xf32> to vector<1x128xf32>
    %c1_92 = arith.constant 1 : index
    %c0_93 = arith.constant 0 : index
    %c0_94 = arith.constant 0 : index
    %190 = vector.load %arg8[%c1_92, %c0_93, %c0_94] : memref<2x1x128xf32, #tpu.memory_space<vmem>>, vector<1x1x128xf32>
    %191 = vector.shape_cast %190 : vector<1x1x128xf32> to vector<1x128xf32>
    %cst_95 = arith.constant dense<0.000000e+00> : vector<9xf32>
    %192 = vector.multi_reduction <add>, %187, %cst_95 [1] : vector<9x128xf32> to vector<9xf32>
    %193 = vector.shape_cast %192 : vector<9xf32> to vector<9x1xf32>
    %cst_96 = arith.constant 1.280000e+02 : f32
    %194 = vector.broadcast %cst_96 : f32 to vector<9x1xf32>
    %195 = arith.divf %193, %194 : vector<9x1xf32>
    %196 = vector.broadcast %195 : vector<9x1xf32> to vector<9x128xf32>
    %197 = arith.subf %187, %196 : vector<9x128xf32>
    %198 = arith.mulf %197, %197 : vector<9x128xf32>
    %cst_97 = arith.constant dense<0.000000e+00> : vector<9xf32>
    %199 = vector.multi_reduction <add>, %198, %cst_97 [1] : vector<9x128xf32> to vector<9xf32>
    %200 = vector.shape_cast %199 : vector<9xf32> to vector<9x1xf32>
    %cst_98 = arith.constant 1.280000e+02 : f32
    %201 = vector.broadcast %cst_98 : f32 to vector<9x1xf32>
    %202 = arith.divf %200, %201 : vector<9x1xf32>
    %203 = vector.broadcast %195 : vector<9x1xf32> to vector<9x128xf32>
    %204 = arith.subf %187, %203 : vector<9x128xf32>
    %cst_99 = arith.constant 9.99999974E-6 : f32
    %205 = vector.broadcast %cst_99 : f32 to vector<9x1xf32>
    %206 = arith.addf %202, %205 : vector<9x1xf32>
    %207 = math.rsqrt %206 : vector<9x1xf32>
    %208 = vector.broadcast %207 : vector<9x1xf32> to vector<9x128xf32>
    %209 = arith.mulf %204, %208 : vector<9x128xf32>
    %210 = vector.broadcast %189 : vector<1x128xf32> to vector<9x128xf32>
    %211 = arith.mulf %209, %210 : vector<9x128xf32>
    %212 = vector.broadcast %191 : vector<1x128xf32> to vector<9x128xf32>
    %213 = arith.addf %211, %212 : vector<9x128xf32>
    %c1_100 = arith.constant 1 : index
    %c0_101 = arith.constant 0 : index
    %c0_102 = arith.constant 0 : index
    %214 = vector.load %arg11[%c1_100, %c0_101, %c0_102] : memref<2x128x384xf32, #tpu.memory_space<vmem>>, vector<1x128x384xf32>
    %215 = vector.shape_cast %214 : vector<1x128x384xf32> to vector<128x384xf32>
    %cst_103 = arith.constant dense<0.000000e+00> : vector<9x384xf32>
    %216 = tpu.matmul %213, %215, %cst_103 {dimension_numbers = #tpu.dot_dimension_numbers<[1], [0], [0], [1], [0, 0, 1, 1], [], []>} : vector<9x128xf32>, vector<128x384xf32>, vector<9x384xf32> -> vector<9x384xf32>
    %c1_104 = arith.constant 1 : index
    %c0_105 = arith.constant 0 : index
    %c0_106 = arith.constant 0 : index
    %217 = vector.load %arg12[%c1_104, %c0_105, %c0_106] : memref<2x1x384xf32, #tpu.memory_space<vmem>>, vector<1x1x384xf32>
    %218 = vector.shape_cast %217 : vector<1x1x384xf32> to vector<1x384xf32>
    %219 = vector.broadcast %218 : vector<1x384xf32> to vector<9x384xf32>
    %220 = arith.addf %216, %219 : vector<9x384xf32>
    %221 = vector.extract_strided_slice %220 {offsets = [0, 0], sizes = [9, 32], strides = [1, 1]} : vector<9x384xf32> to vector<9x32xf32>
    %222 = vector.extract_strided_slice %220 {offsets = [0, 128], sizes = [9, 32], strides = [1, 1]} : vector<9x384xf32> to vector<9x32xf32>
    %223 = vector.extract_strided_slice %220 {offsets = [0, 256], sizes = [9, 32], strides = [1, 1]} : vector<9x384xf32> to vector<9x32xf32>
    %cst_107 = arith.constant dense<0.000000e+00> : vector<9x9xf32>
    %224 = tpu.matmul %221, %222, %cst_107 {dimension_numbers = #tpu.dot_dimension_numbers<[1], [1], [0], [0], [0, 0, 1, 0], [], []>} : vector<9x32xf32>, vector<9x32xf32>, vector<9x9xf32> -> vector<9x9xf32>
    %cst_108 = arith.constant 0.176776692 : f32
    %225 = vector.broadcast %cst_108 : f32 to vector<9x9xf32>
    %226 = arith.mulf %224, %225 : vector<9x9xf32>
    %cst_109 = arith.constant -1.000000e+30 : f32
    %227 = vector.broadcast %cst_109 : f32 to vector<9x9xf32>
    %228 = arith.select %15, %226, %227 : vector<9x9xi1>, vector<9x9xf32>
    %cst_110 = arith.constant dense<0xFF800000> : vector<9xf32>
    %229 = vector.multi_reduction <maximumf>, %228, %cst_110 [1] : vector<9x9xf32> to vector<9xf32>
    %230 = vector.shape_cast %229 : vector<9xf32> to vector<9x1xf32>
    %231 = vector.broadcast %230 : vector<9x1xf32> to vector<9x9xf32>
    %232 = arith.subf %228, %231 : vector<9x9xf32>
    %233 = math.exp %232 : vector<9x9xf32>
    %cst_111 = arith.constant dense<0.000000e+00> : vector<9xf32>
    %234 = vector.multi_reduction <add>, %233, %cst_111 [1] : vector<9x9xf32> to vector<9xf32>
    %235 = vector.shape_cast %234 : vector<9xf32> to vector<9x1xf32>
    %236 = tpu.reciprocal %235 {approx = true} : vector<9x1xf32> -> vector<9x1xf32>
    %cst_112 = arith.constant dense<0.000000e+00> : vector<9x32xf32>
    %237 = tpu.matmul %233, %223, %cst_112 {dimension_numbers = #tpu.dot_dimension_numbers<[1], [0], [0], [1], [0, 0, 1, 1], [], []>} : vector<9x9xf32>, vector<9x32xf32>, vector<9x32xf32> -> vector<9x32xf32>
    %238 = vector.broadcast %236 : vector<9x1xf32> to vector<9x32xf32>
    %239 = arith.mulf %237, %238 : vector<9x32xf32>
    %240 = vector.extract_strided_slice %220 {offsets = [0, 32], sizes = [9, 32], strides = [1, 1]} : vector<9x384xf32> to vector<9x32xf32>
    %241 = vector.extract_strided_slice %220 {offsets = [0, 160], sizes = [9, 32], strides = [1, 1]} : vector<9x384xf32> to vector<9x32xf32>
    %242 = vector.extract_strided_slice %220 {offsets = [0, 288], sizes = [9, 32], strides = [1, 1]} : vector<9x384xf32> to vector<9x32xf32>
    %cst_113 = arith.constant dense<0.000000e+00> : vector<9x9xf32>
    %243 = tpu.matmul %240, %241, %cst_113 {dimension_numbers = #tpu.dot_dimension_numbers<[1], [1], [0], [0], [0, 0, 1, 0], [], []>} : vector<9x32xf32>, vector<9x32xf32>, vector<9x9xf32> -> vector<9x9xf32>
    %cst_114 = arith.constant 0.176776692 : f32
    %244 = vector.broadcast %cst_114 : f32 to vector<9x9xf32>
    %245 = arith.mulf %243, %244 : vector<9x9xf32>
    %cst_115 = arith.constant -1.000000e+30 : f32
    %246 = vector.broadcast %cst_115 : f32 to vector<9x9xf32>
    %247 = arith.select %15, %245, %246 : vector<9x9xi1>, vector<9x9xf32>
    %cst_116 = arith.constant dense<0xFF800000> : vector<9xf32>
    %248 = vector.multi_reduction <maximumf>, %247, %cst_116 [1] : vector<9x9xf32> to vector<9xf32>
    %249 = vector.shape_cast %248 : vector<9xf32> to vector<9x1xf32>
    %250 = vector.broadcast %249 : vector<9x1xf32> to vector<9x9xf32>
    %251 = arith.subf %247, %250 : vector<9x9xf32>
    %252 = math.exp %251 : vector<9x9xf32>
    %cst_117 = arith.constant dense<0.000000e+00> : vector<9xf32>
    %253 = vector.multi_reduction <add>, %252, %cst_117 [1] : vector<9x9xf32> to vector<9xf32>
    %254 = vector.shape_cast %253 : vector<9xf32> to vector<9x1xf32>
    %255 = tpu.reciprocal %254 {approx = true} : vector<9x1xf32> -> vector<9x1xf32>
    %cst_118 = arith.constant dense<0.000000e+00> : vector<9x32xf32>
    %256 = tpu.matmul %252, %242, %cst_118 {dimension_numbers = #tpu.dot_dimension_numbers<[1], [0], [0], [1], [0, 0, 1, 1], [], []>} : vector<9x9xf32>, vector<9x32xf32>, vector<9x32xf32> -> vector<9x32xf32>
    %257 = vector.broadcast %255 : vector<9x1xf32> to vector<9x32xf32>
    %258 = arith.mulf %256, %257 : vector<9x32xf32>
    %259 = vector.extract_strided_slice %220 {offsets = [0, 64], sizes = [9, 32], strides = [1, 1]} : vector<9x384xf32> to vector<9x32xf32>
    %260 = vector.extract_strided_slice %220 {offsets = [0, 192], sizes = [9, 32], strides = [1, 1]} : vector<9x384xf32> to vector<9x32xf32>
    %261 = vector.extract_strided_slice %220 {offsets = [0, 320], sizes = [9, 32], strides = [1, 1]} : vector<9x384xf32> to vector<9x32xf32>
    %cst_119 = arith.constant dense<0.000000e+00> : vector<9x9xf32>
    %262 = tpu.matmul %259, %260, %cst_119 {dimension_numbers = #tpu.dot_dimension_numbers<[1], [1], [0], [0], [0, 0, 1, 0], [], []>} : vector<9x32xf32>, vector<9x32xf32>, vector<9x9xf32> -> vector<9x9xf32>
    %cst_120 = arith.constant 0.176776692 : f32
    %263 = vector.broadcast %cst_120 : f32 to vector<9x9xf32>
    %264 = arith.mulf %262, %263 : vector<9x9xf32>
    %cst_121 = arith.constant -1.000000e+30 : f32
    %265 = vector.broadcast %cst_121 : f32 to vector<9x9xf32>
    %266 = arith.select %15, %264, %265 : vector<9x9xi1>, vector<9x9xf32>
    %cst_122 = arith.constant dense<0xFF800000> : vector<9xf32>
    %267 = vector.multi_reduction <maximumf>, %266, %cst_122 [1] : vector<9x9xf32> to vector<9xf32>
    %268 = vector.shape_cast %267 : vector<9xf32> to vector<9x1xf32>
    %269 = vector.broadcast %268 : vector<9x1xf32> to vector<9x9xf32>
    %270 = arith.subf %266, %269 : vector<9x9xf32>
    %271 = math.exp %270 : vector<9x9xf32>
    %cst_123 = arith.constant dense<0.000000e+00> : vector<9xf32>
    %272 = vector.multi_reduction <add>, %271, %cst_123 [1] : vector<9x9xf32> to vector<9xf32>
    %273 = vector.shape_cast %272 : vector<9xf32> to vector<9x1xf32>
    %274 = tpu.reciprocal %273 {approx = true} : vector<9x1xf32> -> vector<9x1xf32>
    %cst_124 = arith.constant dense<0.000000e+00> : vector<9x32xf32>
    %275 = tpu.matmul %271, %261, %cst_124 {dimension_numbers = #tpu.dot_dimension_numbers<[1], [0], [0], [1], [0, 0, 1, 1], [], []>} : vector<9x9xf32>, vector<9x32xf32>, vector<9x32xf32> -> vector<9x32xf32>
    %276 = vector.broadcast %274 : vector<9x1xf32> to vector<9x32xf32>
    %277 = arith.mulf %275, %276 : vector<9x32xf32>
    %278 = vector.extract_strided_slice %220 {offsets = [0, 96], sizes = [9, 32], strides = [1, 1]} : vector<9x384xf32> to vector<9x32xf32>
    %279 = vector.extract_strided_slice %220 {offsets = [0, 224], sizes = [9, 32], strides = [1, 1]} : vector<9x384xf32> to vector<9x32xf32>
    %280 = vector.extract_strided_slice %220 {offsets = [0, 352], sizes = [9, 32], strides = [1, 1]} : vector<9x384xf32> to vector<9x32xf32>
    %cst_125 = arith.constant dense<0.000000e+00> : vector<9x9xf32>
    %281 = tpu.matmul %278, %279, %cst_125 {dimension_numbers = #tpu.dot_dimension_numbers<[1], [1], [0], [0], [0, 0, 1, 0], [], []>} : vector<9x32xf32>, vector<9x32xf32>, vector<9x9xf32> -> vector<9x9xf32>
    %cst_126 = arith.constant 0.176776692 : f32
    %282 = vector.broadcast %cst_126 : f32 to vector<9x9xf32>
    %283 = arith.mulf %281, %282 : vector<9x9xf32>
    %cst_127 = arith.constant -1.000000e+30 : f32
    %284 = vector.broadcast %cst_127 : f32 to vector<9x9xf32>
    %285 = arith.select %15, %283, %284 : vector<9x9xi1>, vector<9x9xf32>
    %cst_128 = arith.constant dense<0xFF800000> : vector<9xf32>
    %286 = vector.multi_reduction <maximumf>, %285, %cst_128 [1] : vector<9x9xf32> to vector<9xf32>
    %287 = vector.shape_cast %286 : vector<9xf32> to vector<9x1xf32>
    %288 = vector.broadcast %287 : vector<9x1xf32> to vector<9x9xf32>
    %289 = arith.subf %285, %288 : vector<9x9xf32>
    %290 = math.exp %289 : vector<9x9xf32>
    %cst_129 = arith.constant dense<0.000000e+00> : vector<9xf32>
    %291 = vector.multi_reduction <add>, %290, %cst_129 [1] : vector<9x9xf32> to vector<9xf32>
    %292 = vector.shape_cast %291 : vector<9xf32> to vector<9x1xf32>
    %293 = tpu.reciprocal %292 {approx = true} : vector<9x1xf32> -> vector<9x1xf32>
    %cst_130 = arith.constant dense<0.000000e+00> : vector<9x32xf32>
    %294 = tpu.matmul %290, %280, %cst_130 {dimension_numbers = #tpu.dot_dimension_numbers<[1], [0], [0], [1], [0, 0, 1, 1], [], []>} : vector<9x9xf32>, vector<9x32xf32>, vector<9x32xf32> -> vector<9x32xf32>
    %295 = vector.broadcast %293 : vector<9x1xf32> to vector<9x32xf32>
    %296 = arith.mulf %294, %295 : vector<9x32xf32>
    %297 = tpu.concatenate %239, %258, %277, %296 in 1 : vector<9x32xf32>, vector<9x32xf32>, vector<9x32xf32>, vector<9x32xf32> -> vector<9x128xf32>
    %c1_131 = arith.constant 1 : index
    %c0_132 = arith.constant 0 : index
    %c0_133 = arith.constant 0 : index
    %298 = vector.load %arg13[%c1_131, %c0_132, %c0_133] : memref<2x128x128xf32, #tpu.memory_space<vmem>>, vector<1x128x128xf32>
    %299 = vector.shape_cast %298 : vector<1x128x128xf32> to vector<128x128xf32>
    %cst_134 = arith.constant dense<0.000000e+00> : vector<9x128xf32>
    %300 = tpu.matmul %297, %299, %cst_134 {dimension_numbers = #tpu.dot_dimension_numbers<[1], [0], [0], [1], [0, 0, 1, 1], [], []>} : vector<9x128xf32>, vector<128x128xf32>, vector<9x128xf32> -> vector<9x128xf32>
    %301 = arith.addf %187, %300 : vector<9x128xf32>
    %c1_135 = arith.constant 1 : index
    %c0_136 = arith.constant 0 : index
    %c0_137 = arith.constant 0 : index
    %302 = vector.load %arg14[%c1_135, %c0_136, %c0_137] : memref<2x1x128xf32, #tpu.memory_space<vmem>>, vector<1x1x128xf32>
    %303 = vector.shape_cast %302 : vector<1x1x128xf32> to vector<1x128xf32>
    %304 = vector.broadcast %303 : vector<1x128xf32> to vector<9x128xf32>
    %305 = arith.addf %301, %304 : vector<9x128xf32>
    %c1_138 = arith.constant 1 : index
    %c0_139 = arith.constant 0 : index
    %c0_140 = arith.constant 0 : index
    %306 = vector.load %arg9[%c1_138, %c0_139, %c0_140] : memref<2x1x128xf32, #tpu.memory_space<vmem>>, vector<1x1x128xf32>
    %307 = vector.shape_cast %306 : vector<1x1x128xf32> to vector<1x128xf32>
    %c1_141 = arith.constant 1 : index
    %c0_142 = arith.constant 0 : index
    %c0_143 = arith.constant 0 : index
    %308 = vector.load %arg10[%c1_141, %c0_142, %c0_143] : memref<2x1x128xf32, #tpu.memory_space<vmem>>, vector<1x1x128xf32>
    %309 = vector.shape_cast %308 : vector<1x1x128xf32> to vector<1x128xf32>
    %cst_144 = arith.constant dense<0.000000e+00> : vector<9xf32>
    %310 = vector.multi_reduction <add>, %305, %cst_144 [1] : vector<9x128xf32> to vector<9xf32>
    %311 = vector.shape_cast %310 : vector<9xf32> to vector<9x1xf32>
    %cst_145 = arith.constant 1.280000e+02 : f32
    %312 = vector.broadcast %cst_145 : f32 to vector<9x1xf32>
    %313 = arith.divf %311, %312 : vector<9x1xf32>
    %314 = vector.broadcast %313 : vector<9x1xf32> to vector<9x128xf32>
    %315 = arith.subf %305, %314 : vector<9x128xf32>
    %316 = arith.mulf %315, %315 : vector<9x128xf32>
    %cst_146 = arith.constant dense<0.000000e+00> : vector<9xf32>
    %317 = vector.multi_reduction <add>, %316, %cst_146 [1] : vector<9x128xf32> to vector<9xf32>
    %318 = vector.shape_cast %317 : vector<9xf32> to vector<9x1xf32>
    %cst_147 = arith.constant 1.280000e+02 : f32
    %319 = vector.broadcast %cst_147 : f32 to vector<9x1xf32>
    %320 = arith.divf %318, %319 : vector<9x1xf32>
    %321 = vector.broadcast %313 : vector<9x1xf32> to vector<9x128xf32>
    %322 = arith.subf %305, %321 : vector<9x128xf32>
    %cst_148 = arith.constant 9.99999974E-6 : f32
    %323 = vector.broadcast %cst_148 : f32 to vector<9x1xf32>
    %324 = arith.addf %320, %323 : vector<9x1xf32>
    %325 = math.rsqrt %324 : vector<9x1xf32>
    %326 = vector.broadcast %325 : vector<9x1xf32> to vector<9x128xf32>
    %327 = arith.mulf %322, %326 : vector<9x128xf32>
    %328 = vector.broadcast %307 : vector<1x128xf32> to vector<9x128xf32>
    %329 = arith.mulf %327, %328 : vector<9x128xf32>
    %330 = vector.broadcast %309 : vector<1x128xf32> to vector<9x128xf32>
    %331 = arith.addf %329, %330 : vector<9x128xf32>
    %c1_149 = arith.constant 1 : index
    %c0_150 = arith.constant 0 : index
    %c0_151 = arith.constant 0 : index
    %332 = vector.load %arg15[%c1_149, %c0_150, %c0_151] : memref<2x128x256xf32, #tpu.memory_space<vmem>>, vector<1x128x256xf32>
    %333 = vector.shape_cast %332 : vector<1x128x256xf32> to vector<128x256xf32>
    %cst_152 = arith.constant dense<0.000000e+00> : vector<9x256xf32>
    %334 = tpu.matmul %331, %333, %cst_152 {dimension_numbers = #tpu.dot_dimension_numbers<[1], [0], [0], [1], [0, 0, 1, 1], [], []>} : vector<9x128xf32>, vector<128x256xf32>, vector<9x256xf32> -> vector<9x256xf32>
    %c1_153 = arith.constant 1 : index
    %c0_154 = arith.constant 0 : index
    %c0_155 = arith.constant 0 : index
    %335 = vector.load %arg16[%c1_153, %c0_154, %c0_155] : memref<2x1x256xf32, #tpu.memory_space<vmem>>, vector<1x1x256xf32>
    %336 = vector.shape_cast %335 : vector<1x1x256xf32> to vector<1x256xf32>
    %337 = vector.broadcast %336 : vector<1x256xf32> to vector<9x256xf32>
    %338 = arith.addf %334, %337 : vector<9x256xf32>
    %339 = arith.mulf %338, %338 : vector<9x256xf32>
    %340 = arith.mulf %338, %339 : vector<9x256xf32>
    %cst_156 = arith.constant 4.471500e-02 : f32
    %341 = vector.broadcast %cst_156 : f32 to vector<9x256xf32>
    %342 = arith.mulf %341, %340 : vector<9x256xf32>
    %343 = arith.addf %338, %342 : vector<9x256xf32>
    %cst_157 = arith.constant 0.797884583 : f32
    %344 = vector.broadcast %cst_157 : f32 to vector<9x256xf32>
    %345 = arith.mulf %344, %343 : vector<9x256xf32>
    %346 = math.tanh %345 : vector<9x256xf32>
    %cst_158 = arith.constant 1.000000e+00 : f32
    %347 = vector.broadcast %cst_158 : f32 to vector<9x256xf32>
    %348 = arith.addf %347, %346 : vector<9x256xf32>
    %cst_159 = arith.constant 5.000000e-01 : f32
    %349 = vector.broadcast %cst_159 : f32 to vector<9x256xf32>
    %350 = arith.mulf %349, %348 : vector<9x256xf32>
    %351 = arith.mulf %338, %350 : vector<9x256xf32>
    %c1_160 = arith.constant 1 : index
    %c0_161 = arith.constant 0 : index
    %c0_162 = arith.constant 0 : index
    %352 = vector.load %arg17[%c1_160, %c0_161, %c0_162] : memref<2x256x128xf32, #tpu.memory_space<vmem>>, vector<1x256x128xf32>
    %353 = vector.shape_cast %352 : vector<1x256x128xf32> to vector<256x128xf32>
    %cst_163 = arith.constant dense<0.000000e+00> : vector<9x128xf32>
    %354 = tpu.matmul %351, %353, %cst_163 {dimension_numbers = #tpu.dot_dimension_numbers<[1], [0], [0], [1], [0, 0, 1, 1], [], []>} : vector<9x256xf32>, vector<256x128xf32>, vector<9x128xf32> -> vector<9x128xf32>
    %355 = arith.addf %305, %354 : vector<9x128xf32>
    %c1_164 = arith.constant 1 : index
    %c0_165 = arith.constant 0 : index
    %c0_166 = arith.constant 0 : index
    %356 = vector.load %arg18[%c1_164, %c0_165, %c0_166] : memref<2x1x128xf32, #tpu.memory_space<vmem>>, vector<1x1x128xf32>
    %357 = vector.shape_cast %356 : vector<1x1x128xf32> to vector<1x128xf32>
    %358 = vector.broadcast %357 : vector<1x128xf32> to vector<9x128xf32>
    %359 = arith.addf %355, %358 : vector<9x128xf32>
    %c0_167 = arith.constant 0 : index
    %c0_168 = arith.constant 0 : index
    %360 = vector.load %arg19[%c0_167, %c0_168] : memref<1x128xf32, #tpu.memory_space<vmem>>, vector<1x128xf32>
    %c0_169 = arith.constant 0 : index
    %c0_170 = arith.constant 0 : index
    %361 = vector.load %arg20[%c0_169, %c0_170] : memref<1x128xf32, #tpu.memory_space<vmem>>, vector<1x128xf32>
    %cst_171 = arith.constant dense<0.000000e+00> : vector<9xf32>
    %362 = vector.multi_reduction <add>, %359, %cst_171 [1] : vector<9x128xf32> to vector<9xf32>
    %363 = vector.shape_cast %362 : vector<9xf32> to vector<9x1xf32>
    %cst_172 = arith.constant 1.280000e+02 : f32
    %364 = vector.broadcast %cst_172 : f32 to vector<9x1xf32>
    %365 = arith.divf %363, %364 : vector<9x1xf32>
    %366 = vector.broadcast %365 : vector<9x1xf32> to vector<9x128xf32>
    %367 = arith.subf %359, %366 : vector<9x128xf32>
    %368 = arith.mulf %367, %367 : vector<9x128xf32>
    %cst_173 = arith.constant dense<0.000000e+00> : vector<9xf32>
    %369 = vector.multi_reduction <add>, %368, %cst_173 [1] : vector<9x128xf32> to vector<9xf32>
    %370 = vector.shape_cast %369 : vector<9xf32> to vector<9x1xf32>
    %cst_174 = arith.constant 1.280000e+02 : f32
    %371 = vector.broadcast %cst_174 : f32 to vector<9x1xf32>
    %372 = arith.divf %370, %371 : vector<9x1xf32>
    %373 = vector.broadcast %365 : vector<9x1xf32> to vector<9x128xf32>
    %374 = arith.subf %359, %373 : vector<9x128xf32>
    %cst_175 = arith.constant 9.99999974E-6 : f32
    %375 = vector.broadcast %cst_175 : f32 to vector<9x1xf32>
    %376 = arith.addf %372, %375 : vector<9x1xf32>
    %377 = math.rsqrt %376 : vector<9x1xf32>
    %378 = vector.broadcast %377 : vector<9x1xf32> to vector<9x128xf32>
    %379 = arith.mulf %374, %378 : vector<9x128xf32>
    %380 = vector.broadcast %360 : vector<1x128xf32> to vector<9x128xf32>
    %381 = arith.mulf %379, %380 : vector<9x128xf32>
    %382 = vector.broadcast %361 : vector<1x128xf32> to vector<9x128xf32>
    %383 = arith.addf %381, %382 : vector<9x128xf32>
    %c0_176 = arith.constant 0 : index
    %c0_177 = arith.constant 0 : index
    %384 = vector.load %arg21[%c0_176, %c0_177] : memref<128x128xf32, #tpu.memory_space<vmem>>, vector<128x128xf32>
    %cst_178 = arith.constant dense<0.000000e+00> : vector<9x128xf32>
    %385 = tpu.matmul %383, %384, %cst_178 {dimension_numbers = #tpu.dot_dimension_numbers<[1], [1], [0], [0], [0, 0, 1, 0], [], []>} : vector<9x128xf32>, vector<128x128xf32>, vector<9x128xf32> -> vector<9x128xf32>
    %c0_179 = arith.constant 0 : index
    %c0_180 = arith.constant 0 : index
    %c0_181 = arith.constant 0 : index
    %386 = vector.load %arg22[%c0_179, %c0_180, %c0_181] : memref<1x9x128xf32, #tpu.memory_space<vmem>>, vector<1x9x128xf32>
    %387 = vector.shape_cast %386 : vector<1x9x128xf32> to vector<9x128xf32>
    %388 = vector.shape_cast %385 : vector<9x128xf32> to vector<1x9x128xf32>
    tpu.vector_store %arg22[%c0_179, %c0_180, %c0_181], %388 {strides = array<i32>} : memref<1x9x128xf32, #tpu.memory_space<vmem>>, vector<1x9x128xf32>,
    %c0_182 = arith.constant 0 : index
    %c0_183 = arith.constant 0 : index
    %c0_184 = arith.constant 0 : index
    %389 = vector.load %arg4[%c0_182, %c0_183, %c0_184] : memref<1x9x128xf32, #tpu.memory_space<vmem>>, vector<1x9x128xf32>
    %390 = vector.shape_cast %389 : vector<1x9x128xf32> to vector<9x128xf32>
    %cst_185 = arith.constant dense<0xFF800000> : vector<9xf32>
    %391 = vector.multi_reduction <maximumf>, %385, %cst_185 [1] : vector<9x128xf32> to vector<9xf32>
    %392 = vector.shape_cast %391 : vector<9xf32> to vector<9x1xf32>
    %393 = vector.broadcast %392 : vector<9x1xf32> to vector<9x128xf32>
    %394 = arith.subf %385, %393 : vector<9x128xf32>
    %395 = math.exp %394 : vector<9x128xf32>
    %cst_186 = arith.constant dense<0.000000e+00> : vector<9xf32>
    %396 = vector.multi_reduction <add>, %395, %cst_186 [1] : vector<9x128xf32> to vector<9xf32>
    %397 = vector.shape_cast %396 : vector<9xf32> to vector<9x1xf32>
    %398 = math.log %397 : vector<9x1xf32>
    %399 = arith.addf %398, %392 : vector<9x1xf32>
    %400 = arith.mulf %390, %385 : vector<9x128xf32>
    %cst_187 = arith.constant dense<0.000000e+00> : vector<9xf32>
    %401 = vector.multi_reduction <add>, %400, %cst_187 [1] : vector<9x128xf32> to vector<9xf32>
    %402 = vector.shape_cast %401 : vector<9xf32> to vector<9x1xf32>
    %cst_188 = arith.constant dense<0.000000e+00> : vector<9xf32>
    %403 = vector.multi_reduction <add>, %390, %cst_188 [1] : vector<9x128xf32> to vector<9xf32>
    %404 = vector.shape_cast %403 : vector<9xf32> to vector<9x1xf32>
    %405 = arith.subf %399, %402 : vector<9x1xf32>
    %406 = arith.mulf %405, %404 : vector<9x1xf32>
    %407 = vector.shape_cast %406 : vector<9x1xf32> to vector<1x9x1xf32>
    %cst_189 = arith.constant dense<0.000000e+00> : vector<1xf32>
    %408 = vector.multi_reduction <add>, %407, %cst_189 [1, 2] : vector<1x9x1xf32> to vector<1xf32>
    %409 = vector.shape_cast %408 : vector<1xf32> to vector<1x1x1xf32>
    %410 = vector.extract %409[0, 0, 0] : f32 from vector<1x1x1xf32>
    %411 = vector.broadcast %410 : f32 to vector<1x1xf32>
    %412 = vector.shape_cast %404 : vector<9x1xf32> to vector<1x9x1xf32>
    %cst_190 = arith.constant dense<0.000000e+00> : vector<1xf32>
    %413 = vector.multi_reduction <add>, %412, %cst_190 [1, 2] : vector<1x9x1xf32> to vector<1xf32>
    %414 = vector.shape_cast %413 : vector<1xf32> to vector<1x1x1xf32>
    %415 = vector.extract %414[0, 0, 0] : f32 from vector<1x1x1xf32>
    %416 = vector.broadcast %415 : f32 to vector<1x1xf32>
    %417 = tpu.concatenate %411, %416 in 1 : vector<1x1xf32>, vector<1x1xf32> -> vector<1x2xf32>
    %c0_191 = arith.constant 0 : index
    %c0_192 = arith.constant 0 : index
    %c0_193 = arith.constant 0 : index
    %418 = vector.load %arg23[%c0_191, %c0_192, %c0_193] : memref<1x1x2xf32, #tpu.memory_space<vmem>>, vector<1x1x2xf32>
    %419 = vector.shape_cast %418 : vector<1x1x2xf32> to vector<1x2xf32>
    %420 = vector.shape_cast %417 : vector<1x2xf32> to vector<1x1x2xf32>
    tpu.vector_store %arg23[%c0_191, %c0_192, %c0_193], %420 {strides = array<i32>} : memref<1x1x2xf32, #tpu.memory_space<vmem>>, vector<1x1x2xf32>,
    return
  }
  func.func @transform_0(%arg0: i32) -> (i32, i32, i32) {
    %c0_i32 = arith.constant 0 : i32
    %c0_i32_0 = arith.constant 0 : i32
    %c0_i32_1 = arith.constant 0 : i32
    return %arg0, %c0_i32, %c0_i32_0 : i32, i32, i32
  }
  func.func @transform_1(%arg0: i32) -> (i32, i32, i32) {
    %c0_i32 = arith.constant 0 : i32
    %c0_i32_0 = arith.constant 0 : i32
    %c0_i32_1 = arith.constant 0 : i32
    return %arg0, %c0_i32, %c0_i32_0 : i32, i32, i32
  }
  func.func @transform_2(%arg0: i32) -> (i32, i32) {
    %c0_i32 = arith.constant 0 : i32
    %c0_i32_0 = arith.constant 0 : i32
    %c0_i32_1 = arith.constant 0 : i32
    return %c0_i32, %c0_i32_0 : i32, i32
  }
  func.func @transform_3(%arg0: i32) -> (i32, i32, i32) {
    %c0_i32 = arith.constant 0 : i32
    %c0_i32_0 = arith.constant 0 : i32
    %c0_i32_1 = arith.constant 0 : i32
    return %arg0, %c0_i32, %c0_i32_0 : i32, i32, i32
  }
  func.func @transform_4(%arg0: i32) -> (i32, i32) {
    %c0_i32 = arith.constant 0 : i32
    %c0_i32_0 = arith.constant 0 : i32
    %c0_i32_1 = arith.constant 0 : i32
    return %c0_i32, %c0_i32_0 : i32, i32
  }
  func.func @transform_5(%arg0: i32) -> (i32, i32) {
    %c0_i32 = arith.constant 0 : i32
    %c0_i32_0 = arith.constant 0 : i32
    %c0_i32_1 = arith.constant 0 : i32
    return %c0_i32, %c0_i32_0 : i32, i32
  }
  func.func @transform_6(%arg0: i32) -> (i32, i32, i32) {
    %c0_i32 = arith.constant 0 : i32
    %c0_i32_0 = arith.constant 0 : i32
    %c0_i32_1 = arith.constant 0 : i32
    %c0_i32_2 = arith.constant 0 : i32
    return %c0_i32, %c0_i32_0, %c0_i32_1 : i32, i32, i32
  }
  func.func @transform_7(%arg0: i32) -> (i32, i32, i32) {
    %c0_i32 = arith.constant 0 : i32
    %c0_i32_0 = arith.constant 0 : i32
    %c0_i32_1 = arith.constant 0 : i32
    %c0_i32_2 = arith.constant 0 : i32
    return %c0_i32, %c0_i32_0, %c0_i32_1 : i32, i32, i32
  }
  func.func @transform_8(%arg0: i32) -> (i32, i32, i32) {
    %c0_i32 = arith.constant 0 : i32
    %c0_i32_0 = arith.constant 0 : i32
    %c0_i32_1 = arith.constant 0 : i32
    %c0_i32_2 = arith.constant 0 : i32
    return %c0_i32, %c0_i32_0, %c0_i32_1 : i32, i32, i32
  }
  func.func @transform_9(%arg0: i32) -> (i32, i32, i32) {
    %c0_i32 = arith.constant 0 : i32
    %c0_i32_0 = arith.constant 0 : i32
    %c0_i32_1 = arith.constant 0 : i32
    %c0_i32_2 = arith.constant 0 : i32
    return %c0_i32, %c0_i32_0, %c0_i32_1 : i32, i32, i32
  }
  func.func @transform_10(%arg0: i32) -> (i32, i32, i32) {
    %c0_i32 = arith.constant 0 : i32
    %c0_i32_0 = arith.constant 0 : i32
    %c0_i32_1 = arith.constant 0 : i32
    %c0_i32_2 = arith.constant 0 : i32
    return %c0_i32, %c0_i32_0, %c0_i32_1 : i32, i32, i32
  }
  func.func @transform_11(%arg0: i32) -> (i32, i32, i32) {
    %c0_i32 = arith.constant 0 : i32
    %c0_i32_0 = arith.constant 0 : i32
    %c0_i32_1 = arith.constant 0 : i32
    %c0_i32_2 = arith.constant 0 : i32
    return %c0_i32, %c0_i32_0, %c0_i32_1 : i32, i32, i32
  }
  func.func @transform_12(%arg0: i32) -> (i32, i32, i32) {
    %c0_i32 = arith.constant 0 : i32
    %c0_i32_0 = arith.constant 0 : i32
    %c0_i32_1 = arith.constant 0 : i32
    %c0_i32_2 = arith.constant 0 : i32
    return %c0_i32, %c0_i32_0, %c0_i32_1 : i32, i32, i32
  }
  func.func @transform_13(%arg0: i32) -> (i32, i32, i32) {
    %c0_i32 = arith.constant 0 : i32
    %c0_i32_0 = arith.constant 0 : i32
    %c0_i32_1 = arith.constant 0 : i32
    %c0_i32_2 = arith.constant 0 : i32
    return %c0_i32, %c0_i32_0, %c0_i32_1 : i32, i32, i32
  }
  func.func @transform_14(%arg0: i32) -> (i32, i32, i32) {
    %c0_i32 = arith.constant 0 : i32
    %c0_i32_0 = arith.constant 0 : i32
    %c0_i32_1 = arith.constant 0 : i32
    %c0_i32_2 = arith.constant 0 : i32
    return %c0_i32, %c0_i32_0, %c0_i32_1 : i32, i32, i32
  }
  func.func @transform_15(%arg0: i32) -> (i32, i32, i32) {
    %c0_i32 = arith.constant 0 : i32
    %c0_i32_0 = arith.constant 0 : i32
    %c0_i32_1 = arith.constant 0 : i32
    %c0_i32_2 = arith.constant 0 : i32
    return %c0_i32, %c0_i32_0, %c0_i32_1 : i32, i32, i32
  }
  func.func @transform_16(%arg0: i32) -> (i32, i32, i32) {
    %c0_i32 = arith.constant 0 : i32
    %c0_i32_0 = arith.constant 0 : i32
    %c0_i32_1 = arith.constant 0 : i32
    %c0_i32_2 = arith.constant 0 : i32
    return %c0_i32, %c0_i32_0, %c0_i32_1 : i32, i32, i32
  }
  func.func @transform_17(%arg0: i32) -> (i32, i32, i32) {
    %c0_i32 = arith.constant 0 : i32
    %c0_i32_0 = arith.constant 0 : i32
    %c0_i32_1 = arith.constant 0 : i32
    %c0_i32_2 = arith.constant 0 : i32
    return %c0_i32, %c0_i32_0, %c0_i32_1 : i32, i32, i32
  }
  func.func @transform_18(%arg0: i32) -> (i32, i32) {
    %c0_i32 = arith.constant 0 : i32
    %c0_i32_0 = arith.constant 0 : i32
    %c0_i32_1 = arith.constant 0 : i32
    return %c0_i32, %c0_i32_0 : i32, i32
  }
  func.func @transform_19(%arg0: i32) -> (i32, i32) {
    %c0_i32 = arith.constant 0 : i32
    %c0_i32_0 = arith.constant 0 : i32
    %c0_i32_1 = arith.constant 0 : i32
    return %c0_i32, %c0_i32_0 : i32, i32
  }
  func.func @transform_20(%arg0: i32) -> (i32, i32) {
    %c0_i32 = arith.constant 0 : i32
    %c0_i32_0 = arith.constant 0 : i32
    %c0_i32_1 = arith.constant 0 : i32
    return %c0_i32, %c0_i32_0 : i32, i32
  }
  func.func @transform_21(%arg0: i32) -> (i32, i32, i32) {
    %c0_i32 = arith.constant 0 : i32
    %c0_i32_0 = arith.constant 0 : i32
    %c0_i32_1 = arith.constant 0 : i32
    return %arg0, %c0_i32, %c0_i32_0 : i32, i32, i32
  }
  func.func @transform_22(%arg0: i32) -> (i32, i32, i32) {
    %c0_i32 = arith.constant 0 : i32
    %c0_i32_0 = arith.constant 0 : i32
    %c0_i32_1 = arith.constant 0 : i32
    return %arg0, %c0_i32, %c0_i32_0 : i32, i32, i32
  }
}

</mosaic_0001>

<bundles_post_ra>
// kernel: forward.1
= control target key start
LH: loop header
LB: loop body
LE: loop exit
PB: predicated region body
PF: predicated region fallthrough
CT: control target
= control target key end

     0   :  { %s7164_s0 = inlined_call_operand.vmem [shape: f32[2,1,128], index: 0, kind: input, shape index: {}]   ;;  %s7165_s1 = inlined_call_operand.vmem [shape: f32[2,8,128], index: 1, kind: input, shape index: {}]   ;;  %s7166_s2 = inlined_call_operand.vmem [shape: f32[9,128], index: 2, kind: input, shape index: {}]   ;;  %s7167_s3 = inlined_call_operand.vmem [shape: f32[2,9,128], index: 3, kind: input, shape index: {}]   ;;  %s7168_s4 = inlined_call_operand.vmem [shape: f32[128,128], index: 4, kind: input, shape index: {}]   ;;  %s7169_s5 = inlined_call_operand.vmem [shape: f32[1,128], index: 5, kind: input, shape index: {}]   ;;  %s7170_s6 = inlined_call_operand.vmem [shape: f32[2,1,128], index: 6, kind: input, shape index: {}]   ;;  %s7171_s7 = inlined_call_operand.vmem [shape: f32[2,1,128], index: 7, kind: input, shape index: {}]   ;;  %s7172_s8 = inlined_call_operand.vmem [shape: f32[2,1,128], index: 8, kind: input, shape index: {}]   ;;  %s7173_s9 = inlined_call_operand.vmem [shape: f32[2,1,128], index: 9, kind: input, shape index: {}]   ;;  %s7174_s10 = inlined_call_operand.vmem [shape: f32[2,128,384], index: 10, kind: input, shape index: {}]   ;;  %s7175_s11 = inlined_call_operand.vmem [shape: f32[2,1,384], index: 11, kind: input, shape index: {}]   ;;  %s7176_s12 = inlined_call_operand.vmem [shape: f32[2,128,128], index: 12, kind: input, shape index: {}]   ;;  %s7177_s13 = inlined_call_operand.vmem [shape: f32[2,1,128], index: 13, kind: input, shape index: {}]   ;;  %s7178_s14 = inlined_call_operand.vmem [shape: f32[2,128,256], index: 14, kind: input, shape index: {}]   ;;  %s7179_s15 = inlined_call_operand.vmem [shape: f32[2,1,256], index: 15, kind: input, shape index: {}]   ;;  %s7180_s16 = inlined_call_operand.vmem [shape: f32[2,256,128], index: 16, kind: input, shape index: {}]   ;;  %s7181_s17 = inlined_call_operand.vmem [shape: f32[2,1,128], index: 17, kind: input, shape index: {}]   ;;  %s7182_s18 = inlined_call_operand.vmem [shape: f32[1,128], index: 18, kind: input, shape index: {}]   ;;  %s7183_s19 = inlined_call_operand.vmem [shape: f32[1,128], index: 19, kind: input, shape index: {}]   ;;  %s7184_s20 = inlined_call_operand.vmem [shape: f32[128,128], index: 20, kind: input, shape index: {}]   ;;  %s7185_s21 = inlined_call_operand.vmem [shape: f32[2,9,128], index: 21, kind: output, shape index: {0}]   ;;  %s7186_s22 = inlined_call_operand.vmem [shape: f32[2,1,2], index: 22, kind: output, shape index: {1}]  }
   0x1   :  { %7199 = sst [smem:[#allocation3_spill]] %s7164_s0 }
   0x2   :  { %7200 = sst [smem:[#allocation4_spill]] %s7165_s1 }
   0x3   :  { %7201 = sst [smem:[#allocation5_spill]] %s7166_s2 }
   0x4   :  { %7202 = sst [smem:[#allocation6_spill]] %s7167_s3  ;;  %s5806_s3 = smov 0  }
   0x5   :  { %7203 = sst [smem:[#allocation7_spill]] %s7168_s4 }
   0x6   :  { %7204 = sst [smem:[#allocation8_spill]] %s7169_s5 }
   0x7   :  { %7205 = sst [smem:[#allocation9_spill]] %s7170_s6 }
   0x8 LB: > { %7206 = sst [smem:[#allocation2_spill]] %s5682_s3  ;;  %s4198_s28 = sadd.s32 4294967295, %s5682_s3   ;;  %s5682_s3 = sphi %s5806_s3, %s33_s3  }
   0x9   : > { %p4202_p0 = scmp.ge.s32.totalorder %s5682_s3, 1  ;;  %p632_p1 = scmp.lt.s32.totalorder %s5682_s3, 3 }
   0xb   : > { %p633_p2 = pnand %p4202_p0, %p632_p1 }
   0xc   : > { %s7207_s4 = sld [smem:[#allocation7_spill]] (!%p633_p2)  ;;  %v5684_v3 = vmov (!%p633_p2), 0.0|0.0   ;;  %vm5685_vm0 = vmmov (!%p633_p2), 0   ;;  %v5686_v6 = vmov (!%p633_p2), 0.0   ;;  %p704_p3 = scmp.lt.s32.totalorder (!%p633_p2), %s4198_s28, 1  ;;  %vm816_vm1 = vcmask (!%p633_p2), 1040384  }
   0xd   : > { %636 = sbr.rel (%p633_p2) target bundleno = 7112 (0x1bc8), region = 104  ;;  %4987 = vmatprep.subr.bf16.mxu0 (!%p633_p2), %v5684_v3  ;;  %4697 = vmatprep.mubr.msk.f32.mxu0 (!%p633_p2), %vm5685_vm0, %v5686_v6  ;;  %s7208_s2 = sld [smem:[#allocation3_spill]] (!%p633_p2)  ;;  %v875_v41 = vld [vmem:[%s7174_s10 + $0x8] sm:$0xff] (!%p633_p2)  ;;  %v878_v42 = vld [vmem:[%s7174_s10 + $0x20] sm:$0xff] (!%p633_p2)  ;;  %v877_v45 = vld [vmem:[%s7174_s10 + $0x18] sm:$0xff] (!%p633_p2)  ;;  %vm1091_vm2 = vcmask (!%p633_p2), 261120  }
   0xe   : > { %1003 = vmatprep.mubr.f32.mxu1 (!%p633_p2), %v5686_v6  ;;  %s7209_s23 = sld [smem:[#allocation4_spill]] (!%p633_p2)  ;;  %s7210_s6 = sld [smem:[#allocation8_spill]] (!%p633_p2)  ;;  %v874_v43 = vld [vmem:[%s7174_s10] sm:$0xff] (!%p633_p2)  ;;  %v5011_v44 = vpack.c.bf16 (!%p633_p2), %v878_v42, %v875_v41  ;;  %v881_v46 = vld [vmem:[%s7174_s10 + $0x38] sm:$0xff] (!%p633_p2)  ;;  %v884_v47 = vld [vmem:[%s7174_s10 + $0x50] sm:$0xff] (!%p633_p2)  ;;  %vm5688_vm4 = vmmov (!%p633_p2), 1  }
   0xf   : > { %v5013_v48 = vpack.c.bf16 (!%p633_p2), %v877_v45, %v874_v43  ;;  %v5015_v49 = vpack.c.bf16 (!%p633_p2), %v884_v47, %v881_v46  ;;  %v880_v50 = vld [vmem:[%s7174_s10 + $0x30] sm:$0xff] (!%p633_p2)  ;;  %v883_v51 = vld [vmem:[%s7174_s10 + $0x48] sm:$0xff] (!%p633_p2)  ;;  %v890_v55 = vld [vmem:[%s7174_s10 + $0x80] sm:$0xff] (!%p633_p2)  ;;  %s7212_s30 = sld [smem:[#allocation9_spill]] (!%p633_p2)  ;;  %s7190_s5 = smov (!%p633_p2), 96   ;;  %vm1187_vm7 = vcmask (!%p633_p2), 65536  }
  0x10   : > { %v876_v52 = vld [vmem:[%s7174_s10 + $0x10] sm:$0xff] (!%p633_p2)  ;;  %5012 = vmatprep.subr.bf16.mxu1 (!%p633_p2), %v5011_v44  ;;  %v879_v53 = vld [vmem:[%s7174_s10 + $0x28] sm:$0xff] (!%p633_p2)  ;;  %v5017_v56 = vpack.c.bf16 (!%p633_p2), %v883_v51, %v880_v50  ;;  %v882_v58 = vld [vmem:[%s7174_s10 + $0x40] sm:$0xff] (!%p633_p2)  ;;  %vm1183_vm9 = vcmask (!%p633_p2), 72704   ;;  %s7194_s24 = smov (!%p633_p2), 32   ;;  %vm1933_vm10 = vcmask (!%p633_p2), 523264  }
  0x11   : > { %v887_v54 = vld [vmem:[%s7174_s10 + $0x68] sm:$0xff] (!%p633_p2)  ;;  %5014 = vmatpush1.bf16.msra.mxu1 (!%p633_p2), %v5013_v48  ;;  %v5043_v57 = vpack.c.bf16 (!%p633_p2), %v879_v53, %v876_v52  ;;  %v886_v60 = vld [vmem:[%s7174_s10 + $0x60] sm:$0xff] (!%p633_p2)  ;;  %v889_v61 = vld [vmem:[%s7174_s10 + $0x78] sm:$0xff] (!%p633_p2)  ;;  %vm1936_vm11 = vcmask (!%p633_p2), 785408   ;;  %vm4068_vm12 = vcmask (!%p633_p2), 0   ;;  %vm4066_vm13 = vcmask (!%p633_p2), 7168  }
  0x12   : > { %v725_v0 = vld [vmem:[%s7207_s4] sm:$0xff] (!%p633_p2)  ;;  %v726_v1 = vld [vmem:[%s7207_s4 + $0x8] sm:$0xff] (!%p633_p2)  ;;  %v727_v2 = vld [vmem:[%s7207_s4 + $0x10] sm:$0xff] (!%p633_p2)  ;;  %5016 = vmatprep.subr.bf16.mxu1 (!%p633_p2), %v5015_v49  ;;  %v5019_v59 = vpack.c.bf16 (!%p633_p2), %v890_v55, %v887_v54  ;;  %vm4095_vm14 = vcmask (!%p633_p2), 8192  }
  0x13   : > { %v4988_v4 = vpack.c.bf16 (!%p633_p2), %v726_v1, %v725_v0  ;;  %v728_v5 = vld [vmem:[%s7207_s4 + $0x18] sm:$0xff] (!%p633_p2)  ;;  %v729_v8 = vld [vmem:[%s7207_s4 + $0x20] sm:$0xff] (!%p633_p2)  ;;  %v730_v9 = vld [vmem:[%s7207_s4 + $0x28] sm:$0xff] (!%p633_p2)  ;;  %v5021_v0 = vpack.c.bf16 (!%p633_p2), %v889_v61, %v886_v60 }
  0x14   : > { %v4991_v7 = vpack.c.bf16 %v728_v5, %v727_v2  ;;  %v4994_v10 = vpack.c.bf16 %v730_v9, %v729_v8  ;;  %v731_v11 = vld [vmem:[%s7207_s4 + $0x30] sm:$0xff]  ;;  %v732_v12 = vld [vmem:[%s7207_s4 + $0x38] sm:$0xff]  ;;  %v733_v14 = vld [vmem:[%s7207_s4 + $0x40] sm:$0xff]  ;;  %s7227_s28 = smov (!%p704_p3, %s4198_s28), 1 }
  0x15   : > { %4989 = vmatpush3.bf16.msra.mxu0 %v4988_v4  ;;  %v4997_v13 = vpack.c.bf16 %v732_v12, %v731_v11  ;;  %v734_v15 = vld [vmem:[%s7207_s4 + $0x48] sm:$0xff]  ;;  %v735_v17 = vld [vmem:[%s7207_s4 + $0x50] sm:$0xff]  ;;  %v736_v18 = vld [vmem:[%s7207_s4 + $0x58] sm:$0xff]  ;;  %s706_s27 = scalar_lea.vmem %s7208_s2, %s7227_s28  ;;  %s4203_s29 = sshll.u32 %s7227_s28, 3  ;;  %5018 = vmatpush1.bf16.msra.mxu1 %v5017_v56 }
  0x16   : > { %4990 = vmatprep.subr.bf16.mxu0 %v5684_v3  ;;  %v5000_v16 = vpack.c.bf16 %v734_v15, %v733_v14  ;;  %v5003_v19 = vpack.c.bf16 %v736_v18, %v735_v17  ;;  %v737_v20 = vld [vmem:[%s7207_s4 + $0x60] sm:$0xff]  ;;  %v738_v21 = vld [vmem:[%s7207_s4 + $0x68] sm:$0xff]  ;;  %v739_v23 = vld [vmem:[%s7207_s4 + $0x70] sm:$0xff]  ;;  %s710_s1 = scalar_lea.vmem %s7209_s23, %s4203_s29  ;;  %s7211_s2 = sld [smem:[#allocation5_spill]]  ;;  %5020 = vmatprep.subr.bf16.mxu1 %v5019_v59 }
  0x17   : > { %v5006_v22 = vpack.c.bf16 %v738_v21, %v737_v20  ;;  %v740_v24 = vld [vmem:[%s7207_s4 + $0x78] sm:$0xff]  ;;  %v724_v26 = vld [vmem:[%s706_s27] sm:$0x1]  ;;  %v896_v12 = vld [vmem:[%s7174_s10 + $0xb0] sm:$0xff]  ;;  %s7221_s27 = smov 64   ;;  %s7222_s29 = smov 96  }
  0x18   : > { %v5009_v25 = vpack.c.bf16 %v740_v24, %v739_v23  ;;  %v812_v27 = vld [vmem:[%s710_s1] sm:$0xff]  ;;  %v885_v62 = vld [vmem:[%s7174_s10 + $0x58] sm:$0xff]  ;;  %v892_v14 = vld [vmem:[%s7174_s10 + $0x90] sm:$0xff]  ;;  %s7223_s4 = smov 32   ;;  %s7224_s23 = sld [smem:[#allocation6_spill]] }
  0x19   : > { %4992 = vmatpush3.bf16.msra.mxu0 %v4991_v7  ;;  %v741_v28 = vld [vmem:[%s7210_s6] sm:$0x1]  ;;  %v814_v29 = vrot.slane %v812_v27, 7  ;;  %v5047_v63 = vpack.c.bf16 %v885_v62, %v882_v58  ;;  %5022 = vmatpush1.bf16.msra.mxu1 %v5021_v0  ;;  %v893_v11 = vld [vmem:[%s7174_s10 + $0x98] sm:$0xff]  ;;  %v895_v15 = vld [vmem:[%s7174_s10 + $0xa8] sm:$0xff]  ;;  %s7192_s6 = smov 64  }
  0x1a   : > { %4993 = vmatprep.subr.bf16.mxu0 %v5684_v3  ;;  %v5025_v17 = vpack.c.bf16 %v895_v15, %v892_v14  ;;  %v891_v18 = vld [vmem:[%s7174_s10 + $0x88] sm:$0xff]  ;;  %v902_v21 = vld [vmem:[%s7174_s10 + $0xe0] sm:$0xff]  ;;  %v901_v24 = vld [vmem:[%s7174_s10 + $0xd8] sm:$0xff] }
  0x1b   : > { %v819_v33 = vmul.f32 11.313708, %v814_v29  ;;  %v899_v20 = vld [vmem:[%s7174_s10 + $0xc8] sm:$0xff]  ;;  %v898_v23 = vld [vmem:[%s7174_s10 + $0xc0] sm:$0xff]  ;;  %v897_v27 = vld [vmem:[%s7174_s10 + $0xb8] sm:$0xff] }
  0x1c   : > { %v821_v34 = vld [vmem:[%s7211_s2 + $0x8] sm:$0x1]  ;;  %v820_v36 = vld [vmem:[%s7211_s2] sm:$0xff]  ;;  %v913_v44 = vld [vmem:[%s7174_s10 + $0x138] sm:$0xff]  ;;  %s723_s2 = scalar_lea.vmem %s7186_s22, %s7227_s28 }
  0x1d   : > { %4995 = vmatpush3.bf16.msra.mxu0 %v4994_v10  ;;  %v5888_v38 = vadd.f32 %v821_v34, %v819_v33  ;;  %v907_v33 = vld [vmem:[%s7174_s10 + $0x108] sm:$0xff]  ;;  %v900_v34 = vld [vmem:[%s7174_s10 + $0xd0] sm:$0xff]  ;;  %v914_v41 = vld [vmem:[%s7174_s10 + $0x140] sm:$0xff] }
  0x1e   : > { %4996 = vmatprep.subr.bf16.mxu0 %v5684_v3  ;;  %v910_v42 = vld [vmem:[%s7174_s10 + $0x120] sm:$0xff]  ;;  %v909_v46 = vld [vmem:[%s7174_s10 + $0x118] sm:$0xff]  ;;  %v920_v50 = vld [vmem:[%s7174_s10 + $0x170] sm:$0xff] }
  0x1f   : > { %v835_v40 = vsel %vm816_vm1, %v5888_v38, 0.0  ;;  %v906_v45 = vld [vmem:[%s7174_s10 + $0x100] sm:$0xff]  ;;  %v5037_v47 = vpack.c.bf16 %v913_v44, %v910_v42  ;;  %v917_v49 = vld [vmem:[%s7174_s10 + $0x158] sm:$0xff]  ;;  %v916_v51 = vld [vmem:[%s7174_s10 + $0x150] sm:$0xff] }
  0x20   : > { %v5063_v48 = vpack.c.bf16 %v909_v46, %v906_v45  ;;  %v5039_v52 = vpack.c.bf16 %v920_v50, %v917_v49  ;;  %v919_v53 = vld [vmem:[%s7174_s10 + $0x168] sm:$0xff]  ;;  %v912_v54 = vld [vmem:[%s7174_s10 + $0x130] sm:$0xff]  ;;  %v918_v58 = vld [vmem:[%s7174_s10 + $0x160] sm:$0xff] }
  0x21   : > { %4998 = vmatpush3.bf16.msra.mxu0 %v4997_v13  ;;  %v5023_v13 = vpack.c.bf16 %v896_v12, %v893_v11  ;;  %v915_v55 = vld [vmem:[%s7174_s10 + $0x148] sm:$0xff]  ;;  %v921_v59 = vld [vmem:[%s7174_s10 + $0x178] sm:$0xff]  ;;  %vm6084_vm3 = vmpackc.low %vm1091_vm2, %vm1091_vm2 }
  0x22   : > { %4999 = vmatprep.subr.bf16.mxu0 %v5684_v3  ;;  %v5067_v56 = vpack.c.bf16 %v915_v55, %v912_v54  ;;  %v5071_v60 = vpack.c.bf16 %v921_v59, %v918_v58  ;;  %vm6089_vm5 = vmpackc.low %vm816_vm1, %vm5688_vm4 }
  0x23   : > { %5024 = vmatprep.subr.bf16.mxu1 %v5023_v13 }
  0x24   : > { %5026 = vmatpush1.bf16.msra.mxu1 %v5025_v17 }
  0x25   : > { %5001 = vmatpush3.bf16.msra.mxu0 %v5000_v16  ;;  %v888_v16 = vld [vmem:[%s7174_s10 + $0x70] sm:$0xff] }
  0x26   : > { %5002 = vmatprep.subr.bf16.mxu0 %v5684_v3 }
  0x29   : > { %5004 = vmatpush3.bf16.msra.mxu0 %v5003_v19  ;;  %v5051_v19 = vpack.c.bf16 %v891_v18, %v888_v16  ;;  %v824_v16 = vlaneseq  ;;  %v922_v18 = vld [vmem:[%s7175_s11] sm:$0x7] }
  0x2a   : > { %5005 = vmatprep.subr.bf16.mxu0 %v5684_v3 }
  0x2b   : > { %v6059_v17 = vshrl.u32 %v824_v16, 7  ;;  %v828_v50 = vand.u32 127, %v824_v16 }
  0x2d   : > { %5007 = vmatpush3.bf16.msra.mxu0 %v5006_v22  ;;  %v5027_v22 = vpack.c.bf16 %v902_v21, %v899_v20  ;;  %v6070_v20 = vsub.s32 1, %v6059_v17  ;;  %v826_v49 = vadd.s32 8, %v6059_v17  ;;  %vm6117_vm8 = vcmp.le.s32.totalorder %v828_v50, %v6059_v17 }
  0x2e   : > { %5008 = vmatprep.subr.bf16.mxu0 %v5684_v3 }
  0x2f   : > { %5028 = vmatprep.subr.bf16.mxu1 %v5027_v22  ;;  %vm6112_vm6 = vcmp.le.s32.totalorder %v828_v50, %v826_v49 }
  0x31   : > { %5010 = vmatpush3.bf16.msra.mxu0 %v5009_v25  ;;  %v894_v25 = vld [vmem:[%s7174_s10 + $0xa0] sm:$0xff] }
  0x32   : > { %5044 = vmatprep.subr.bf16.mxu0 %v5043_v57 }
  0x34   : > { %4698 = vmatmul.mubr.f32.vlgmr.msra.gmra.mrb[0].mxu0 %v724_v26  ;;  %v5029_v26 = vpack.c.bf16 %v901_v24, %v898_v23 }
  0x35   : > { %5046 = vmatpush3.bf16.msra.mxu0 %v5043_v57  ;;  %v5041_v57 = vpack.c.bf16 %v919_v53, %v916_v51 }
  0x36   : > { %5048 = vmatprep.subr.bf16.mxu0 %v5047_v63  ;;  %5030 = vmatpush1.bf16.msra.mxu1 %v5029_v26 }
  0x39   : > { %5050 = vmatpush3.bf16.msra.mxu0 %v5047_v63 }
  0x3a   : > { %5052 = vmatprep.subr.bf16.mxu0 %v5051_v19 }
  0x3d   : > { %5054 = vmatpush3.bf16.msra.mxu0 %v5051_v19  ;;  %v934_v19 = vsub.s32 2, %v6059_v17 }
  0x3f   : > { %v935_v24 = vrot.slane %v922_v18, %v934_v19 }
 0x107   : > { %v808_v30 = vpop.f32.mrb[0].mxu0 }
 0x108   : > { %v809_v31 = vadd.f32 %v808_v30, %v741_v28  ;;  %v4699_v32 = vpop.f32.mrb[1].mxu0  ;;  %v5055_v28 = vpack.c.bf16 %v897_v27, %v894_v25  ;;  %v908_v30 = vld [vmem:[%s7174_s10 + $0x110] sm:$0xff]  ;;  %v931_v25 = vrot.slane %v922_v18, %v6070_v20 }
 0x109   : > { %v904_v32 = vld [vmem:[%s7174_s10 + $0xf0] sm:$0xff] }
 0x10a   : > { %v817_v35 = vsel %vm816_vm1, %v809_v31, %v814_v29  ;;  %v905_v29 = vld [vmem:[%s7174_s10 + $0xf8] sm:$0xff]  ;;  %5056 = vmatprep.subr.bf16.mxu0 %v5055_v28 }
 0x10b   : > { %v818_v37 = vmul.f32 11.313708, %v817_v35  ;;  %v5031_v31 = vpack.c.bf16 %v908_v30, %v905_v29  ;;  %5058 = vmatpush3.bf16.msra.mxu0 %v5055_v28  ;;  %v5033_v35 = vpack.c.bf16 %v907_v33, %v904_v32 }
 0x10d   : > { %v5890_v39 = vadd.f32 %v820_v36, %v818_v37  ;;  %v903_v36 = vld [vmem:[%s7174_s10 + $0xe8] sm:$0xff]  ;;  %5032 = vmatprep.subr.bf16.mxu1 %v5031_v31 }
 0x10e   : > { %v5059_v37 = vpack.c.bf16 %v903_v36, %v900_v34  ;;  %5034 = vmatpush1.bf16.msra.mxu1 %v5033_v35 }
 0x10f   : > { %833 = vadd.xlane.f32.xlu0 %v5890_v39 }
 0x110   : > { %5060 = vmatprep.subr.bf16.mxu0 %v5059_v37 }
 0x111   : > { %5062 = vmatpush3.bf16.msra.mxu0 %v5059_v37 }
 0x112   : > { %5064 = vmatprep.subr.bf16.mxu0 %v5063_v48 }
 0x113   : > { %836 = vadd.xlane.f32.xlu0 %v835_v40  ;;  %v911_v40 = vld [vmem:[%s7174_s10 + $0x128] sm:$0xff] }
 0x114   : > { %v5035_v43 = vpack.c.bf16 %v914_v41, %v911_v40 }
 0x115   : > { %5066 = vmatpush3.bf16.msra.mxu0 %v5063_v48 }
 0x116   : > { %5036 = vmatprep.subr.bf16.mxu1 %v5035_v43  ;;  %5068 = vmatprep.subr.bf16.mxu0 %v5067_v56 }
 0x117   : > { %5038 = vmatpush1.bf16.msra.mxu1 %v5037_v47 }
 0x118   : > { %5040 = vmatprep.subr.bf16.mxu1 %v5039_v52 }
 0x119   : > { %5070 = vmatpush3.bf16.msra.mxu0 %v5067_v56 }
 0x11a   : > { %5072 = vmatprep.subr.bf16.mxu0 %v5071_v60 }
 0x11b   : > { %5042 = vmatpush1.bf16.msra.mxu1 %v5041_v57 }
 0x11d   : > { %5074 = vmatpush3.bf16.msra.mxu0 %v5071_v60 }
 0x19c   : > { %v834_v1 = vpop.xlane.xlu0 %833 }
 0x19d   : > { %v839_v2 = vmul.f32 0.0078125, %v834_v1 }
 0x19f   : > { %v5944_v3 = vsub.f32 %v5890_v39, %v839_v2 }
 0x1a0   : > { %v837_v4 = vpop.xlane.xlu0 %836 }
 0x1a1   : > { %v840_v5 = vmul.f32 0.0078125, %v837_v4  ;;  %v843_v7 = vmul.f32 %v5944_v3, %v5944_v3 }
 0x1a3   : > { %v5949_v8 = vsub.f32 %v5888_v38, %v840_v5  ;;  %845 = vadd.xlane.f32.xlu1 %v843_v7  ;;  %v4208_v5 = vld [vmem:[%s7212_s30] ss:$0 sm:$0xff] }
 0x1a5   : > { %v844_v9 = vmul.f32 %v5949_v8, %v5949_v8 }
 0x1a7   : > { %v847_v10 = vsel %vm816_vm1, %v844_v9, 0.0  ;;  %v4209_v9 = vld [vmem:[%s7171_s7] ss:$0 sm:$0xff] }
 0x1a8   : > { %848 = vadd.xlane.f32.xlu1 %v847_v10 }
 0x230   : > { %v846_v61 = vpop.xlane.xlu1 %845 }
 0x231   : > { %v850_v62 = vmul.f32 0.0078125, %v846_v61 }
 0x233   : > { %v852_v63 = vadd.f32 1e-05, %v850_v62 }
 0x235   : > { %5568 = vrsqrt.f32 %v852_v63  ;;  %v849_v0 = vpop.xlane.xlu1 %848 }
 0x236   : > { %v851_v1 = vmul.f32 0.0078125, %v849_v0 }
 0x238   : > { %v853_v2 = vadd.f32 1e-05, %v851_v1 }
 0x23a   : > { %5570 = vrsqrt.f32 %v853_v2 }
 0x23f   : > { %v5569_v4 = vpop.eup %5568 }
 0x240   : > { %v856_v7 = vmul.f32 %v5569_v4, %v5944_v3  ;;  %v6062_v3 = vsub.s32 0, %v6059_v17 }
 0x242   : > { %v864_v10 = vmul.f32 %v4208_v5, %v856_v7 }
 0x244   : > { %v5571_v11 = vpop.eup %5570  ;;  %v872_v12 = vadd.f32 %v4209_v9, %v864_v10 }
 0x245   : > { %v857_v13 = vmul.f32 %v5571_v11, %v5949_v8  ;;  %v927_v8 = vrot.slane %v922_v18, %v6062_v3 }
 0x246   : > { %1004 = vmatmul.mubr.f32.vlgmr.msra.gmra.mrb[0].mxu1 %v872_v12  ;;  %4732 = vmatprep.mubr.f32.mxu0 %v872_v12 }
 0x247   : > { %1009 = vmatprep.mubr.f32.mxu1 %v5686_v6  ;;  %v865_v14 = vmul.f32 %v4208_v5, %v857_v13 }
 0x249   : > { %v873_v15 = vadd.f32 %v4209_v9, %v865_v14 }
 0x24b   : > { %1010 = vmatmul.mubr.f32.gmra.mrb[2].mxu1 %v873_v15  ;;  %4733 = vmatmul.mubr.f32.vlgmr.msra.gmra.mrb[2].mxu0 %v873_v15 }
 0x319   : > { %v1005_v21 = vpop.f32.mrb[0].mxu1 }
 0x31a   : > { %v6072_v22 = vadd.f32 %v1005_v21, %v927_v8  ;;  %v1007_v23 = vpop.f32.mrb[1].mxu1 }
 0x31b   : > { %v1008_v32 = vadd.f32 %v1007_v23, %v931_v25 }
 0x31c   : > { %1291 = vrot.lane.b32.xlu1 %v6072_v22, %s7190_s5  ;;  %4739 = vmatprep.mubr.msk.f32.mxu0 %vm1091_vm2, %v6072_v22 }
 0x31e   : > { %v1011_v26 = vpop.f32.mrb[2].mxu1  ;;  %v4734_v27 = vpop.f32.mrb[2].mxu0 }
 0x31f   : > { %v1012_v28 = vadd.f32 %v1011_v26, %v927_v8  ;;  %v1088_v29 = vadd.f32 %v4734_v27, %v935_v24  ;;  %v1013_v30 = vpop.f32.mrb[3].mxu1  ;;  %v1082_v31 = vpop.f32.mrb[3].mxu0 }
 0x320   : > { %v1014_v33 = vadd.f32 %v1013_v30, %v931_v25  ;;  %v1083_v34 = vadd.f32 %v1082_v31, %v935_v24 }
 0x321   : > { %1293 = vrot.lane.b32.xlu1 %v1012_v28, %s7190_s5 }
 0x322   : > { %v5478_v36 = vpack.i.bf16 %v1014_v33, %v1008_v32  ;;  %v5075_v37 = vpack.c.bf16 %v1014_v33, %v1008_v32  ;;  %v5081_v40 = vpack.c.bf16 %v1088_v29, %v1083_v34  ;;  %v6093_v42 = vpack.i.bf16 %v1088_v29, %v1083_v34 }
 0x324   : > { %5479 = vrot.lane.b32.xlu0 %v5478_v36, %s7190_s5  ;;  %5077 = vmatprep.subr.msk.bf16.mxu0 %vm6084_vm3, %v5075_v37 }
 0x325   : > { %5083 = vmatprep.subr.msk.bf16.mxu1 %vm6089_vm5, %v5081_v40  ;;  %5080 = vmatpush3.bf16.xpose.msk.msra.mxu0 %vm6084_vm3, %v5075_v37 }
 0x326   : > { %5086 = vmatpush3.bf16.msk.msra.mxu1 %vm6089_vm5, %v5081_v40 }
 0x32c   : > { %4740 = vmatmul.mubr.msk.f32.vlgmr.msra.gmra.mrb[4].mxu0 %vm1091_vm2, %v1012_v28 }
 0x38e   : > { %v1292_v43 = vpop.permute.xlu1 %1291 }
 0x38f   : > { %4753 = vmatprep.mubr.msk.f32.mxu0 %vm1091_vm2, %v1292_v43 }
 0x393   : > { %v1294_v48 = vpop.permute.xlu1 %1293 }
 0x396   : > { %v5480_v44 = vpop.permute.xlu0 %5479 }
 0x397   : > { %v5482_v45 = vunpack.i.h.bf16 %v5480_v44  ;;  %v5481_v46 = vunpack.i.l.bf16 %v5480_v44 }
 0x399   : > { %v5087_v47 = vpack.c.bf16 %v5482_v45, %v5481_v46 }
 0x39b   : > { %5089 = vmatprep.subr.msk.bf16.mxu0 %vm6084_vm3, %v5087_v47 }
 0x39c   : > { %5092 = vmatpush3.bf16.xpose.msk.msra.mxu0 %vm6084_vm3, %v5087_v47 }
 0x3a3   : > { %4754 = vmatmul.mubr.msk.f32.vlgmr.msra.gmra.mrb[6].mxu0 %vm1091_vm2, %v1294_v48 }
 0x3ff   : > { %v4741_v51 = vpop.f32.mrb[4].mxu0 }
 0x400   : > { %v1180_v53 = vmul.f32 0.17677669, %v4741_v51  ;;  %v1170_v54 = vpop.f32.mrb[5].mxu0 }
 0x401   : > { %v1179_v56 = vmul.f32 0.17677669, %v1170_v54 }
 0x402   : > { %v1182_v57 = vsel %vm6112_vm6, %v1180_v53, -1e+30 }
 0x403   : > { %v1188_v58 = vsel %vm1187_vm7, %v1182_v57, -inf  ;;  %v1181_v59 = vsel %vm6117_vm8, %v1179_v56, -1e+30 }
 0x404   : > { %1189 = vmax.xlane.f32.xlu0 %v1188_v58  ;;  %v1184_v60 = vsel %vm1183_vm9, %v1181_v59, -inf }
 0x405   : > { %1185 = vmax.xlane.f32.xlu1 %v1184_v60 }
 0x416   : > { %5484 = vrot.lane.b32.xlu1 %v6093_v42, %s7190_s5  ;;  %s4416_s5 = sshll.u32 %s7227_s28, 4 }
 0x417   : > { %s715_s1 = scalar_lea.vmem %s7224_s23, %s4416_s5  ;;  %s720_s0 = scalar_lea.vmem %s7185_s21, %s4416_s5 }
 0x41a   : > { %5494 = vrot.lane.b32.xlu1 %v5478_v36, %s7194_s24 }
 0x41e   : > { %1497 = vrot.lane.b32.xlu1 %v6072_v22, %s7192_s6 }
 0x422   : > { %1499 = vrot.lane.b32.xlu1 %v1012_v28, %s7192_s6 }
 0x426   : > { %1704 = vrot.lane.b32.xlu1 %v1012_v28, %s7194_s24 }
 0x476   : > { %v4755_v61 = vpop.f32.mrb[6].mxu0 }
 0x477   : > { %v1383_v62 = vmul.f32 0.17677669, %v4755_v61  ;;  %v1373_v63 = vpop.f32.mrb[7].mxu0 }
 0x478   : > { %v1382_v0 = vmul.f32 0.17677669, %v1373_v63 }
 0x479   : > { %v1385_v1 = vsel %vm6112_vm6, %v1383_v62, -1e+30 }
 0x47a   : > { %v1389_v2 = vsel %vm1187_vm7, %v1385_v1, -inf  ;;  %v1384_v4 = vsel %vm6117_vm8, %v1382_v0, -1e+30 }
 0x47b   : > { %1390 = vmax.xlane.f32.xlu0 %v1389_v2  ;;  %v1386_v5 = vsel %vm1183_vm9, %v1384_v4, -inf }
 0x47f   : > { %1387 = vmax.xlane.f32.xlu0 %v1386_v5 }
 0x491   : > { %v1190_v7 = vpop.xlane.xlu0 %1189 }
 0x492   : > { %v1192_v9 = vsub.f32 %v1182_v57, %v1190_v7  ;;  %v1186_v10 = vpop.xlane.xlu1 %1185 }
 0x493   : > { %v1191_v11 = vsub.f32 %v1181_v59, %v1186_v10 }
 0x494   : > { %v1195_v12 = vmul.f32 1.442695, %v1192_v9 }
 0x495   : > { %v1193_v13 = vmul.f32 1.442695, %v1191_v11  ;;  %5489 = vrot.lane.b32.xlu0 %v5478_v36, %s7192_s6 }
 0x496   : > { %v5485_v14 = vpop.permute.xlu1 %5484 }
 0x497   : > { %5572 = vpow2.f32 %v1193_v13  ;;  %v5487_v15 = vunpack.i.h.bf16 %v5485_v14  ;;  %v5486_v16 = vunpack.i.l.bf16 %v5485_v14 }
 0x498   : > { %5574 = vpow2.f32 %v1195_v12 }
 0x499   : > { %v5093_v18 = vpack.c.bf16 %v5487_v15, %v5486_v16  ;;  %1702 = vrot.lane.b32.xlu0 %v6072_v22, %s7194_s24 }
 0x49a   : > { %v5495_v32 = vpop.permute.xlu1 %5494 }
 0x49b   : > { %5095 = vmatprep.subr.msk.bf16.mxu1 %vm6089_vm5, %v5093_v18  ;;  %v5497_v33 = vunpack.i.h.bf16 %v5495_v32  ;;  %v5496_v34 = vunpack.i.l.bf16 %v5495_v32 }
 0x49d   : > { %v5111_v40 = vpack.c.bf16 %v5497_v33, %v5496_v34 }
 0x49e   : > { %v1498_v43 = vpop.permute.xlu1 %1497 }
 0x4a1   : > { %v6145_v8 = vpop.eup %5572 }
 0x4a2   : > { %v6147_v21 = vpop.eup %5574  ;;  %4746 = vmatprep.mubr.msk.f32.mxu1 %vm1183_vm9, %v6145_v8  ;;  %v1500_v44 = vpop.permute.xlu1 %1499 }
 0x4a3   : > { %4747 = vmatmul.mubr.msk.f32.vlgmr.msra.gmra.mrb[4].mxu1 %vm1183_vm9, %v6147_v21 }
 0x4a4   : > { %5098 = vmatpush3.bf16.msk.msra.mxu1 %vm6089_vm5, %v5093_v18 }
 0x4a6   : > { %v1705_v46 = vpop.permute.xlu1 %1704 }
 0x508   : > { %v1391_v23 = vpop.xlane.xlu0 %1390 }
 0x509   : > { %v1393_v24 = vsub.f32 %v1385_v1, %v1391_v23 }
 0x50b   : > { %v1396_v26 = vmul.f32 1.442695, %v1393_v24 }
 0x50c   : > { %v1388_v25 = vpop.xlane.xlu0 %1387 }
 0x50d   : > { %v1392_v22 = vsub.f32 %v1384_v4, %v1388_v25 }
 0x50f   : > { %v1394_v27 = vmul.f32 1.442695, %v1392_v22 }
 0x510   : > { %v5490_v28 = vpop.permute.xlu0 %5489 }
 0x511   : > { %5576 = vpow2.f32 %v1394_v27  ;;  %v5492_v29 = vunpack.i.h.bf16 %v5490_v28  ;;  %v5491_v30 = vunpack.i.l.bf16 %v5490_v28 }
 0x512   : > { %5578 = vpow2.f32 %v1396_v26 }
 0x513   : > { %v5099_v31 = vpack.c.bf16 %v5492_v29, %v5491_v30 }
 0x514   : > { %v1703_v45 = vpop.permute.xlu0 %1702 }
 0x515   : > { %5101 = vmatprep.subr.msk.bf16.mxu1 %vm6084_vm3, %v5099_v31 }
 0x51b   : > { %v5577_v36 = vpop.eup %5576 }
 0x51c   : > { %v5579_v37 = vpop.eup %5578  ;;  %4760 = vmatprep.mubr.msk.f32.mxu1 %vm1183_vm9, %v5577_v36  ;;  %v1398_v7 = vsel %vm1183_vm9, %v5577_v36, 0.0 }
 0x51d   : > { %4761 = vmatmul.mubr.msk.f32.vlgmr.msra.gmra.mrb[6].mxu1 %vm1183_vm9, %v5579_v37  ;;  %v1401_v9 = vsel %vm1187_vm7, %v5579_v37, 0.0 }
 0x51e   : > { %5104 = vmatpush3.bf16.xpose.msk.msra.mxu1 %vm6084_vm3, %v5099_v31  ;;  %4767 = vmatprep.mubr.msk.f32.mxu1 %vm1091_vm2, %v1498_v43 }
 0x51f   : > { %5113 = vmatprep.subr.msk.bf16.mxu1 %vm6084_vm3, %v5111_v40 }
 0x525   : > { %4768 = vmatmul.mubr.msk.f32.vlgmr.msra.gmra.mrb[8].mxu1 %vm1091_vm2, %v1500_v44 }
 0x526   : > { %5116 = vmatpush3.bf16.xpose.msk.msra.mxu1 %vm6084_vm3, %v5111_v40  ;;  %4781 = vmatprep.mubr.msk.f32.mxu1 %vm1091_vm2, %v1703_v45  ;;  %v1200_v45 = vsel %vm1187_vm7, %v6147_v21, 0.0 }
 0x52d   : > { %4782 = vmatmul.mubr.msk.f32.vlgmr.msra.gmra.mrb[10].mxu1 %vm1091_vm2, %v1705_v46 }
 0x52e   : > { %2191 = vmatprep.mubr.f32.mxu1 %v5686_v6 }
 0x576   : > { %v6170_v47 = vpop.f32.mrb[4].mxu1 }
 0x577   : > { %v6172_v48 = vpop.f32.mrb[5].mxu1 }
 0x5f0   : > { %v6174_v49 = vpop.f32.mrb[6].mxu1 }
 0x5f1   : > { %v6176_v50 = vpop.f32.mrb[7].mxu1 }
 0x5f8   : > { %v4769_v51 = vpop.f32.mrb[8].mxu1 }
 0x5f9   : > { %v1589_v53 = vmul.f32 0.17677669, %v4769_v51  ;;  %v1579_v54 = vpop.f32.mrb[9].mxu1  ;;  %v1197_v51 = vsel %vm1183_vm9, %v6145_v8, 0.0  ;;  %v1940_v8 = vld [vmem:[%s7176_s12 + $0x8] sm:$0xff] }
 0x5fa   : > { %v1588_v56 = vmul.f32 0.17677669, %v1579_v54 }
 0x5fb   : > { %v1591_v57 = vsel %vm6112_vm6, %v1589_v53, -1e+30 }
 0x5fc   : > { %v1595_v58 = vsel %vm1187_vm7, %v1591_v57, -inf  ;;  %v1590_v59 = vsel %vm6117_vm8, %v1588_v56, -1e+30 }
 0x5fd   : > { %1596 = vmax.xlane.f32.xlu1 %v1595_v58  ;;  %v1592_v60 = vsel %vm1183_vm9, %v1590_v59, -inf }
 0x5fe   : > { %1593 = vmax.xlane.f32.xlu0 %v1592_v60  ;;  %v1939_v60 = vld [vmem:[%s7176_s12] sm:$0xff] }
 0x600   : > { %v4783_v61 = vpop.f32.mrb[10].mxu1 }
 0x601   : > { %v1794_v62 = vmul.f32 0.17677669, %v4783_v61  ;;  %v1784_v63 = vpop.f32.mrb[11].mxu1  ;;  %v1941_v61 = vld [vmem:[%s7176_s12 + $0x10] sm:$0xff] }
 0x602   : > { %v1793_v0 = vmul.f32 0.17677669, %v1784_v63  ;;  %v1943_v63 = vld [vmem:[%s7176_s12 + $0x20] sm:$0xff] }
 0x603   : > { %v1796_v1 = vsel %vm6112_vm6, %v1794_v62, -1e+30  ;;  %v5123_v62 = vpack.c.bf16 %v1940_v8, %v1939_v60 }
 0x604   : > { %v1800_v2 = vsel %vm1187_vm7, %v1796_v1, -inf  ;;  %v1795_v4 = vsel %vm6117_vm8, %v1793_v0, -1e+30  ;;  %v1944_v0 = vld [vmem:[%s7176_s12 + $0x28] sm:$0xff] }
 0x605   : > { %1801 = vmax.xlane.f32.xlu0 %v1800_v2  ;;  %v1797_v5 = vsel %vm1183_vm9, %v1795_v4, -inf  ;;  %v1945_v2 = vld [vmem:[%s7176_s12 + $0x30] sm:$0xff] }
 0x609   : > { %1798 = vmax.xlane.f32.xlu0 %v1797_v5 }
 0x60e   : > { %5504 = vrot.lane.b32.xlu1 %v6093_v42, %s7194_s24 }
 0x61f   : > { %5499 = vrot.lane.b32.xlu0 %v6093_v42, %s7192_s6 }
 0x632   : > { %1399 = vadd.xlane.f32.xlu1 %v1398_v7  ;;  %v1947_v7 = vld [vmem:[%s7176_s12 + $0x40] sm:$0xff] }
 0x63e   : > { %1402 = vadd.xlane.f32.xlu0 %v1401_v9  ;;  %v1948_v9 = vld [vmem:[%s7176_s12 + $0x48] sm:$0xff] }
 0x68a   : > { %v1597_v10 = vpop.xlane.xlu1 %1596 }
 0x68b   : > { %v1599_v11 = vsub.f32 %v1591_v57, %v1597_v10  ;;  %v1594_v12 = vpop.xlane.xlu0 %1593  ;;  %v5139_v10 = vpack.c.bf16 %v1948_v9, %v1947_v7 }
 0x68c   : > { %v1598_v13 = vsub.f32 %v1590_v59, %v1594_v12  ;;  %v1950_v12 = vld [vmem:[%s7176_s12 + $0x58] sm:$0xff] }
 0x68d   : > { %v1602_v14 = vmul.f32 1.442695, %v1599_v11  ;;  %v1949_v11 = vld [vmem:[%s7176_s12 + $0x50] sm:$0xff] }
 0x68e   : > { %v1600_v15 = vmul.f32 1.442695, %v1598_v13  ;;  %v5505_v25 = vpop.permute.xlu1 %5504  ;;  %v5143_v13 = vpack.c.bf16 %v1950_v12, %v1949_v11 }
 0x68f   : > { %5580 = vpow2.f32 %v1602_v14  ;;  %v5507_v28 = vunpack.i.h.bf16 %v5505_v25  ;;  %v5506_v29 = vunpack.i.l.bf16 %v5505_v25 }
 0x690   : > { %5582 = vpow2.f32 %v1600_v15 }
 0x691   : > { %v5117_v37 = vpack.c.bf16 %v5507_v28, %v5506_v29 }
 0x692   : > { %v1802_v16 = vpop.xlane.xlu0 %1801 }
 0x693   : > { %v1804_v18 = vsub.f32 %v1796_v1, %v1802_v16  ;;  %v5131_v1 = vpack.c.bf16 %v1944_v0, %v1943_v63  ;;  %v1951_v16 = vld [vmem:[%s7176_s12 + $0x60] sm:$0xff] }
 0x695   : > { %v1807_v23 = vmul.f32 1.442695, %v1804_v18  ;;  %v1952_v18 = vld [vmem:[%s7176_s12 + $0x68] sm:$0xff] }
 0x696   : > { %v1799_v24 = vpop.xlane.xlu0 %1798 }
 0x697   : > { %5584 = vpow2.f32 %v1807_v23  ;;  %v1803_v42 = vsub.f32 %v1795_v4, %v1799_v24  ;;  %v1946_v4 = vld [vmem:[%s7176_s12 + $0x38] sm:$0xff]  ;;  %v5147_v24 = vpack.c.bf16 %v1952_v18, %v1951_v16  ;;  %v2085_v16 = vld [vmem:[%s7178_s14 + $0x10] sm:$0xff]  ;;  %v2088_v18 = vld [vmem:[%s7178_s14 + $0x28] sm:$0xff] }
 0x698   : > { %v5135_v5 = vpack.c.bf16 %v1946_v4, %v1945_v2 }
 0x699   : > { %v5581_v22 = vpop.eup %5580  ;;  %v1805_v26 = vmul.f32 1.442695, %v1803_v42  ;;  %v1953_v42 = vld [vmem:[%s7176_s12 + $0x70] sm:$0xff] }
 0x69a   : > { %v5583_v27 = vpop.eup %5582  ;;  %v5500_v30 = vpop.permute.xlu0 %5499  ;;  %v1607_v31 = vsel %vm1187_vm7, %v5581_v22, 0.0 }
 0x69b   : > { %5586 = vpow2.f32 %v1805_v26  ;;  %v5502_v32 = vunpack.i.h.bf16 %v5500_v30  ;;  %v5501_v33 = vunpack.i.l.bf16 %v5500_v30  ;;  %1608 = vadd.xlane.f32.xlu1 %v1607_v31  ;;  %4774 = vmatprep.mubr.msk.f32.mxu0 %vm1183_vm9, %v5583_v27  ;;  %v1604_v34 = vsel %vm1183_vm9, %v5583_v27, 0.0 }
 0x69c   : > { %1605 = vadd.xlane.f32.xlu0 %v1604_v34 }
 0x69d   : > { %v5105_v36 = vpack.c.bf16 %v5502_v32, %v5501_v33 }
 0x69f   : > { %5107 = vmatprep.subr.msk.bf16.mxu0 %vm6089_vm5, %v5105_v36 }
 0x6a0   : > { %5110 = vmatpush3.bf16.msk.msra.mxu0 %vm6089_vm5, %v5105_v36 }
 0x6a1   : > { %v5585_v40 = vpop.eup %5584  ;;  %5119 = vmatprep.subr.msk.bf16.mxu0 %vm6089_vm5, %v5117_v37 }
 0x6a2   : > { %v1812_v43 = vsel %vm1187_vm7, %v5585_v40, 0.0 }
 0x6a3   : > { %1813 = vadd.xlane.f32.xlu1 %v1812_v43  ;;  %4775 = vmatmul.mubr.msk.f32.vlgmr.msra.gmra.mrb[8].mxu0 %vm1183_vm9, %v5581_v22  ;;  %v1954_v22 = vld [vmem:[%s7176_s12 + $0x78] sm:$0xff] }
 0x6a4   : > { %5122 = vmatpush3.bf16.msk.msra.mxu0 %vm6089_vm5, %v5117_v37  ;;  %v5151_v26 = vpack.c.bf16 %v1954_v22, %v1953_v42  ;;  %v2087_v42 = vld [vmem:[%s7178_s14 + $0x20] sm:$0xff]  ;;  %v2089_v22 = vld [vmem:[%s7178_s14 + $0x30] sm:$0xff] }
 0x6a5   : > { %v5587_v44 = vpop.eup %5586  ;;  %5124 = vmatprep.subr.bf16.mxu0 %v5123_v62 }
 0x6a6   : > { %4788 = vmatprep.mubr.msk.f32.mxu0 %vm1183_vm9, %v5587_v44  ;;  %v1809_v46 = vsel %vm1183_vm9, %v5587_v44, 0.0 }
 0x6a7   : > { %1201 = vadd.xlane.f32.xlu1 %v1200_v45  ;;  %1810 = vadd.xlane.f32.xlu0 %v1809_v46 }
 0x6a8   : > { %4789 = vmatmul.mubr.msk.f32.vlgmr.msra.gmra.mrb[10].mxu0 %vm1183_vm9, %v5585_v40 }
 0x6a9   : > { %5126 = vmatpush3.bf16.msra.mxu0 %v5123_v62 }
 0x6ab   : > { %1198 = vadd.xlane.f32.xlu0 %v1197_v51 }
 0x6bf   : > { %v1400_v53 = vpop.xlane.xlu1 %1399 }
 0x6c0   : > { %5588 = vrcp.f32 %v1400_v53 }
 0x6ca   : > { %v5589_v56 = vpop.eup %5588 }
 0x6cb   : > { %v1403_v54 = vpop.xlane.xlu0 %1402  ;;  %v1495_v58 = vmul.f32 %v5589_v56, %v6176_v50 }
 0x6cc   : > { %5590 = vrcp.f32 %v1403_v54 }
 0x6d6   : > { %v5591_v57 = vpop.eup %5590 }
 0x6d7   : > { %v1496_v21 = vmul.f32 %v5591_v57, %v6174_v49  ;;  %v1942_v49 = vld [vmem:[%s7176_s12 + $0x18] sm:$0xff] }
 0x6d8   : > { %v5127_v50 = vpack.c.bf16 %v1942_v49, %v1941_v61 }
 0x6d9   : > { %v5508_v59 = vpack.i.bf16 %v1496_v21, %v1495_v58 }
 0x6da   : > { %5128 = vmatprep.subr.bf16.mxu0 %v5127_v50 }
 0x6db   : > { %5509 = vrot.lane.b32.xlu0 %v5508_v59, %s7194_s24  ;;  %5130 = vmatpush3.bf16.msra.mxu0 %v5127_v50 }
 0x6dc   : > { %5132 = vmatprep.subr.bf16.mxu0 %v5131_v1 }
 0x6df   : > { %5134 = vmatpush3.bf16.msra.mxu0 %v5131_v1 }
 0x6e0   : > { %5136 = vmatprep.subr.bf16.mxu0 %v5135_v5 }
 0x6e3   : > { %5138 = vmatpush3.bf16.msra.mxu0 %v5135_v5 }
 0x6e4   : > { %5140 = vmatprep.subr.bf16.mxu0 %v5139_v10 }
 0x6e7   : > { %5142 = vmatpush3.bf16.msra.mxu0 %v5139_v10 }
 0x6e8   : > { %5144 = vmatprep.subr.bf16.mxu0 %v5143_v13 }
 0x6eb   : > { %5146 = vmatpush3.bf16.msra.mxu0 %v5143_v13 }
 0x6ec   : > { %5148 = vmatprep.subr.bf16.mxu0 %v5147_v24 }
 0x6ef   : > { %5150 = vmatpush3.bf16.msra.mxu0 %v5147_v24 }
 0x6f0   : > { %5152 = vmatprep.subr.bf16.mxu0 %v5151_v26 }
 0x6f3   : > { %5154 = vmatpush3.bf16.msra.mxu0 %v5151_v26  ;;  %v2092_v26 = vld [vmem:[%s7178_s14 + $0x48] sm:$0xff] }
 0x728   : > { %v1609_v14 = vpop.xlane.xlu1 %1608 }
 0x729   : > { %v1606_v15 = vpop.xlane.xlu0 %1605  ;;  %5592 = vrcp.f32 %v1609_v14  ;;  %v2084_v14 = vld [vmem:[%s7178_s14 + $0x8] sm:$0xff] }
 0x72a   : > { %5594 = vrcp.f32 %v1606_v15 }
 0x730   : > { %v1814_v23 = vpop.xlane.xlu1 %1813 }
 0x731   : > { %5596 = vrcp.f32 %v1814_v23  ;;  %v2090_v23 = vld [vmem:[%s7178_s14 + $0x38] sm:$0xff] }
 0x733   : > { %v5593_v27 = vpop.eup %5592 }
 0x734   : > { %v1811_v25 = vpop.xlane.xlu0 %1810  ;;  %v5595_v29 = vpop.eup %5594 }
 0x735   : > { %5598 = vrcp.f32 %v1811_v25  ;;  %v1202_v46 = vpop.xlane.xlu1 %1201  ;;  %v5159_v25 = vpack.c.bf16 %v2090_v23, %v2088_v18 }
 0x736   : > { %5600 = vrcp.f32 %v1202_v46 }
 0x738   : > { %v1199_v51 = vpop.xlane.xlu0 %1198 }
 0x739   : > { %5602 = vrcp.f32 %v1199_v51  ;;  %v2096_v51 = vld [vmem:[%s7178_s14 + $0x68] sm:$0xff] }
 0x73b   : > { %v5597_v34 = vpop.eup %5596 }
 0x73f   : > { %v5599_v37 = vpop.eup %5598 }
 0x740   : > { %v5601_v54 = vpop.eup %5600 }
 0x741   : > { %v1290_v8 = vmul.f32 %v5601_v54, %v6170_v47 }
 0x743   : > { %v5603_v57 = vpop.eup %5602 }
 0x744   : > { %v1289_v61 = vmul.f32 %v5603_v57, %v6172_v48  ;;  %v4238_v48 = vld [vmem:[%s7177_s13] ss:$0 sm:$0xff]  ;;  %v2097_v57 = vld [vmem:[%s7178_s14 + $0x70] sm:$0xff] }
 0x74d   : > { %v5510_v53 = vpop.permute.xlu0 %5509 }
 0x74e   : > { %v5512_v58 = vunpack.i.h.bf16 %v5510_v53  ;;  %v5511_v21 = vunpack.i.l.bf16 %v5510_v53  ;;  %v2098_v53 = vld [vmem:[%s7178_s14 + $0x78] sm:$0xff] }
 0x74f   : > { %v5167_v54 = vpack.c.bf16 %v2098_v53, %v2096_v51  ;;  %v2259_v51 = vld [vmem:[%s7180_s16 + $0x98] sm:$0xff] }
 0x750   : > { %v1932_v49 = vsel %vm1091_vm2, %v1290_v8, %v5512_v58  ;;  %v1931_v0 = vsel %vm1091_vm2, %v1289_v61, %v5511_v21  ;;  %v2100_v21 = vld [vmem:[%s7178_s14 + $0x88] sm:$0xff]  ;;  %v2099_v8 = vld [vmem:[%s7178_s14 + $0x80] sm:$0xff]  ;;  %v2101_v61 = vld [vmem:[%s7178_s14 + $0x90] sm:$0xff] }
 0x776   : > { %v4776_v28 = vpop.f32.mrb[8].mxu0 }
 0x777   : > { %v1701_v30 = vmul.f32 %v5593_v27, %v4776_v28  ;;  %v1691_v31 = vpop.f32.mrb[9].mxu0  ;;  %v2094_v27 = vld [vmem:[%s7178_s14 + $0x58] sm:$0xff]  ;;  %v5161_v28 = vpack.c.bf16 %v2089_v22, %v2087_v42 }
 0x778   : > { %v1700_v32 = vmul.f32 %v5595_v29, %v1691_v31  ;;  %v5163_v29 = vpack.c.bf16 %v2094_v27, %v2092_v26  ;;  %v2093_v31 = vld [vmem:[%s7178_s14 + $0x50] sm:$0xff]  ;;  %v4239_v26 = vld [vmem:[%s7172_s8] ss:$0 sm:$0xff] }
 0x77a   : > { %v5513_v33 = vpack.i.bf16 %v1701_v30, %v1700_v32  ;;  %v2091_v30 = vld [vmem:[%s7178_s14 + $0x40] sm:$0xff] }
 0x77b   : > { %v4790_v36 = vpop.f32.mrb[10].mxu0  ;;  %v5165_v32 = vpack.c.bf16 %v2093_v31, %v2091_v30 }
 0x77c   : > { %v1906_v40 = vmul.f32 %v5597_v34, %v4790_v36  ;;  %v1896_v43 = vpop.f32.mrb[11].mxu0  ;;  %5514 = vrot.lane.b32.xlu1 %v5513_v33, %s7221_s27 }
 0x77d   : > { %v1905_v44 = vmul.f32 %v5599_v37, %v1896_v43 }
 0x77f   : > { %v5518_v45 = vpack.i.bf16 %v1906_v40, %v1905_v44 }
 0x781   : > { %5519 = vrot.lane.b32.xlu1 %v5518_v45, %s7222_s29 }
 0x7ee   : > { %v5515_v56 = vpop.permute.xlu1 %5514 }
 0x7ef   : > { %v5517_v59 = vunpack.i.h.bf16 %v5515_v56  ;;  %v5516_v60 = vunpack.i.l.bf16 %v5515_v56  ;;  %v2095_v56 = vld [vmem:[%s7178_s14 + $0x60] sm:$0xff] }
 0x7f0   : > { %v5169_v58 = vpack.c.bf16 %v2097_v57, %v2095_v56  ;;  %v2243_v56 = vld [vmem:[%s7180_s16 + $0x18] sm:$0xff] }
 0x7f1   : > { %v1934_v1 = vsel %vm1933_vm10, %v1931_v0, %v5516_v60  ;;  %v1935_v2 = vsel %vm1933_vm10, %v1932_v49, %v5517_v59  ;;  %v2102_v59 = vld [vmem:[%s7178_s14 + $0x98] sm:$0xff]  ;;  %v2104_v49 = vld [vmem:[%s7178_s14 + $0xa8] sm:$0xff]  ;;  %v2103_v0 = vld [vmem:[%s7178_s14 + $0xa0] sm:$0xff] }
 0x7f2   : > { %v5171_v60 = vpack.c.bf16 %v2102_v59, %v2100_v21  ;;  %v2261_v21 = vld [vmem:[%s7180_s16 + $0xa8] sm:$0xff] }
 0x7f3   : > { %v5520_v62 = vpop.permute.xlu1 %5519 }
 0x7f4   : > { %v5522_v50 = vunpack.i.h.bf16 %v5520_v62  ;;  %v5521_v63 = vunpack.i.l.bf16 %v5520_v62  ;;  %v5173_v62 = vpack.c.bf16 %v2101_v61, %v2099_v8  ;;  %v2245_v8 = vld [vmem:[%s7180_s16 + $0x28] sm:$0xff] }
 0x7f6   : > { %v1937_v4 = vsel %vm1936_vm11, %v1934_v1, %v5521_v63  ;;  %v1938_v5 = vsel %vm1936_vm11, %v1935_v2, %v5522_v50  ;;  %v2106_v50 = vld [vmem:[%s7178_s14 + $0xb8] sm:$0xff]  ;;  %v2105_v1 = vld [vmem:[%s7178_s14 + $0xb0] sm:$0xff] }
 0x7f7   : > { %4823 = vmatprep.mubr.f32.mxu0 %v1937_v4  ;;  %v5175_v63 = vpack.c.bf16 %v2106_v50, %v2104_v49  ;;  %v5177_v2 = vpack.c.bf16 %v2105_v1, %v2103_v0  ;;  %v2108_v4 = vld [vmem:[%s7178_s14 + $0xc8] sm:$0xff]  ;;  %v2263_v49 = vld [vmem:[%s7180_s16 + $0xb8] sm:$0xff] }
 0x7f8   : > { %4824 = vmatmul.mubr.f32.vlgmr.msra.gmra.mrb[12].mxu0 %v1938_v5  ;;  %v2110_v5 = vld [vmem:[%s7178_s14 + $0xd8] sm:$0xff] }
 0x7f9   : > { %v2247_v0 = vld [vmem:[%s7180_s16 + $0x38] sm:$0xff] }
 0x8cb   : > { %v4825_v47 = vpop.f32.mrb[12].mxu0 }
 0x8cc   : > { %v2031_v7 = vadd.f32 %v4825_v47, %v5888_v38  ;;  %v2021_v9 = vpop.f32.mrb[13].mxu0  ;;  %v2086_v38 = vld [vmem:[%s7178_s14 + $0x18] sm:$0xff]  ;;  %v2107_v47 = vld [vmem:[%s7178_s14 + $0xc0] sm:$0xff] }
 0x8cd   : > { %v2030_v10 = vadd.f32 %v2021_v9, %v5890_v39  ;;  %v2083_v39 = vld [vmem:[%s7178_s14] sm:$0xff]  ;;  %v5155_v15 = vpack.c.bf16 %v2086_v38, %v2084_v14  ;;  %v2112_v9 = vld [vmem:[%s7178_s14 + $0xe8] sm:$0xff] }
 0x8ce   : > { %v6282_v11 = vadd.f32 %v4238_v48, %v2031_v7  ;;  %v5157_v24 = vpack.c.bf16 %v2085_v16, %v2083_v39  ;;  %v2109_v7 = vld [vmem:[%s7178_s14 + $0xd0] sm:$0xff]  ;;  %v2111_v38 = vld [vmem:[%s7178_s14 + $0xe0] sm:$0xff] }
 0x8cf   : > { %v6284_v12 = vadd.f32 %v4238_v48, %v2030_v10  ;;  %5156 = vmatprep.subr.bf16.mxu1 %v5155_v15  ;;  %v5179_v48 = vpack.c.bf16 %v2110_v5, %v2108_v4  ;;  %v2114_v10 = vld [vmem:[%s7178_s14 + $0xf8] sm:$0xff]  ;;  %v2113_v39 = vld [vmem:[%s7178_s14 + $0xf0] sm:$0xff]  ;;  %v2265_v4 = vld [vmem:[%s7180_s16 + $0xc8] sm:$0xff] }
 0x8d0   : > { %v2045_v13 = vsel %vm816_vm1, %v6282_v11, 0.0  ;;  %5158 = vmatpush1.bf16.msra.mxu1 %v5157_v24  ;;  %v5183_v14 = vpack.c.bf16 %v2114_v10, %v2112_v9  ;;  %v5185_v15 = vpack.c.bf16 %v2113_v39, %v2111_v38  ;;  %v2266_v9 = vld [vmem:[%s7180_s16 + $0xd0] sm:$0xff]  ;;  %v2267_v10 = vld [vmem:[%s7180_s16 + $0xd8] sm:$0xff]  ;;  %v2268_v39 = vld [vmem:[%s7180_s16 + $0xe0] sm:$0xff] }
 0x8d1   : > { %2046 = vadd.xlane.f32.xlu0 %v2045_v13  ;;  %2043 = vadd.xlane.f32.xlu1 %v6284_v12  ;;  %v5181_v13 = vpack.c.bf16 %v2109_v7, %v2107_v47  ;;  %v2248_v47 = vld [vmem:[%s7180_s16 + $0x40] sm:$0xff]  ;;  %v2251_v38 = vld [vmem:[%s7180_s16 + $0x58] sm:$0xff] }
 0x8d2   : > { %5160 = vmatprep.subr.bf16.mxu1 %v5159_v25 }
 0x8d4   : > { %5162 = vmatpush1.bf16.msra.mxu1 %v5161_v28  ;;  %v4240_v28 = vld [vmem:[%s7173_s9] ss:$0 sm:$0xff] }
 0x8d5   : > { %5164 = vmatprep.subr.bf16.mxu1 %v5163_v29 }
 0x8d8   : > { %5166 = vmatpush1.bf16.msra.mxu1 %v5165_v32 }
 0x8d9   : > { %5168 = vmatprep.subr.bf16.mxu1 %v5167_v54  ;;  %v2242_v54 = vld [vmem:[%s7180_s16 + $0x10] sm:$0xff] }
 0x8da   : > { %v5193_v57 = vpack.c.bf16 %v2243_v56, %v2242_v54 }
 0x8dc   : > { %5170 = vmatpush1.bf16.msra.mxu1 %v5169_v58  ;;  %v2260_v58 = vld [vmem:[%s7180_s16 + $0xa0] sm:$0xff] }
 0x8dd   : > { %5172 = vmatprep.subr.bf16.mxu1 %v5171_v60  ;;  %v5195_v59 = vpack.c.bf16 %v2261_v21, %v2260_v58  ;;  %v2244_v60 = vld [vmem:[%s7180_s16 + $0x20] sm:$0xff] }
 0x8de   : > { %v5197_v61 = vpack.c.bf16 %v2245_v8, %v2244_v60 }
 0x8e0   : > { %5174 = vmatpush1.bf16.msra.mxu1 %v5173_v62  ;;  %v2262_v62 = vld [vmem:[%s7180_s16 + $0xb0] sm:$0xff] }
 0x8e1   : > { %5176 = vmatprep.subr.bf16.mxu1 %v5175_v63  ;;  %v5199_v50 = vpack.c.bf16 %v2263_v49, %v2262_v62  ;;  %v2246_v63 = vld [vmem:[%s7180_s16 + $0x30] sm:$0xff] }
 0x8e2   : > { %v5201_v1 = vpack.c.bf16 %v2247_v0, %v2246_v63 }
 0x8e4   : > { %5178 = vmatpush1.bf16.msra.mxu1 %v5177_v2  ;;  %v2264_v2 = vld [vmem:[%s7180_s16 + $0xc0] sm:$0xff] }
 0x8e5   : > { %5180 = vmatprep.subr.bf16.mxu1 %v5179_v48  ;;  %v5203_v5 = vpack.c.bf16 %v2265_v4, %v2264_v2  ;;  %v2249_v48 = vld [vmem:[%s7180_s16 + $0x48] sm:$0xff] }
 0x8e6   : > { %v5205_v7 = vpack.c.bf16 %v2249_v48, %v2248_v47 }
 0x8e8   : > { %5182 = vmatpush1.bf16.msra.mxu1 %v5181_v13  ;;  %v2250_v13 = vld [vmem:[%s7180_s16 + $0x50] sm:$0xff] }
 0x8e9   : > { %5184 = vmatprep.subr.bf16.mxu1 %v5183_v14  ;;  %v5207_v14 = vpack.c.bf16 %v2267_v10, %v2266_v9 }
 0x8ec   : > { %5186 = vmatpush1.bf16.msra.mxu1 %v5185_v15  ;;  %v2269_v15 = vld [vmem:[%s7180_s16 + $0xe8] sm:$0xff] }
 0x95e   : > { %v2047_v33 = vpop.xlane.xlu0 %2046  ;;  %v2044_v34 = vpop.xlane.xlu1 %2043 }
 0x95f   : > { %v2049_v36 = vmul.f32 0.0078125, %v2047_v33  ;;  %v2048_v37 = vmul.f32 0.0078125, %v2044_v34 }
 0x961   : > { %v2051_v40 = vsub.f32 %v6282_v11, %v2049_v36  ;;  %v2050_v43 = vsub.f32 %v6284_v12, %v2048_v37  ;;  %v2256_v36 = vld [vmem:[%s7180_s16 + $0x80] sm:$0xff]  ;;  %v2257_v37 = vld [vmem:[%s7180_s16 + $0x88] sm:$0xff] }
 0x963   : > { %v2052_v44 = vmul.f32 %v2050_v43, %v2050_v43  ;;  %v2053_v45 = vmul.f32 %v2051_v40, %v2051_v40 }
 0x965   : > { %2054 = vadd.xlane.f32.xlu0 %v2052_v44  ;;  %v2056_v46 = vsel %vm816_vm1, %v2053_v45, 0.0  ;;  %v2241_v44 = vld [vmem:[%s7180_s16 + $0x8] sm:$0xff] }
 0x969   : > { %2057 = vadd.xlane.f32.xlu0 %v2056_v46  ;;  %v2258_v46 = vld [vmem:[%s7180_s16 + $0x90] sm:$0xff] }
 0x96a   : > { %v5191_v53 = vpack.c.bf16 %v2259_v51, %v2258_v46 }
 0x9f2   : > { %v2055_v16 = vpop.xlane.xlu0 %2054 }
 0x9f3   : > { %v2059_v18 = vmul.f32 0.0078125, %v2055_v16  ;;  %v5209_v16 = vpack.c.bf16 %v2251_v38, %v2250_v13 }
 0x9f5   : > { %v2061_v23 = vadd.f32 1e-05, %v2059_v18  ;;  %v5211_v18 = vpack.c.bf16 %v2269_v15, %v2268_v39 }
 0x9f6   : > { %v2058_v24 = vpop.xlane.xlu0 %2057 }
 0x9f7   : > { %5604 = vrsqrt.f32 %v2061_v23  ;;  %v2060_v25 = vmul.f32 0.0078125, %v2058_v24  ;;  %v2252_v23 = vld [vmem:[%s7180_s16 + $0x60] sm:$0xff]  ;;  %v2253_v24 = vld [vmem:[%s7180_s16 + $0x68] sm:$0xff] }
 0x9f9   : > { %v2062_v42 = vadd.f32 1e-05, %v2060_v25  ;;  %v2270_v25 = vld [vmem:[%s7180_s16 + $0xf0] sm:$0xff] }
 0x9fb   : > { %5606 = vrsqrt.f32 %v2062_v42  ;;  %v2271_v42 = vld [vmem:[%s7180_s16 + $0xf8] sm:$0xff] }
 0xa01   : > { %v5605_v22 = vpop.eup %5604 }
 0xa02   : > { %v2065_v27 = vmul.f32 %v5605_v22, %v2050_v43  ;;  %v5187_v43 = vpack.c.bf16 %v2257_v37, %v2256_v36  ;;  %v5213_v22 = vpack.c.bf16 %v2253_v24, %v2252_v23 }
 0xa04   : > { %v2073_v29 = vmul.f32 %v4239_v26, %v2065_v27  ;;  %5188 = vmatprep.subr.bf16.mxu0 %v5187_v43  ;;  %v2254_v27 = vld [vmem:[%s7180_s16 + $0x70] sm:$0xff] }
 0xa05   : > { %v5607_v30 = vpop.eup %5606 }
 0xa06   : > { %v2081_v31 = vadd.f32 %v4240_v28, %v2073_v29  ;;  %v2066_v32 = vmul.f32 %v5607_v30, %v2051_v40  ;;  %v2240_v40 = vld [vmem:[%s7180_s16] sm:$0xff] }
 0xa07   : > { %v5189_v45 = vpack.c.bf16 %v2241_v44, %v2240_v40  ;;  %v2115_v30 = vld [vmem:[%s7179_s15] sm:$0x3] }
 0xa08   : > { %2192 = vmatmul.mubr.f32.vlgmr.msra.gmra.mrb[12].mxu1 %v2081_v31  ;;  %v2074_v33 = vmul.f32 %v4239_v26, %v2066_v32  ;;  %v5215_v26 = vpack.c.bf16 %v2271_v42, %v2270_v25  ;;  %v2120_v31 = vrot.slane %v2115_v30, %v6062_v3  ;;  %v2124_v32 = vrot.slane %v2115_v30, %v6070_v20 }
 0xa09   : > { %2197 = vmatprep.mubr.f32.mxu1 %v5686_v6  ;;  %5190 = vmatpush3.bf16.msra.mxu0 %v5189_v45 }
 0xa0a   : > { %v2082_v34 = vadd.f32 %v4240_v28, %v2074_v33  ;;  %5192 = vmatprep.subr.bf16.mxu0 %v5191_v53  ;;  %v2255_v28 = vld [vmem:[%s7180_s16 + $0x78] sm:$0xff] }
 0xa0b   : > { %v5217_v29 = vpack.c.bf16 %v2255_v28, %v2254_v27  ;;  %v4241_v27 = vld [vmem:[%s7181_s17] ss:$0 sm:$0xff] }
 0xa0c   : > { %2198 = vmatmul.mubr.f32.gmra.mrb[14].mxu1 %v2082_v34 }
 0xa0d   : > { %2533 = vmatprep.mubr.f32.mxu1 %v5686_v6  ;;  %5194 = vmatpush3.bf16.msra.mxu0 %v5193_v57 }
 0xa0e   : > { %5196 = vmatprep.subr.bf16.mxu0 %v5195_v59 }
 0xa11   : > { %5198 = vmatpush3.bf16.msra.mxu0 %v5197_v61 }
 0xa12   : > { %5200 = vmatprep.subr.bf16.mxu0 %v5199_v50 }
 0xa15   : > { %5202 = vmatpush3.bf16.msra.mxu0 %v5201_v1 }
 0xa16   : > { %5204 = vmatprep.subr.bf16.mxu0 %v5203_v5 }
 0xa19   : > { %5206 = vmatpush3.bf16.msra.mxu0 %v5205_v7 }
 0xa1a   : > { %5208 = vmatprep.subr.bf16.mxu0 %v5207_v14 }
 0xa1d   : > { %5210 = vmatpush3.bf16.msra.mxu0 %v5209_v16 }
 0xa1e   : > { %5212 = vmatprep.subr.bf16.mxu0 %v5211_v18 }
 0xa21   : > { %5214 = vmatpush3.bf16.msra.mxu0 %v5213_v22 }
 0xa22   : > { %5216 = vmatprep.subr.bf16.mxu0 %v5215_v26 }
 0xa25   : > { %5218 = vmatpush3.bf16.msra.mxu0 %v5217_v29 }
 0xadb   : > { %v2193_v33 = vpop.f32.mrb[12].mxu1 }
 0xadc   : > { %v2194_v34 = vadd.f32 %v2193_v33, %v2120_v31  ;;  %v2195_v36 = vpop.f32.mrb[13].mxu1 }
 0xadd   : > { %v2196_v37 = vadd.f32 %v2195_v36, %v2124_v32 }
 0xade   : > { %v2204_v43 = vmul.f32 %v2194_v34, %v2194_v34 }
 0xadf   : > { %v2205_v40 = vmul.f32 %v2196_v37, %v2196_v37  ;;  %v2199_v44 = vpop.f32.mrb[14].mxu1 }
 0xae0   : > { %v2208_v45 = vmul.f32 %v2204_v43, %v2194_v34  ;;  %v2200_v46 = vadd.f32 %v2199_v44, %v2120_v31  ;;  %v2201_v51 = vpop.f32.mrb[15].mxu1  ;;  %v4253_v44 = vld [vmem:[%s7174_s10 + $0x1b8] sm:$0xff] }
 0xae1   : > { %v2209_v53 = vmul.f32 %v2205_v40, %v2196_v37  ;;  %v2202_v54 = vadd.f32 %v2201_v51, %v2124_v32  ;;  %v4249_v40 = vld [vmem:[%s7174_s10 + $0x198] sm:$0xff] }
 0xae2   : > { %v2212_v56 = vmul.f32 0.044715, %v2208_v45  ;;  %v2206_v57 = vmul.f32 %v2200_v46, %v2200_v46  ;;  %v4256_v45 = vld [vmem:[%s7174_s10 + $0x1d0] sm:$0xff] }
 0xae3   : > { %v2213_v58 = vmul.f32 0.044715, %v2209_v53  ;;  %v2207_v21 = vmul.f32 %v2202_v54, %v2202_v54  ;;  %v5223_v51 = vpack.c.bf16 %v4256_v45, %v4253_v44  ;;  %v4252_v53 = vld [vmem:[%s7174_s10 + $0x1b0] sm:$0xff]  ;;  %v4275_v44 = vld [vmem:[%s7174_s10 + $0x268] sm:$0xff] }
 0xae4   : > { %v2216_v59 = vadd.f32 %v2212_v56, %v2194_v34  ;;  %v2210_v60 = vmul.f32 %v2206_v57, %v2200_v46  ;;  %v4248_v56 = vld [vmem:[%s7174_s10 + $0x190] sm:$0xff]  ;;  %v4251_v57 = vld [vmem:[%s7174_s10 + $0x1a8] sm:$0xff] }
 0xae5   : > { %v2217_v8 = vadd.f32 %v2213_v58, %v2196_v37  ;;  %v2211_v61 = vmul.f32 %v2207_v21, %v2202_v54  ;;  %v4259_v58 = vld [vmem:[%s7174_s10 + $0x1e8] sm:$0xff]  ;;  %v4262_v21 = vld [vmem:[%s7174_s10 + $0x200] sm:$0xff] }
 0xae6   : > { %v2220_v62 = vmul.f32 0.7978846, %v2216_v59  ;;  %v2214_v49 = vmul.f32 0.044715, %v2210_v60  ;;  %v5251_v60 = vpack.c.bf16 %v4251_v57, %v4248_v56  ;;  %v4285_v56 = vld [vmem:[%s7174_s10 + $0x2b8] sm:$0xff] }
 0xae7   : > { %v2221_v50 = vmul.f32 0.7978846, %v2217_v8  ;;  %v2215_v63 = vmul.f32 0.044715, %v2211_v61  ;;  %v4254_v8 = vld [vmem:[%s7174_s10 + $0x1c0] sm:$0xff]  ;;  %v5227_v61 = vpack.c.bf16 %v4262_v21, %v4259_v58  ;;  %v4281_v21 = vld [vmem:[%s7174_s10 + $0x298] sm:$0xff] }
 0xae8   : > { %5608 = vtanh.f32 %v2220_v62  ;;  %v2218_v0 = vadd.f32 %v2214_v49, %v2200_v46  ;;  %v4258_v62 = vld [vmem:[%s7174_s10 + $0x1e0] sm:$0xff]  ;;  %v4261_v49 = vld [vmem:[%s7174_s10 + $0x1f8] sm:$0xff]  ;;  %5252 = vmatprep.subr.bf16.mxu0 %v5251_v60 }
 0xae9   : > { %v2219_v1 = vadd.f32 %v2215_v63, %v2202_v54  ;;  %5610 = vtanh.f32 %v2221_v50  ;;  %v4257_v50 = vld [vmem:[%s7174_s10 + $0x1d8] sm:$0xff]  ;;  %v4278_v58 = vld [vmem:[%s7174_s10 + $0x280] sm:$0xff] }
 0xaea   : > { %v2222_v2 = vmul.f32 0.7978846, %v2218_v0  ;;  %v5255_v63 = vpack.c.bf16 %v4257_v50, %v4254_v8  ;;  %v5229_v0 = vpack.c.bf16 %v4261_v49, %v4258_v62  ;;  %v4292_v8 = vld [vmem:[%s7174_s10 + $0x2f0] sm:$0xff]  ;;  %v4291_v49 = vld [vmem:[%s7174_s10 + $0x2e8] sm:$0xff] }
 0xaeb   : > { %v2223_v4 = vmul.f32 0.7978846, %v2219_v1  ;;  %v4288_v62 = vld [vmem:[%s7174_s10 + $0x2d0] sm:$0xff] }
 0xaec   : > { %5612 = vtanh.f32 %v2222_v2  ;;  %v4284_v50 = vld [vmem:[%s7174_s10 + $0x2b0] sm:$0xff] }
 0xaed   : > { %5614 = vtanh.f32 %v2223_v4 }
 0xaf2   : > { %v5609_v5 = vpop.eup %5608 }
 0xaf3   : > { %v5611_v47 = vpop.eup %5610  ;;  %v2228_v48 = vadd.f32 1.0, %v5609_v5 }
 0xaf4   : > { %v2229_v7 = vadd.f32 1.0, %v5611_v47 }
 0xaf5   : > { %v2232_v9 = vmul.f32 0.5, %v2228_v48 }
 0xaf6   : > { %v5613_v10 = vpop.eup %5612  ;;  %v2233_v13 = vmul.f32 0.5, %v2229_v7 }
 0xaf7   : > { %v5615_v14 = vpop.eup %5614  ;;  %v2230_v38 = vadd.f32 1.0, %v5613_v10  ;;  %v2236_v16 = vmul.f32 %v2232_v9, %v2194_v34 }
 0xaf8   : > { %v2237_v39 = vmul.f32 %v2233_v13, %v2196_v37  ;;  %v2231_v15 = vadd.f32 1.0, %v5615_v14  ;;  %v4247_v37 = vld [vmem:[%s7174_s10 + $0x188] sm:$0xff]  ;;  %v4265_v13 = vld [vmem:[%s7174_s10 + $0x218] sm:$0xff]  ;;  %v4268_v14 = vld [vmem:[%s7174_s10 + $0x230] sm:$0xff] }
 0xaf9   : > { %v2234_v18 = vmul.f32 0.5, %v2230_v38  ;;  %v5231_v38 = vpack.c.bf16 %v4268_v14, %v4265_v13 }
 0xafa   : > { %2336 = vmatprep.mubr.f32.mxu0 %v2237_v39  ;;  %v2235_v23 = vmul.f32 0.5, %v2231_v15  ;;  %v4264_v39 = vld [vmem:[%s7174_s10 + $0x210] sm:$0xff]  ;;  %v4267_v15 = vld [vmem:[%s7174_s10 + $0x228] sm:$0xff] }
 0xafb   : > { %2337 = vmatmul.mubr.f32.vlgmr.msra.gmra.mrb[14].mxu0 %v2236_v16  ;;  %v2238_v25 = vmul.f32 %v2234_v18, %v2200_v46  ;;  %v5233_v16 = vpack.c.bf16 %v4267_v15, %v4264_v39  ;;  %v4260_v18 = vld [vmem:[%s7174_s10 + $0x1f0] sm:$0xff]  ;;  %v4244_v15 = vld [vmem:[%s7212_s30 + $0x1] ss:$0 sm:$0xff] }
 0xafc   : > { %v2239_v24 = vmul.f32 %v2235_v23, %v2202_v54  ;;  %v4255_v54 = vld [vmem:[%s7174_s10 + $0x1c8] sm:$0xff]  ;;  %5254 = vmatpush3.bf16.msra.mxu0 %v5251_v60  ;;  %v4289_v60 = vld [vmem:[%s7174_s10 + $0x2d8] sm:$0xff] }
 0xafd   : > { %v5225_v59 = vpack.c.bf16 %v4255_v54, %v4252_v53  ;;  %5256 = vmatprep.subr.bf16.mxu0 %v5255_v63  ;;  %v4263_v23 = vld [vmem:[%s7174_s10 + $0x208] sm:$0xff]  ;;  %v4282_v54 = vld [vmem:[%s7174_s10 + $0x2a0] sm:$0xff] }
 0xafe   : > { %2341 = vmatprep.mubr.f32.mxu0 %v2239_v24  ;;  %v5259_v24 = vpack.c.bf16 %v4263_v23, %v4260_v18  ;;  %v5245_v57 = vpack.c.bf16 %v4285_v56, %v4282_v54  ;;  %v4245_v18 = vld [vmem:[%s7171_s7 + $0x1] ss:$0 sm:$0xff] }
 0xaff   : > { %2342 = vmatmul.mubr.f32.gmra.mrb[16].mxu0 %v2238_v25  ;;  %v4271_v25 = vld [vmem:[%s7174_s10 + $0x248] sm:$0xff] }
 0xb00   : > { %5258 = vmatpush3.bf16.msra.mxu0 %v5255_v63  ;;  %v5249_v63 = vpack.c.bf16 %v4291_v49, %v4288_v62 }
 0xb01   : > { %5260 = vmatprep.subr.bf16.mxu0 %v5259_v24 }
 0xb04   : > { %5262 = vmatpush3.bf16.msra.mxu0 %v5259_v24 }
 0xbce   : > { %v4535_v42 = vpop.f32.mrb[14].mxu0 }
 0xbcf   : > { %v4536_v22 = vpop.f32.mrb[15].mxu0 }
 0xbd0   : > { %v4537_v26 = vadd.f32 %v4536_v22, %v4535_v42  ;;  %v4274_v42 = vld [vmem:[%s7174_s10 + $0x260] sm:$0xff] }
 0xbd1   : > { %v5235_v22 = vpack.c.bf16 %v4274_v42, %v4271_v25 }
 0xbd2   : > { %v2347_v28 = vadd.f32 %v4537_v26, %v6284_v12  ;;  %v4538_v29 = vpop.f32.mrb[16].mxu0  ;;  %v4250_v12 = vld [vmem:[%s7174_s10 + $0x1a0] sm:$0xff] }
 0xbd3   : > { %v4539_v30 = vpop.f32.mrb[17].mxu0  ;;  %v5219_v43 = vpack.c.bf16 %v4250_v12, %v4247_v37  ;;  %v4270_v26 = vld [vmem:[%s7174_s10 + $0x240] sm:$0xff]  ;;  %v4276_v12 = vld [vmem:[%s7174_s10 + $0x270] sm:$0xff] }
 0xbd4   : > { %v4540_v31 = vadd.f32 %v4539_v30, %v4538_v29  ;;  %v6501_v32 = vadd.f32 %v4241_v27, %v2347_v28  ;;  %v4266_v29 = vld [vmem:[%s7174_s10 + $0x220] sm:$0xff]  ;;  %v4269_v30 = vld [vmem:[%s7174_s10 + $0x238] sm:$0xff] }
 0xbd5   : > { %5220 = vmatprep.subr.bf16.mxu1 %v5219_v43 }
 0xbd6   : > { %v2348_v33 = vadd.f32 %v4540_v31, %v6282_v11  ;;  %2362 = vadd.xlane.f32.xlu1 %v6501_v32  ;;  %v4246_v11 = vld [vmem:[%s7174_s10 + $0x180] sm:$0xff]  ;;  %v5263_v31 = vpack.c.bf16 %v4269_v30, %v4266_v29 }
 0xbd7   : > { %v5221_v46 = vpack.c.bf16 %v4249_v40, %v4246_v11  ;;  %v4279_v11 = vld [vmem:[%s7174_s10 + $0x288] sm:$0xff]  ;;  %v4272_v40 = vld [vmem:[%s7174_s10 + $0x250] sm:$0xff] }
 0xbd8   : > { %v6505_v34 = vadd.f32 %v4241_v27, %v2348_v33  ;;  %v4273_v27 = vld [vmem:[%s7174_s10 + $0x258] sm:$0xff]  ;;  %5264 = vmatprep.subr.bf16.mxu0 %v5263_v31  ;;  %v5241_v43 = vpack.c.bf16 %v4279_v11, %v4276_v12  ;;  %v5267_v45 = vpack.c.bf16 %v4275_v44, %v4272_v40 }
 0xbd9   : > { %5222 = vmatpush1.bf16.msra.mxu1 %v5221_v46  ;;  %v5237_v28 = vpack.c.bf16 %v4273_v27, %v4270_v26  ;;  %v4277_v33 = vld [vmem:[%s7174_s10 + $0x278] sm:$0xff]  ;;  %5266 = vmatpush3.bf16.msra.mxu0 %v5263_v31  ;;  %v4283_v46 = vld [vmem:[%s7174_s10 + $0x2a8] sm:$0xff] }
 0xbda   : > { %v2364_v36 = vsel %vm816_vm1, %v6505_v34, 0.0  ;;  %5224 = vmatprep.subr.bf16.mxu1 %v5223_v51  ;;  %v4286_v51 = vld [vmem:[%s7174_s10 + $0x2c0] sm:$0xff]  ;;  %5268 = vmatprep.subr.bf16.mxu0 %v5267_v45 }
 0xbdb   : > { %2365 = vadd.xlane.f32.xlu0 %v2364_v36  ;;  %v4280_v36 = vld [vmem:[%s7174_s10 + $0x290] sm:$0xff]  ;;  %v5243_v53 = vpack.c.bf16 %v4286_v51, %v4283_v46 }
 0xbdc   : > { %v5239_v37 = vpack.c.bf16 %v4280_v36, %v4277_v33 }
 0xbdd   : > { %5226 = vmatpush1.bf16.msra.mxu1 %v5225_v59  ;;  %5270 = vmatpush3.bf16.msra.mxu0 %v5267_v45  ;;  %v5271_v59 = vpack.c.bf16 %v4281_v21, %v4278_v58 }
 0xbde   : > { %5228 = vmatprep.subr.bf16.mxu1 %v5227_v61  ;;  %v5247_v61 = vpack.c.bf16 %v4292_v8, %v4289_v60 }
 0xbdf   : > { %5272 = vmatprep.subr.bf16.mxu0 %v5271_v59 }
 0xbe1   : > { %5230 = vmatpush1.bf16.msra.mxu1 %v5229_v0  ;;  %5274 = vmatpush3.bf16.msra.mxu0 %v5271_v59  ;;  %v4287_v0 = vld [vmem:[%s7174_s10 + $0x2c8] sm:$0xff] }
 0xbe2   : > { %5232 = vmatprep.subr.bf16.mxu1 %v5231_v38 }
 0xbe5   : > { %5234 = vmatpush1.bf16.msra.mxu1 %v5233_v16 }
 0xbe6   : > { %5236 = vmatprep.subr.bf16.mxu1 %v5235_v22 }
 0xbe9   : > { %5238 = vmatpush1.bf16.msra.mxu1 %v5237_v28 }
 0xbea   : > { %5240 = vmatprep.subr.bf16.mxu1 %v5239_v37 }
 0xbed   : > { %5242 = vmatpush1.bf16.msra.mxu1 %v5241_v43 }
 0xbee   : > { %5244 = vmatprep.subr.bf16.mxu1 %v5243_v53 }
 0xbf1   : > { %5246 = vmatpush1.bf16.msra.mxu1 %v5245_v57 }
 0xbf2   : > { %5248 = vmatprep.subr.bf16.mxu1 %v5247_v61 }
 0xbf5   : > { %5250 = vmatpush1.bf16.msra.mxu1 %v5249_v63 }
 0xc63   : > { %v2363_v1 = vpop.xlane.xlu1 %2362 }
 0xc64   : > { %v2367_v2 = vmul.f32 0.0078125, %v2363_v1  ;;  %v5275_v1 = vpack.c.bf16 %v4287_v0, %v4284_v50 }
 0xc66   : > { %v6558_v4 = vsub.f32 %v6501_v32, %v2367_v2  ;;  %5276 = vmatprep.subr.bf16.mxu0 %v5275_v1  ;;  %v4290_v2 = vld [vmem:[%s7174_s10 + $0x2e0] sm:$0xff] }
 0xc67   : > { %5278 = vmatpush3.bf16.msra.mxu0 %v5275_v1 }
 0xc68   : > { %v2366_v5 = vpop.xlane.xlu0 %2365  ;;  %v2371_v47 = vmul.f32 %v6558_v4, %v6558_v4 }
 0xc69   : > { %v2368_v48 = vmul.f32 0.0078125, %v2366_v5  ;;  %v4293_v5 = vld [vmem:[%s7174_s10 + $0x2f8] sm:$0xff] }
 0xc6a   : > { %2373 = vadd.xlane.f32.xlu1 %v2371_v47  ;;  %v5279_v47 = vpack.c.bf16 %v4293_v5, %v4290_v2 }
 0xc6b   : > { %v6563_v7 = vsub.f32 %v6505_v34, %v2368_v48 }
 0xc6c   : > { %5280 = vmatprep.subr.bf16.mxu0 %v5279_v47 }
 0xc6d   : > { %v2372_v9 = vmul.f32 %v6563_v7, %v6563_v7  ;;  %5282 = vmatpush3.bf16.msra.mxu0 %v5279_v47 }
 0xc6f   : > { %v2375_v10 = vsel %vm816_vm1, %v2372_v9, 0.0 }
 0xc70   : > { %2376 = vadd.xlane.f32.xlu0 %v2375_v10 }
 0xcf7   : > { %v2374_v48 = vpop.xlane.xlu1 %2373 }
 0xcf8   : > { %v2378_v9 = vmul.f32 0.0078125, %v2374_v48 }
 0xcfa   : > { %v2380_v10 = vadd.f32 1e-05, %v2378_v9 }
 0xcfc   : > { %5616 = vrsqrt.f32 %v2380_v10 }
 0xcfd   : > { %v2377_v13 = vpop.xlane.xlu0 %2376 }
 0xcfe   : > { %v2379_v14 = vmul.f32 0.0078125, %v2377_v13 }
 0xd00   : > { %v2381_v38 = vadd.f32 1e-05, %v2379_v14 }
 0xd02   : > { %5618 = vrsqrt.f32 %v2381_v38 }
 0xd06   : > { %v5617_v39 = vpop.eup %5616 }
 0xd07   : > { %v2384_v16 = vmul.f32 %v5617_v39, %v6558_v4  ;;  %v4294_v4 = vld [vmem:[%s7175_s11 + $0x3] sm:$0x7] }
 0xd08   : > { %v2457_v27 = vrot.slane %v4294_v4, %v6062_v3  ;;  %v2461_v31 = vrot.slane %v4294_v4, %v6070_v20 }
 0xd09   : > { %v2392_v23 = vmul.f32 %v4244_v15, %v2384_v16 }
 0xd0b   : > { %v2400_v24 = vadd.f32 %v4245_v18, %v2392_v23 }
 0xd0c   : > { %v5619_v25 = vpop.eup %5618 }
 0xd0d   : > { %2534 = vmatmul.mubr.f32.vlgmr.msra.gmra.mrb[16].mxu1 %v2400_v24  ;;  %4858 = vmatprep.mubr.f32.mxu0 %v2400_v24  ;;  %v2385_v42 = vmul.f32 %v5619_v25, %v6563_v7  ;;  %v2465_v7 = vrot.slane %v4294_v4, %v934_v19 }
 0xd0e   : > { %2539 = vmatprep.mubr.f32.mxu1 %v5686_v6 }
 0xd0f   : > { %v2393_v22 = vmul.f32 %v4244_v15, %v2385_v42 }
 0xd11   : > { %v2401_v26 = vadd.f32 %v4245_v18, %v2393_v22 }
 0xd13   : > { %2540 = vmatmul.mubr.f32.gmra.mrb[18].mxu1 %v2401_v26  ;;  %4859 = vmatmul.mubr.f32.vlgmr.msra.gmra.mrb[18].mxu0 %v2401_v26 }
 0xde0   : > { %v2535_v28 = vpop.f32.mrb[16].mxu1 }
 0xde1   : > { %v6677_v29 = vadd.f32 %v2535_v28, %v2457_v27  ;;  %v2537_v30 = vpop.f32.mrb[17].mxu1 }
 0xde2   : > { %v2538_v43 = vadd.f32 %v2537_v30, %v2461_v31 }
 0xde3   : > { %4865 = vmatprep.mubr.msk.f32.mxu1 %vm1091_vm2, %v6677_v29 }
 0xde6   : > { %v2541_v33 = vpop.f32.mrb[18].mxu1  ;;  %v4860_v36 = vpop.f32.mrb[18].mxu0 }
 0xde7   : > { %v2618_v37 = vadd.f32 %v4860_v36, %v2465_v7  ;;  %v2543_v12 = vpop.f32.mrb[19].mxu1  ;;  %v2612_v11 = vpop.f32.mrb[19].mxu0  ;;  %v2542_v17 = vadd.f32 %v2541_v33, %v2457_v27 }
 0xde8   : > { %v2544_v40 = vadd.f32 %v2543_v12, %v2461_v31  ;;  %v2613_v44 = vadd.f32 %v2612_v11, %v2465_v7 }
 0xdea   : > { %v5283_v45 = vpack.c.bf16 %v2544_v40, %v2538_v43  ;;  %v5289_v46 = vpack.c.bf16 %v2618_v37, %v2613_v44  ;;  %v5523_v51 = vpack.i.bf16 %v2544_v40, %v2538_v43  ;;  %v6684_v53 = vpack.i.bf16 %v2618_v37, %v2613_v44 }
 0xdec   : > { %5285 = vmatprep.subr.msk.bf16.mxu1 %vm6084_vm3, %v5283_v45 }
 0xded   : > { %5288 = vmatpush3.bf16.xpose.msk.msra.mxu1 %vm6084_vm3, %v5283_v45 }
 0xdee   : > { %5291 = vmatprep.subr.msk.bf16.mxu1 %vm6089_vm5, %v5289_v46 }
 0xdf4   : > { %4866 = vmatmul.mubr.msk.f32.vlgmr.msra.gmra.mrb[20].mxu1 %vm1091_vm2, %v2542_v17 }
 0xdf5   : > { %5294 = vmatpush3.bf16.msk.msra.mxu1 %vm6089_vm5, %v5289_v46 }
 0xec7   : > { %v4867_v19 = vpop.f32.mrb[20].mxu1 }
 0xec8   : > { %v2709_v54 = vmul.f32 0.17677669, %v4867_v19  ;;  %v2699_v56 = vpop.f32.mrb[21].mxu1 }
 0xec9   : > { %v2708_v57 = vmul.f32 0.17677669, %v2699_v56 }
 0xeca   : > { %v2711_v58 = vsel %vm6112_vm6, %v2709_v54, -1e+30 }
 0xecb   : > { %v2715_v21 = vsel %vm1187_vm7, %v2711_v58, -inf  ;;  %v2710_v59 = vsel %vm6117_vm8, %v2708_v57, -1e+30 }
 0xecc   : > { %2716 = vmax.xlane.f32.xlu0 %v2715_v21  ;;  %v2712_v60 = vsel %vm1183_vm9, %v2710_v59, -inf }
 0xecd   : > { %2713 = vmax.xlane.f32.xlu1 %v2712_v60 }
 0xede   : > { %5524 = vrot.lane.b32.xlu1 %v5523_v51, %s7222_s29 }
 0xee2   : > { %2818 = vrot.lane.b32.xlu0 %v6677_v29, %s7222_s29  ;;  %2820 = vrot.lane.b32.xlu1 %v2542_v17, %s7222_s29 }
 0xee6   : > { %5534 = vrot.lane.b32.xlu1 %v5523_v51, %s7221_s27 }
 0xf59   : > { %v2717_v8 = vpop.xlane.xlu0 %2716 }
 0xf5a   : > { %v2719_v61 = vsub.f32 %v2711_v58, %v2717_v8  ;;  %v2714_v62 = vpop.xlane.xlu1 %2713 }
 0xf5b   : > { %v2718_v49 = vsub.f32 %v2710_v59, %v2714_v62 }
 0xf5c   : > { %v2722_v50 = vmul.f32 1.442695, %v2719_v61 }
 0xf5d   : > { %v2720_v63 = vmul.f32 1.442695, %v2718_v49  ;;  %v2819_v9 = vpop.permute.xlu0 %2818 }
 0xf5e   : > { %v5525_v0 = vpop.permute.xlu1 %5524 }
 0xf5f   : > { %5620 = vpow2.f32 %v2720_v63  ;;  %v5527_v1 = vunpack.i.h.bf16 %v5525_v0  ;;  %v5526_v2 = vunpack.i.l.bf16 %v5525_v0 }
 0xf60   : > { %5622 = vpow2.f32 %v2722_v50 }
 0xf61   : > { %v5295_v5 = vpack.c.bf16 %v5527_v1, %v5526_v2 }
 0xf62   : > { %v2821_v10 = vpop.permute.xlu1 %2820 }
 0xf63   : > { %5297 = vmatprep.subr.msk.bf16.mxu1 %vm6084_vm3, %v5295_v5 }
 0xf66   : > { %v5535_v42 = vpop.permute.xlu1 %5534 }
 0xf67   : > { %v5537_v31 = vunpack.i.h.bf16 %v5535_v42  ;;  %v5536_v33 = vunpack.i.l.bf16 %v5535_v42 }
 0xf69   : > { %v6708_v47 = vpop.eup %5620  ;;  %v5307_v11 = vpack.c.bf16 %v5537_v31, %v5536_v33 }
 0xf6a   : > { %v6710_v48 = vpop.eup %5622  ;;  %4872 = vmatprep.mubr.msk.f32.mxu1 %vm1183_vm9, %v6708_v47  ;;  %v2724_v41 = vsel %vm1183_vm9, %v6708_v47, 0.0  ;;  %v4324_v47 = vld [vmem:[%s7176_s12 + $0x88] sm:$0xff] }
 0xf6b   : > { %4873 = vmatmul.mubr.msk.f32.vlgmr.msra.gmra.mrb[22].mxu1 %vm1183_vm9, %v6710_v48 }
 0xf6c   : > { %5300 = vmatpush3.bf16.xpose.msk.msra.mxu1 %vm6084_vm3, %v5295_v5  ;;  %4879 = vmatprep.mubr.msk.f32.mxu1 %vm1091_vm2, %v2819_v9 }
 0xf73   : > { %4880 = vmatmul.mubr.msk.f32.vlgmr.msra.gmra.mrb[24].mxu1 %vm1091_vm2, %v2821_v10 }
0x103e   : > { %v6720_v13 = vpop.f32.mrb[22].mxu1 }
0x103f   : > { %v6722_v14 = vpop.f32.mrb[23].mxu1 }
0x1046   : > { %v4881_v38 = vpop.f32.mrb[24].mxu1 }
0x1047   : > { %v2910_v39 = vmul.f32 0.17677669, %v4881_v38  ;;  %v2900_v15 = vpop.f32.mrb[25].mxu1 }
0x1048   : > { %v2909_v16 = vmul.f32 0.17677669, %v2900_v15 }
0x1049   : > { %v2912_v18 = vsel %vm6112_vm6, %v2910_v39, -1e+30 }
0x104a   : > { %v2916_v23 = vsel %vm1187_vm7, %v2912_v18, -inf  ;;  %v2911_v24 = vsel %vm6117_vm8, %v2909_v16, -1e+30 }
0x104b   : > { %2917 = vmax.xlane.f32.xlu0 %v2916_v23  ;;  %v2913_v25 = vsel %vm1183_vm9, %v2911_v24, -inf }
0x104c   : > { %2914 = vmax.xlane.f32.xlu1 %v2913_v25 }
0x105d   : > { %5539 = vrot.lane.b32.xlu1 %v5523_v51, %s7223_s4 }
0x1061   : > { %5529 = vrot.lane.b32.xlu0 %v6684_v53, %s7222_s29  ;;  %3024 = vrot.lane.b32.xlu1 %v6677_v29, %s7221_s27 }
0x1065   : > { %3026 = vrot.lane.b32.xlu0 %v2542_v17, %s7221_s27  ;;  %3229 = vrot.lane.b32.xlu1 %v6677_v29, %s7223_s4 }
0x1069   : > { %3231 = vrot.lane.b32.xlu0 %v2542_v17, %s7223_s4 }
0x10d8   : > { %v2918_v22 = vpop.xlane.xlu0 %2917 }
0x10d9   : > { %v2920_v26 = vsub.f32 %v2912_v18, %v2918_v22  ;;  %v2915_v4 = vpop.xlane.xlu1 %2914 }
0x10da   : > { %v2919_v27 = vsub.f32 %v2911_v24, %v2915_v4 }
0x10db   : > { %v2923_v28 = vmul.f32 1.442695, %v2920_v26 }
0x10dc   : > { %v2921_v30 = vmul.f32 1.442695, %v2919_v27  ;;  %v5530_v7 = vpop.permute.xlu0 %5529 }
0x10dd   : > { %v5532_v36 = vunpack.i.h.bf16 %v5530_v7  ;;  %v5531_v37 = vunpack.i.l.bf16 %v5530_v7  ;;  %v5540_v29 = vpop.permute.xlu1 %5539 }
0x10de   : > { %5624 = vpow2.f32 %v2921_v30  ;;  %v5542_v43 = vunpack.i.h.bf16 %v5540_v29  ;;  %v5541_v40 = vunpack.i.l.bf16 %v5540_v29 }
0x10df   : > { %5626 = vpow2.f32 %v2923_v28  ;;  %v5301_v12 = vpack.c.bf16 %v5532_v36, %v5531_v37 }
0x10e0   : > { %v5319_v46 = vpack.c.bf16 %v5542_v43, %v5541_v40  ;;  %v3027_v17 = vpop.permute.xlu0 %3026 }
0x10e1   : > { %5303 = vmatprep.subr.msk.bf16.mxu1 %vm6089_vm5, %v5301_v12  ;;  %v3025_v51 = vpop.permute.xlu1 %3024 }
0x10e2   : > { %5306 = vmatpush3.bf16.msk.msra.mxu1 %vm6089_vm5, %v5301_v12 }
0x10e3   : > { %5309 = vmatprep.subr.msk.bf16.mxu1 %vm6084_vm3, %v5307_v11 }
0x10e4   : > { %v3232_v54 = vpop.permute.xlu0 %3231 }
0x10e5   : > { %v3230_v19 = vpop.permute.xlu1 %3229 }
0x10e8   : > { %v5625_v44 = vpop.eup %5624 }
0x10e9   : > { %v5627_v45 = vpop.eup %5626  ;;  %4886 = vmatprep.mubr.msk.f32.mxu1 %vm1183_vm9, %v5625_v44  ;;  %v2925_v10 = vsel %vm1183_vm9, %v5625_v44, 0.0  ;;  %v2727_v44 = vsel %vm1187_vm7, %v6710_v48, 0.0 }
0x10ea   : > { %4887 = vmatmul.mubr.msk.f32.vlgmr.msra.gmra.mrb[26].mxu1 %vm1183_vm9, %v5627_v45  ;;  %v2928_v52 = vsel %vm1187_vm7, %v5627_v45, 0.0 }
0x10eb   : > { %5312 = vmatpush3.bf16.xpose.msk.msra.mxu1 %vm6084_vm3, %v5307_v11  ;;  %4893 = vmatprep.mubr.msk.f32.mxu1 %vm1091_vm2, %v3025_v51 }
0x10ec   : > { %5321 = vmatprep.subr.msk.bf16.mxu1 %vm6084_vm3, %v5319_v46 }
0x10f2   : > { %4894 = vmatmul.mubr.msk.f32.vlgmr.msra.gmra.mrb[28].mxu1 %vm1091_vm2, %v3027_v17 }
0x10f3   : > { %5324 = vmatpush3.bf16.xpose.msk.msra.mxu1 %vm6084_vm3, %v5319_v46  ;;  %4907 = vmatprep.mubr.msk.f32.mxu1 %vm1091_vm2, %v3230_v19 }
0x10fa   : > { %4908 = vmatmul.mubr.msk.f32.vlgmr.msra.gmra.mrb[30].mxu1 %vm1091_vm2, %v3232_v54 }
0x10fb   : > { %3722 = vmatprep.mubr.f32.mxu1 %v5686_v6 }
0x11bd   : > { %v6758_v56 = vpop.f32.mrb[26].mxu1 }
0x11be   : > { %v6760_v57 = vpop.f32.mrb[27].mxu1 }
0x11c5   : > { %v4895_v58 = vpop.f32.mrb[28].mxu1 }
0x11c6   : > { %v3116_v21 = vmul.f32 0.17677669, %v4895_v58  ;;  %v3106_v59 = vpop.f32.mrb[29].mxu1 }
0x11c7   : > { %v3115_v60 = vmul.f32 0.17677669, %v3106_v59  ;;  %v4325_v59 = vld [vmem:[%s7176_s12 + $0x90] sm:$0xff] }
0x11c8   : > { %v3118_v8 = vsel %vm6112_vm6, %v3116_v21, -1e+30  ;;  %v4323_v21 = vld [vmem:[%s7176_s12 + $0x80] sm:$0xff] }
0x11c9   : > { %v3122_v35 = vsel %vm1187_vm7, %v3118_v8, -inf  ;;  %v3117_v61 = vsel %vm6117_vm8, %v3115_v60, -1e+30  ;;  %v5331_v60 = vpack.c.bf16 %v4324_v47, %v4323_v21 }
0x11ca   : > { %3123 = vmax.xlane.f32.xlu0 %v3122_v35  ;;  %v3119_v62 = vsel %vm1183_vm9, %v3117_v61, -inf  ;;  %v4328_v35 = vld [vmem:[%s7176_s12 + $0xa8] sm:$0xff] }
0x11cb   : > { %3120 = vmax.xlane.f32.xlu1 %v3119_v62  ;;  %v4329_v62 = vld [vmem:[%s7176_s12 + $0xb0] sm:$0xff] }
0x11cd   : > { %v4909_v49 = vpop.f32.mrb[30].mxu1 }
0x11ce   : > { %v3321_v50 = vmul.f32 0.17677669, %v4909_v49  ;;  %v3311_v63 = vpop.f32.mrb[31].mxu1  ;;  %v4330_v49 = vld [vmem:[%s7176_s12 + $0xb8] sm:$0xff] }
0x11cf   : > { %v3320_v0 = vmul.f32 0.17677669, %v3311_v63 }
0x11d0   : > { %v3323_v1 = vsel %vm6112_vm6, %v3321_v50, -1e+30  ;;  %v5343_v50 = vpack.c.bf16 %v4330_v49, %v4329_v62 }
0x11d1   : > { %v3327_v2 = vsel %vm1187_vm7, %v3323_v1, -inf  ;;  %v3322_v5 = vsel %vm6117_vm8, %v3320_v0, -1e+30 }
0x11d2   : > { %3328 = vmax.xlane.f32.xlu0 %v3327_v2  ;;  %v3324_v9 = vsel %vm1183_vm9, %v3322_v5, -inf  ;;  %v4332_v2 = vld [vmem:[%s7176_s12 + $0xc8] sm:$0xff] }
0x11d6   : > { %3325 = vmax.xlane.f32.xlu0 %v3324_v9  ;;  %v4333_v9 = vld [vmem:[%s7176_s12 + $0xd0] sm:$0xff] }
0x11dc   : > { %5544 = vrot.lane.b32.xlu1 %v6684_v53, %s7221_s27 }
0x11ec   : > { %5549 = vrot.lane.b32.xlu0 %v6684_v53, %s7223_s4 }
0x1200   : > { %2926 = vadd.xlane.f32.xlu1 %v2925_v10  ;;  %v4334_v10 = vld [vmem:[%s7176_s12 + $0xd8] sm:$0xff] }
0x120b   : > { %2929 = vadd.xlane.f32.xlu0 %v2928_v52  ;;  %v4335_v52 = vld [vmem:[%s7176_s12 + $0xe0] sm:$0xff] }
0x1257   : > { %v3124_v38 = vpop.xlane.xlu0 %3123 }
0x1258   : > { %v3126_v39 = vsub.f32 %v3118_v8, %v3124_v38  ;;  %v3121_v15 = vpop.xlane.xlu1 %3120  ;;  %v4327_v8 = vld [vmem:[%s7176_s12 + $0xa0] sm:$0xff]  ;;  %v5351_v38 = vpack.c.bf16 %v4334_v10, %v4333_v9 }
0x1259   : > { %v3125_v55 = vsub.f32 %v3117_v61, %v3121_v15  ;;  %v5339_v61 = vpack.c.bf16 %v4328_v35, %v4327_v8 }
0x125a   : > { %v3129_v16 = vmul.f32 1.442695, %v3126_v39  ;;  %v4336_v39 = vld [vmem:[%s7176_s12 + $0xe8] sm:$0xff] }
0x125b   : > { %v3127_v18 = vmul.f32 1.442695, %v3125_v55  ;;  %v5355_v15 = vpack.c.bf16 %v4336_v39, %v4335_v52  ;;  %v4349_v52 = vld [vmem:[%s7178_s14 + $0x120] sm:$0xff]  ;;  %v4354_v39 = vld [vmem:[%s7178_s14 + $0x148] sm:$0xff] }
0x125c   : > { %5628 = vpow2.f32 %v3129_v16  ;;  %v5545_v23 = vpop.permute.xlu1 %5544 }
0x125d   : > { %5630 = vpow2.f32 %v3127_v18  ;;  %v5547_v24 = vunpack.i.h.bf16 %v5545_v23  ;;  %v5546_v25 = vunpack.i.l.bf16 %v5545_v23 }
0x125f   : > { %v5313_v42 = vpack.c.bf16 %v5547_v24, %v5546_v25  ;;  %v3329_v22 = vpop.xlane.xlu0 %3328 }
0x1260   : > { %v3331_v53 = vsub.f32 %v3323_v1, %v3329_v22  ;;  %v4331_v1 = vld [vmem:[%s7176_s12 + $0xc0] sm:$0xff] }
0x1261   : > { %5315 = vmatprep.subr.msk.bf16.mxu0 %vm6089_vm5, %v5313_v42 }
0x1262   : > { %v3334_v26 = vmul.f32 1.442695, %v3331_v53  ;;  %5318 = vmatpush3.bf16.msk.msra.mxu0 %vm6089_vm5, %v5313_v42  ;;  %v4337_v53 = vld [vmem:[%s7176_s12 + $0xf0] sm:$0xff] }
0x1263   : > { %v3326_v4 = vpop.xlane.xlu0 %3325 }
0x1264   : > { %5632 = vpow2.f32 %v3334_v26  ;;  %v3330_v27 = vsub.f32 %v3322_v5, %v3326_v4  ;;  %v5347_v5 = vpack.c.bf16 %v4332_v2, %v4331_v1  ;;  %v4338_v26 = vld [vmem:[%s7176_s12 + $0xf8] sm:$0xff]  ;;  %v4347_v1 = vld [vmem:[%s7178_s14 + $0x110] sm:$0xff]  ;;  %v4350_v2 = vld [vmem:[%s7178_s14 + $0x128] sm:$0xff] }
0x1265   : > { %v5359_v4 = vpack.c.bf16 %v4338_v26, %v4337_v53 }
0x1266   : > { %v5629_v28 = vpop.eup %5628  ;;  %v3332_v30 = vmul.f32 1.442695, %v3330_v27 }
0x1267   : > { %v5631_v7 = vpop.eup %5630  ;;  %v5550_v31 = vpop.permute.xlu0 %5549  ;;  %v3134_v33 = vsel %vm1187_vm7, %v5629_v28, 0.0 }
0x1268   : > { %5634 = vpow2.f32 %v3332_v30  ;;  %v5552_v36 = vunpack.i.h.bf16 %v5550_v31  ;;  %v5551_v37 = vunpack.i.l.bf16 %v5550_v31  ;;  %4900 = vmatprep.mubr.msk.f32.mxu0 %vm1183_vm9, %v5631_v7  ;;  %3135 = vadd.xlane.f32.xlu0 %v3134_v33  ;;  %v3131_v12 = vsel %vm1183_vm9, %v5631_v7, 0.0 }
0x1269   : > { %3132 = vadd.xlane.f32.xlu1 %v3131_v12  ;;  %4901 = vmatmul.mubr.msk.f32.vlgmr.msra.gmra.mrb[20].mxu0 %vm1183_vm9, %v5629_v28 }
0x126a   : > { %v5325_v11 = vpack.c.bf16 %v5552_v36, %v5551_v37 }
0x126c   : > { %5327 = vmatprep.subr.msk.bf16.mxu0 %vm6089_vm5, %v5325_v11 }
0x126d   : > { %5330 = vmatpush3.bf16.msk.msra.mxu0 %vm6089_vm5, %v5325_v11 }
0x126e   : > { %v5633_v29 = vpop.eup %5632  ;;  %5332 = vmatprep.subr.bf16.mxu0 %v5331_v60 }
0x126f   : > { %v3339_v43 = vsel %vm1187_vm7, %v5633_v29, 0.0 }
0x1270   : > { %3340 = vadd.xlane.f32.xlu0 %v3339_v43 }
0x1272   : > { %v5635_v40 = vpop.eup %5634 }
0x1273   : > { %4914 = vmatprep.mubr.msk.f32.mxu0 %vm1183_vm9, %v5635_v40  ;;  %v3336_v45 = vsel %vm1183_vm9, %v5635_v40, 0.0 }
0x1274   : > { %2728 = vadd.xlane.f32.xlu0 %v2727_v44  ;;  %3337 = vadd.xlane.f32.xlu1 %v3336_v45 }
0x1275   : > { %4915 = vmatmul.mubr.msk.f32.vlgmr.msra.gmra.mrb[22].mxu0 %vm1183_vm9, %v5633_v29 }
0x1276   : > { %5334 = vmatpush3.bf16.msra.mxu0 %v5331_v60 }
0x1278   : > { %2725 = vadd.xlane.f32.xlu1 %v2724_v41 }
0x128d   : > { %v2927_v46 = vpop.xlane.xlu1 %2926 }
0x128e   : > { %5636 = vrcp.f32 %v2927_v46 }
0x1298   : > { %v2930_v51 = vpop.xlane.xlu0 %2929  ;;  %v5637_v17 = vpop.eup %5636 }
0x1299   : > { %5638 = vrcp.f32 %v2930_v51  ;;  %v3022_v54 = vmul.f32 %v5637_v17, %v6760_v57 }
0x12a3   : > { %v5639_v19 = vpop.eup %5638 }
0x12a4   : > { %v3023_v48 = vmul.f32 %v5639_v19, %v6758_v56  ;;  %v4326_v56 = vld [vmem:[%s7176_s12 + $0x98] sm:$0xff] }
0x12a5   : > { %v5335_v57 = vpack.c.bf16 %v4326_v56, %v4325_v59 }
0x12a6   : > { %v5553_v58 = vpack.i.bf16 %v3023_v48, %v3022_v54 }
0x12a7   : > { %5336 = vmatprep.subr.bf16.mxu0 %v5335_v57 }
0x12a8   : > { %5554 = vrot.lane.b32.xlu1 %v5553_v58, %s7223_s4  ;;  %5338 = vmatpush3.bf16.msra.mxu0 %v5335_v57 }
0x12a9   : > { %5340 = vmatprep.subr.bf16.mxu0 %v5339_v61 }
0x12ac   : > { %5342 = vmatpush3.bf16.msra.mxu0 %v5339_v61 }
0x12ad   : > { %5344 = vmatprep.subr.bf16.mxu0 %v5343_v50 }
0x12b0   : > { %5346 = vmatpush3.bf16.msra.mxu0 %v5343_v50 }
0x12b1   : > { %5348 = vmatprep.subr.bf16.mxu0 %v5347_v5 }
0x12b4   : > { %5350 = vmatpush3.bf16.msra.mxu0 %v5347_v5  ;;  %v4352_v5 = vld [vmem:[%s7178_s14 + $0x138] sm:$0xff] }
0x12b5   : > { %5352 = vmatprep.subr.bf16.mxu0 %v5351_v38  ;;  %v5367_v10 = vpack.c.bf16 %v4352_v5, %v4350_v2  ;;  %v4343_v2 = vld [vmem:[%s7172_s8 + $0x1] ss:$0 sm:$0xff] }
0x12b8   : > { %5354 = vmatpush3.bf16.msra.mxu0 %v5351_v38  ;;  %v4351_v38 = vld [vmem:[%s7178_s14 + $0x130] sm:$0xff] }
0x12b9   : > { %5356 = vmatprep.subr.bf16.mxu0 %v5355_v15 }
0x12bc   : > { %5358 = vmatpush3.bf16.msra.mxu0 %v5355_v15  ;;  %v4356_v15 = vld [vmem:[%s7178_s14 + $0x158] sm:$0xff] }
0x12bd   : > { %5360 = vmatprep.subr.bf16.mxu0 %v5359_v4 }
0x12c0   : > { %5362 = vmatpush3.bf16.msra.mxu0 %v5359_v4 }
0x12f5   : > { %v3136_v63 = vpop.xlane.xlu0 %3135 }
0x12f6   : > { %v3133_v0 = vpop.xlane.xlu1 %3132  ;;  %5640 = vrcp.f32 %v3136_v63  ;;  %v4346_v63 = vld [vmem:[%s7178_s14 + $0x108] sm:$0xff] }
0x12f7   : > { %5642 = vrcp.f32 %v3133_v0 }
0x12fd   : > { %v3341_v55 = vpop.xlane.xlu0 %3340 }
0x12fe   : > { %5644 = vrcp.f32 %v3341_v55  ;;  %v5369_v55 = vpack.c.bf16 %v4351_v38, %v4349_v52 }
0x1300   : > { %v5641_v16 = vpop.eup %5640 }
0x1301   : > { %v3338_v18 = vpop.xlane.xlu1 %3337  ;;  %v5643_v24 = vpop.eup %5642 }
0x1302   : > { %5646 = vrcp.f32 %v3338_v18  ;;  %v2729_v12 = vpop.xlane.xlu0 %2728  ;;  %v4353_v18 = vld [vmem:[%s7178_s14 + $0x140] sm:$0xff] }
0x1303   : > { %5648 = vrcp.f32 %v2729_v12 }
0x1305   : > { %v2726_v11 = vpop.xlane.xlu1 %2725 }
0x1306   : > { %5650 = vrcp.f32 %v2726_v11  ;;  %v4362_v11 = vld [vmem:[%s7178_s14 + $0x188] sm:$0xff] }
0x1308   : > { %v5645_v28 = vpop.eup %5644 }
0x130c   : > { %v5647_v7 = vpop.eup %5646 }
0x130d   : > { %v5649_v43 = vpop.eup %5648 }
0x130e   : > { %v2817_v17 = vmul.f32 %v5649_v43, %v6720_v13 }
0x1310   : > { %v5651_v44 = vpop.eup %5650 }
0x1311   : > { %v2816_v19 = vmul.f32 %v5651_v44, %v6722_v14  ;;  %v4340_v14 = vld [vmem:[%s7177_s13 + $0x1] ss:$0 sm:$0xff]  ;;  %v4363_v44 = vld [vmem:[%s7178_s14 + $0x190] sm:$0xff] }
0x131a   : > { %v5555_v29 = vpop.permute.xlu1 %5554 }
0x131b   : > { %v5557_v45 = vunpack.i.h.bf16 %v5555_v29  ;;  %v5556_v41 = vunpack.i.l.bf16 %v5555_v29  ;;  %v4364_v29 = vld [vmem:[%s7178_s14 + $0x198] sm:$0xff] }
0x131c   : > { %v5379_v43 = vpack.c.bf16 %v4364_v29, %v4362_v11  ;;  %v4384_v29 = vld [vmem:[%s7180_s16 + $0x130] sm:$0xff] }
0x131d   : > { %v3459_v48 = vsel %vm1091_vm2, %v2817_v17, %v5557_v45  ;;  %v3458_v47 = vsel %vm1091_vm2, %v2816_v19, %v5556_v41  ;;  %v4366_v41 = vld [vmem:[%s7178_s14 + $0x1a8] sm:$0xff]  ;;  %v4367_v19 = vld [vmem:[%s7178_s14 + $0x1b0] sm:$0xff] }
0x133c   : > { %v4902_v23 = vpop.f32.mrb[20].mxu0 }
0x133d   : > { %v3228_v25 = vmul.f32 %v5641_v16, %v4902_v23  ;;  %v3218_v42 = vpop.f32.mrb[21].mxu0  ;;  %v5371_v16 = vpack.c.bf16 %v4356_v15, %v4354_v39  ;;  %v4355_v23 = vld [vmem:[%s7178_s14 + $0x150] sm:$0xff] }
0x133e   : > { %v3227_v22 = vmul.f32 %v5643_v24, %v3218_v42  ;;  %v5373_v24 = vpack.c.bf16 %v4355_v23, %v4353_v18  ;;  %v4395_v18 = vld [vmem:[%s7180_s16 + $0x188] sm:$0xff] }
0x1340   : > { %v5558_v27 = vpack.i.bf16 %v3228_v25, %v3227_v22 }
0x1342   : > { %5559 = vrot.lane.b32.xlu0 %v5558_v27, %s7221_s27 }
0x1348   : > { %v4916_v30 = vpop.f32.mrb[22].mxu0 }
0x1349   : > { %v3433_v31 = vmul.f32 %v5645_v28, %v4916_v30  ;;  %v3423_v33 = vpop.f32.mrb[23].mxu0 }
0x134a   : > { %v3432_v36 = vmul.f32 %v5647_v7, %v3423_v33  ;;  %v4358_v7 = vld [vmem:[%s7178_s14 + $0x168] sm:$0xff] }
0x134c   : > { %v5563_v37 = vpack.i.bf16 %v3433_v31, %v3432_v36  ;;  %v4360_v31 = vld [vmem:[%s7178_s14 + $0x178] sm:$0xff]  ;;  %v4357_v36 = vld [vmem:[%s7178_s14 + $0x160] sm:$0xff] }
0x134d   : > { %v5375_v33 = vpack.c.bf16 %v4360_v31, %v4358_v7  ;;  %v4382_v31 = vld [vmem:[%s7180_s16 + $0x120] sm:$0xff] }
0x134e   : > { %5564 = vrot.lane.b32.xlu1 %v5563_v37, %s7222_s29  ;;  %v4359_v37 = vld [vmem:[%s7178_s14 + $0x170] sm:$0xff] }
0x134f   : > { %v5377_v12 = vpack.c.bf16 %v4359_v37, %v4357_v36  ;;  %v4400_v37 = vld [vmem:[%s7180_s16 + $0x1b0] sm:$0xff] }
0x13b4   : > { %v5560_v40 = vpop.permute.xlu0 %5559 }
0x13b5   : > { %v5562_v46 = vunpack.i.h.bf16 %v5560_v40  ;;  %v5561_v51 = vunpack.i.l.bf16 %v5560_v40  ;;  %v4361_v40 = vld [vmem:[%s7178_s14 + $0x180] sm:$0xff] }
0x13b6   : > { %v5381_v45 = vpack.c.bf16 %v4363_v44, %v4361_v40  ;;  %v4402_v44 = vld [vmem:[%s7180_s16 + $0x1c0] sm:$0xff] }
0x13b7   : > { %v3460_v59 = vsel %vm1933_vm10, %v3458_v47, %v5561_v51  ;;  %v3461_v60 = vsel %vm1933_vm10, %v3459_v48, %v5562_v46  ;;  %v4368_v46 = vld [vmem:[%s7178_s14 + $0x1b8] sm:$0xff]  ;;  %v4365_v51 = vld [vmem:[%s7178_s14 + $0x1a0] sm:$0xff] }
0x13b8   : > { %v5383_v17 = vpack.c.bf16 %v4368_v46, %v4366_v41  ;;  %v4372_v48 = vld [vmem:[%s7178_s14 + $0x1d8] sm:$0xff]  ;;  %v4369_v47 = vld [vmem:[%s7178_s14 + $0x1c0] sm:$0xff] }
0x13b9   : > { %v4386_v46 = vld [vmem:[%s7180_s16 + $0x140] sm:$0xff] }
0x13c0   : > { %v5565_v54 = vpop.permute.xlu1 %5564 }
0x13c1   : > { %v5567_v58 = vunpack.i.h.bf16 %v5565_v54  ;;  %v5566_v21 = vunpack.i.l.bf16 %v5565_v54  ;;  %v4370_v54 = vld [vmem:[%s7178_s14 + $0x1c8] sm:$0xff] }
0x13c3   : > { %v3462_v56 = vsel %vm1936_vm11, %v3460_v59, %v5566_v21  ;;  %v3463_v57 = vsel %vm1936_vm11, %v3461_v60, %v5567_v58  ;;  %v5385_v58 = vpack.c.bf16 %v4367_v19, %v4365_v51  ;;  %v5387_v21 = vpack.c.bf16 %v4372_v48, %v4370_v54  ;;  %v4371_v59 = vld [vmem:[%s7178_s14 + $0x1d0] sm:$0xff]  ;;  %v4374_v60 = vld [vmem:[%s7178_s14 + $0x1e8] sm:$0xff]  ;;  %v4405_v54 = vld [vmem:[%s7180_s16 + $0x1d8] sm:$0xff] }
0x13c4   : > { %4949 = vmatprep.mubr.f32.mxu0 %v3462_v56  ;;  %v4376_v56 = vld [vmem:[%s7178_s14 + $0x1f8] sm:$0xff]  ;;  %v4387_v51 = vld [vmem:[%s7180_s16 + $0x148] sm:$0xff]  ;;  %v4404_v19 = vld [vmem:[%s7180_s16 + $0x1d0] sm:$0xff] }
0x13c5   : > { %4950 = vmatmul.mubr.f32.vlgmr.msra.gmra.mrb[24].mxu0 %v3463_v57  ;;  %v5389_v57 = vpack.c.bf16 %v4371_v59, %v4369_v47  ;;  %v4388_v48 = vld [vmem:[%s7180_s16 + $0x150] sm:$0xff]  ;;  %v4406_v47 = vld [vmem:[%s7180_s16 + $0x1e0] sm:$0xff]  ;;  %v4407_v59 = vld [vmem:[%s7180_s16 + $0x1e8] sm:$0xff] }
0x1498   : > { %v4951_v13 = vpop.f32.mrb[24].mxu0 }
0x1499   : > { %v3557_v8 = vadd.f32 %v4951_v13, %v6505_v34  ;;  %v3547_v35 = vpop.f32.mrb[25].mxu0  ;;  %v4348_v34 = vld [vmem:[%s7178_s14 + $0x118] sm:$0xff]  ;;  %v5391_v13 = vpack.c.bf16 %v4376_v56, %v4374_v60  ;;  %v5419_v56 = vpack.c.bf16 %v4407_v59, %v4406_v47  ;;  %v4411_v59 = vld [vmem:[%s7181_s17 + $0x1] ss:$0 sm:$0xff] }
0x149a   : > { %v3556_v61 = vadd.f32 %v3547_v35, %v6501_v32  ;;  %v4345_v32 = vld [vmem:[%s7178_s14 + $0x100] sm:$0xff]  ;;  %v5363_v0 = vpack.c.bf16 %v4348_v34, %v4346_v63 }
0x149b   : > { %v6866_v62 = vadd.f32 %v4340_v14, %v3557_v8  ;;  %v5365_v9 = vpack.c.bf16 %v4347_v1, %v4345_v32  ;;  %v4375_v8 = vld [vmem:[%s7178_s14 + $0x1f0] sm:$0xff] }
0x149c   : > { %v6868_v49 = vadd.f32 %v4340_v14, %v3556_v61  ;;  %5364 = vmatprep.subr.bf16.mxu1 %v5363_v0  ;;  %v4373_v14 = vld [vmem:[%s7178_s14 + $0x1e0] sm:$0xff] }
0x149d   : > { %v3574_v50 = vsel %vm816_vm1, %v6866_v62, 0.0  ;;  %5366 = vmatpush1.bf16.msra.mxu1 %v5365_v9  ;;  %v5393_v35 = vpack.c.bf16 %v4375_v8, %v4373_v14  ;;  %v4408_v14 = vld [vmem:[%s7180_s16 + $0x1f0] sm:$0xff]  ;;  %v4409_v8 = vld [vmem:[%s7180_s16 + $0x1f8] sm:$0xff] }
0x149e   : > { %3575 = vadd.xlane.f32.xlu0 %v3574_v50  ;;  %3572 = vadd.xlane.f32.xlu1 %v6868_v49 }
0x149f   : > { %5368 = vmatprep.subr.bf16.mxu1 %v5367_v10  ;;  %v4344_v10 = vld [vmem:[%s7173_s9 + $0x1] ss:$0 sm:$0xff] }
0x14a1   : > { %5370 = vmatpush1.bf16.msra.mxu1 %v5369_v55 }
0x14a2   : > { %5372 = vmatprep.subr.bf16.mxu1 %v5371_v16  ;;  %v4394_v16 = vld [vmem:[%s7180_s16 + $0x180] sm:$0xff] }
0x14a3   : > { %v5395_v23 = vpack.c.bf16 %v4395_v18, %v4394_v16 }
0x14a5   : > { %5374 = vmatpush1.bf16.msra.mxu1 %v5373_v24  ;;  %v4378_v24 = vld [vmem:[%s7180_s16 + $0x100] sm:$0xff]  ;;  %5396 = vmatprep.subr.bf16.mxu0 %v5395_v23 }
0x14a6   : > { %5376 = vmatprep.subr.bf16.mxu1 %v5375_v33  ;;  %v4383_v33 = vld [vmem:[%s7180_s16 + $0x128] sm:$0xff] }
0x14a7   : > { %v5405_v36 = vpack.c.bf16 %v4383_v33, %v4382_v31 }
0x14a9   : > { %5378 = vmatpush1.bf16.msra.mxu1 %v5377_v12  ;;  %v4401_v12 = vld [vmem:[%s7180_s16 + $0x1b8] sm:$0xff] }
0x14aa   : > { %5380 = vmatprep.subr.bf16.mxu1 %v5379_v43  ;;  %v5407_v11 = vpack.c.bf16 %v4401_v12, %v4400_v37  ;;  %v4385_v43 = vld [vmem:[%s7180_s16 + $0x138] sm:$0xff] }
0x14ab   : > { %v5409_v40 = vpack.c.bf16 %v4385_v43, %v4384_v29 }
0x14ad   : > { %5382 = vmatpush1.bf16.msra.mxu1 %v5381_v45  ;;  %v4403_v45 = vld [vmem:[%s7180_s16 + $0x1c8] sm:$0xff] }
0x14ae   : > { %5384 = vmatprep.subr.bf16.mxu1 %v5383_v17  ;;  %v5411_v41 = vpack.c.bf16 %v4403_v45, %v4402_v44  ;;  %v5413_v17 = vpack.c.bf16 %v4387_v51, %v4386_v46 }
0x14b1   : > { %5386 = vmatpush1.bf16.msra.mxu1 %v5385_v58  ;;  %v5415_v58 = vpack.c.bf16 %v4405_v54, %v4404_v19 }
0x14b2   : > { %5388 = vmatprep.subr.bf16.mxu1 %v5387_v21  ;;  %v4389_v21 = vld [vmem:[%s7180_s16 + $0x158] sm:$0xff] }
0x14b3   : > { %v5417_v60 = vpack.c.bf16 %v4389_v21, %v4388_v48 }
0x14b5   : > { %5390 = vmatpush1.bf16.msra.mxu1 %v5389_v57  ;;  %v4390_v57 = vld [vmem:[%s7180_s16 + $0x160] sm:$0xff] }
0x14b6   : > { %5392 = vmatprep.subr.bf16.mxu1 %v5391_v13  ;;  %v4391_v13 = vld [vmem:[%s7180_s16 + $0x168] sm:$0xff] }
0x14b9   : > { %5394 = vmatpush1.bf16.msra.mxu1 %v5393_v35  ;;  %v5421_v35 = vpack.c.bf16 %v4391_v13, %v4390_v57 }
0x152b   : > { %v3576_v25 = vpop.xlane.xlu0 %3575  ;;  %v3573_v42 = vpop.xlane.xlu1 %3572 }
0x152c   : > { %v3578_v22 = vmul.f32 0.0078125, %v3576_v25  ;;  %v3577_v53 = vmul.f32 0.0078125, %v3573_v42  ;;  %v4379_v25 = vld [vmem:[%s7180_s16 + $0x108] sm:$0xff]  ;;  %v4396_v42 = vld [vmem:[%s7180_s16 + $0x190] sm:$0xff] }
0x152e   : > { %v3580_v26 = vsub.f32 %v6866_v62, %v3578_v22  ;;  %v3579_v4 = vsub.f32 %v6868_v49, %v3577_v53  ;;  %v4397_v22 = vld [vmem:[%s7180_s16 + $0x198] sm:$0xff] }
0x152f   : > { %v5399_v53 = vpack.c.bf16 %v4397_v22, %v4396_v42 }
0x1530   : > { %v3581_v27 = vmul.f32 %v3579_v4, %v3579_v4  ;;  %v3582_v28 = vmul.f32 %v3580_v26, %v3580_v26 }
0x1532   : > { %3583 = vadd.xlane.f32.xlu0 %v3581_v27  ;;  %v3585_v30 = vsel %vm816_vm1, %v3582_v28, 0.0  ;;  %v4398_v28 = vld [vmem:[%s7180_s16 + $0x1a0] sm:$0xff] }
0x1533   : > { %3586 = vadd.xlane.f32.xlu1 %v3585_v30  ;;  %v4399_v30 = vld [vmem:[%s7180_s16 + $0x1a8] sm:$0xff] }
0x1534   : > { %v5403_v7 = vpack.c.bf16 %v4399_v30, %v4398_v28 }
0x15bf   : > { %v3584_v61 = vpop.xlane.xlu0 %3583 }
0x15c0   : > { %v3588_v50 = vmul.f32 0.0078125, %v3584_v61  ;;  %v3587_v63 = vpop.xlane.xlu1 %3586  ;;  %v5423_v61 = vpack.c.bf16 %v4409_v8, %v4408_v14 }
0x15c1   : > { %v3589_v34 = vmul.f32 0.0078125, %v3587_v63  ;;  %v4393_v63 = vld [vmem:[%s7180_s16 + $0x178] sm:$0xff] }
0x15c2   : > { %v3590_v32 = vadd.f32 1e-05, %v3588_v50  ;;  %v4392_v50 = vld [vmem:[%s7180_s16 + $0x170] sm:$0xff] }
0x15c3   : > { %v3591_v0 = vadd.f32 1e-05, %v3589_v34  ;;  %v5425_v34 = vpack.c.bf16 %v4393_v63, %v4392_v50  ;;  %v3933_v50 = vld [vmem:[%s7184_s20] sm:$0xff]  ;;  %v3934_v63 = vld [vmem:[%s7184_s20 + $0x8] sm:$0xff] }
0x15c4   : > { %5652 = vrsqrt.f32 %v3590_v32  ;;  %v4377_v32 = vld [vmem:[%s7179_s15 + $0x2] sm:$0x3] }
0x15c5   : > { %5654 = vrsqrt.f32 %v3591_v0  ;;  %v3651_v0 = vrot.slane %v4377_v32, %v6062_v3 }
0x15ce   : > { %v5653_v1 = vpop.eup %5652 }
0x15cf   : > { %v5655_v5 = vpop.eup %5654  ;;  %v3594_v9 = vmul.f32 %v5653_v1, %v3579_v4  ;;  %v4381_v4 = vld [vmem:[%s7180_s16 + $0x118] sm:$0xff]  ;;  %v3655_v1 = vrot.slane %v4377_v32, %v6070_v20 }
0x15d0   : > { %v3595_v52 = vmul.f32 %v5655_v5, %v3580_v26  ;;  %v4380_v26 = vld [vmem:[%s7180_s16 + $0x110] sm:$0xff] }
0x15d1   : > { %v3602_v38 = vmul.f32 %v4343_v2, %v3594_v9  ;;  %v5401_v27 = vpack.c.bf16 %v4381_v4, %v4380_v26 }
0x15d2   : > { %v3603_v15 = vmul.f32 %v4343_v2, %v3595_v52 }
0x15d3   : > { %v3610_v39 = vadd.f32 %v4344_v10, %v3602_v38 }
0x15d4   : > { %v3611_v55 = vadd.f32 %v4344_v10, %v3603_v15 }
0x15d5   : > { %3723 = vmatmul.mubr.f32.vlgmr.msra.gmra.mrb[32].mxu1 %v3610_v39 }
0x15d6   : > { %3728 = vmatprep.mubr.f32.mxu1 %v5686_v6  ;;  %v5397_v6 = vpack.c.bf16 %v4379_v25, %v4378_v24 }
0x15d8   : > { %5398 = vmatpush3.bf16.msra.mxu0 %v5397_v6 }
0x15d9   : > { %3729 = vmatmul.mubr.f32.gmra.mrb[34].mxu1 %v3611_v55  ;;  %5400 = vmatprep.subr.bf16.mxu0 %v5399_v53 }
0x15dc   : > { %5402 = vmatpush3.bf16.msra.mxu0 %v5401_v27 }
0x15dd   : > { %5404 = vmatprep.subr.bf16.mxu0 %v5403_v7 }
0x15e0   : > { %5406 = vmatpush3.bf16.msra.mxu0 %v5405_v36 }
0x15e1   : > { %5408 = vmatprep.subr.bf16.mxu0 %v5407_v11 }
0x15e4   : > { %5410 = vmatpush3.bf16.msra.mxu0 %v5409_v40 }
0x15e5   : > { %5412 = vmatprep.subr.bf16.mxu0 %v5411_v41 }
0x15e8   : > { %5414 = vmatpush3.bf16.msra.mxu0 %v5413_v17 }
0x15e9   : > { %5416 = vmatprep.subr.bf16.mxu0 %v5415_v58 }
0x15ec   : > { %5418 = vmatpush3.bf16.msra.mxu0 %v5417_v60 }
0x15ed   : > { %5420 = vmatprep.subr.bf16.mxu0 %v5419_v56 }
0x15f0   : > { %5422 = vmatpush3.bf16.msra.mxu0 %v5421_v35 }
0x15f1   : > { %5424 = vmatprep.subr.bf16.mxu0 %v5423_v61 }
0x15f4   : > { %5426 = vmatpush3.bf16.msra.mxu0 %v5425_v34  ;;  %v5427_v34 = vpack.c.bf16 %v3934_v63, %v3933_v50 }
0x15f6   : > { %5428 = vmatprep.subr.bf16.mxu1 %v5427_v34 }
0x15f7   : > { %5430 = vmatpush3.bf16.xpose.msra.mxu1 %v5427_v34 }
0x16a8   : > { %v3724_v2 = vpop.f32.mrb[32].mxu1 }
0x16a9   : > { %v3725_v5 = vadd.f32 %v3724_v2, %v3651_v0  ;;  %v3726_v9 = vpop.f32.mrb[33].mxu1 }
0x16aa   : > { %v3727_v10 = vadd.f32 %v3726_v9, %v3655_v1  ;;  %v3940_v9 = vld [vmem:[%s7184_s20 + $0x38] sm:$0xff] }
0x16ab   : > { %v3735_v52 = vmul.f32 %v3725_v5, %v3725_v5 }
0x16ac   : > { %v3736_v38 = vmul.f32 %v3727_v10, %v3727_v10  ;;  %v3730_v39 = vpop.f32.mrb[34].mxu1 }
0x16ad   : > { %v3739_v15 = vmul.f32 %v3735_v52, %v3725_v5  ;;  %v3731_v55 = vadd.f32 %v3730_v39, %v3651_v0  ;;  %v3732_v16 = vpop.f32.mrb[35].mxu1  ;;  %v3937_v0 = vld [vmem:[%s7184_s20 + $0x20] sm:$0xff] }
0x16ae   : > { %v3740_v18 = vmul.f32 %v3736_v38, %v3727_v10  ;;  %v3733_v23 = vadd.f32 %v3732_v16, %v3655_v1  ;;  %v3938_v1 = vld [vmem:[%s7184_s20 + $0x28] sm:$0xff]  ;;  %v3941_v52 = vld [vmem:[%s7184_s20 + $0x40] sm:$0xff] }
0x16af   : > { %v3743_v24 = vmul.f32 0.044715, %v3739_v15  ;;  %v3737_v25 = vmul.f32 %v3731_v55, %v3731_v55  ;;  %v5435_v2 = vpack.c.bf16 %v3938_v1, %v3937_v0  ;;  %v3942_v38 = vld [vmem:[%s7184_s20 + $0x48] sm:$0xff] }
0x16b0   : > { %v3744_v6 = vmul.f32 0.044715, %v3740_v18  ;;  %v3738_v42 = vmul.f32 %v3733_v23, %v3733_v23  ;;  %v5443_v39 = vpack.c.bf16 %v3942_v38, %v3941_v52 }
0x16b1   : > { %v3747_v22 = vadd.f32 %v3743_v24, %v3725_v5  ;;  %v3741_v3 = vmul.f32 %v3737_v25, %v3731_v55 }
0x16b2   : > { %v3748_v53 = vadd.f32 %v3744_v6, %v3727_v10  ;;  %v3742_v20 = vmul.f32 %v3738_v42, %v3733_v23 }
0x16b3   : > { %v3751_v26 = vmul.f32 0.7978846, %v3747_v22  ;;  %v3745_v4 = vmul.f32 0.044715, %v3741_v3  ;;  %v3943_v22 = vld [vmem:[%s7184_s20 + $0x50] sm:$0xff]  ;;  %v3944_v3 = vld [vmem:[%s7184_s20 + $0x58] sm:$0xff] }
0x16b4   : > { %v3752_v27 = vmul.f32 0.7978846, %v3748_v53  ;;  %v3746_v28 = vmul.f32 0.044715, %v3742_v20  ;;  %v5447_v53 = vpack.c.bf16 %v3944_v3, %v3943_v22  ;;  %v3945_v20 = vld [vmem:[%s7184_s20 + $0x60] sm:$0xff] }
0x16b5   : > { %5656 = vtanh.f32 %v3751_v26  ;;  %v3749_v30 = vadd.f32 %v3745_v4, %v3731_v55  ;;  %v3946_v26 = vld [vmem:[%s7184_s20 + $0x68] sm:$0xff] }
0x16b6   : > { %v3750_v7 = vadd.f32 %v3746_v28, %v3733_v23  ;;  %5658 = vtanh.f32 %v3752_v27  ;;  %v5451_v4 = vpack.c.bf16 %v3946_v26, %v3945_v20  ;;  %v3947_v27 = vld [vmem:[%s7184_s20 + $0x70] sm:$0xff]  ;;  %v3948_v28 = vld [vmem:[%s7184_s20 + $0x78] sm:$0xff] }
0x16b7   : > { %v3753_v31 = vmul.f32 0.7978846, %v3749_v30  ;;  %v5455_v30 = vpack.c.bf16 %v3948_v28, %v3947_v27 }
0x16b8   : > { %v3754_v33 = vmul.f32 0.7978846, %v3750_v7 }
0x16b9   : > { %5660 = vtanh.f32 %v3753_v31 }
0x16ba   : > { %5662 = vtanh.f32 %v3754_v33 }
0x16bf   : > { %v5657_v36 = vpop.eup %5656 }
0x16c0   : > { %v5659_v37 = vpop.eup %5658  ;;  %v3759_v12 = vadd.f32 1.0, %v5657_v36 }
0x16c1   : > { %v3760_v11 = vadd.f32 1.0, %v5659_v37 }
0x16c2   : > { %v3763_v29 = vmul.f32 0.5, %v3759_v12 }
0x16c3   : > { %v5661_v43 = vpop.eup %5660  ;;  %v3764_v40 = vmul.f32 0.5, %v3760_v11 }
0x16c4   : > { %v5663_v44 = vpop.eup %5662  ;;  %v3761_v45 = vadd.f32 1.0, %v5661_v43  ;;  %v3767_v51 = vmul.f32 %v3763_v29, %v3725_v5  ;;  %v3939_v5 = vld [vmem:[%s7184_s20 + $0x30] sm:$0xff]  ;;  %v4412_v29 = vld [vmem:[%s7182_s18] ss:$0 sm:$0xff] }
0x16c5   : > { %v3768_v41 = vmul.f32 %v3764_v40, %v3727_v10  ;;  %v3762_v46 = vadd.f32 1.0, %v5663_v44  ;;  %v5439_v10 = vpack.c.bf16 %v3940_v9, %v3939_v5  ;;  %v4413_v40 = vld [vmem:[%s7183_s19] ss:$0 sm:$0xff] }
0x16c6   : > { %v3765_v17 = vmul.f32 0.5, %v3761_v45 }
0x16c7   : > { %3868 = vmatprep.mubr.f32.mxu0 %v3768_v41  ;;  %v3766_v19 = vmul.f32 0.5, %v3762_v46 }
0x16c8   : > { %3869 = vmatmul.mubr.f32.vlgmr.msra.gmra.mrb[26].mxu0 %v3767_v51  ;;  %v3769_v48 = vmul.f32 %v3765_v17, %v3731_v55 }
0x16c9   : > { %v3770_v54 = vmul.f32 %v3766_v19, %v3733_v23  ;;  %v4027_v19 = vld [vmem:[%s715_s1 + $0x8] sm:$0x1] }
0x16cb   : > { %3873 = vmatprep.mubr.f32.mxu0 %v3770_v54  ;;  %v4026_v54 = vld [vmem:[%s715_s1] sm:$0xff] }
0x16cc   : > { %3874 = vmatmul.mubr.f32.gmra.mrb[28].mxu0 %v3769_v48 }
0x179b   : > { %v4641_v58 = vpop.f32.mrb[26].mxu0 }
0x179c   : > { %v4642_v21 = vpop.f32.mrb[27].mxu0 }
0x179d   : > { %v4643_v47 = vadd.f32 %v4642_v21, %v4641_v58 }
0x179f   : > { %v3879_v60 = vadd.f32 %v4643_v47, %v6868_v49  ;;  %v4644_v56 = vpop.f32.mrb[28].mxu0  ;;  %v3935_v49 = vld [vmem:[%s7184_s20 + $0x10] sm:$0xff] }
0x17a0   : > { %v4645_v57 = vpop.f32.mrb[29].mxu0 }
0x17a1   : > { %v4646_v13 = vadd.f32 %v4645_v57, %v4644_v56  ;;  %v3889_v14 = vadd.f32 %v4411_v59, %v3879_v60 }
0x17a3   : > { %v3880_v8 = vadd.f32 %v4646_v13, %v6866_v62  ;;  %3893 = vadd.xlane.f32.xlu0 %v3889_v14  ;;  %v3936_v62 = vld [vmem:[%s7184_s20 + $0x18] sm:$0xff] }
0x17a4   : > { %v5431_v32 = vpack.c.bf16 %v3936_v62, %v3935_v49  ;;  %v4059_v49 = vsel %vm816_vm1, %v4027_v19, 0.0 }
0x17a5   : > { %v3890_v35 = vadd.f32 %v4411_v59, %v3880_v8 }
0x17a6   : > { %5432 = vmatprep.subr.bf16.mxu1 %v5431_v32 }
0x17a7   : > { %v3895_v61 = vsel %vm816_vm1, %v3890_v35, 0.0  ;;  %5434 = vmatpush3.bf16.xpose.msra.mxu1 %v5431_v32 }
0x17a8   : > { %3896 = vadd.xlane.f32.xlu1 %v3895_v61  ;;  %5436 = vmatprep.subr.bf16.mxu1 %v5435_v2 }
0x17af   : > { %5438 = vmatpush3.bf16.xpose.msra.mxu1 %v5435_v2 }
0x17b0   : > { %5440 = vmatprep.subr.bf16.mxu1 %v5439_v10 }
0x17b7   : > { %5442 = vmatpush3.bf16.xpose.msra.mxu1 %v5439_v10 }
0x17b8   : > { %5444 = vmatprep.subr.bf16.mxu1 %v5443_v39 }
0x17bf   : > { %5446 = vmatpush3.bf16.xpose.msra.mxu1 %v5443_v39 }
0x17c0   : > { %5448 = vmatprep.subr.bf16.mxu1 %v5447_v53 }
0x17c7   : > { %5450 = vmatpush3.bf16.xpose.msra.mxu1 %v5447_v53 }
0x17c8   : > { %5452 = vmatprep.subr.bf16.mxu1 %v5451_v4 }
0x17cf   : > { %5454 = vmatpush3.bf16.xpose.msra.mxu1 %v5451_v4 }
0x17d0   : > { %5456 = vmatprep.subr.bf16.mxu1 %v5455_v30 }
0x17d7   : > { %5458 = vmatpush3.bf16.xpose.msra.mxu1 %v5455_v30 }
0x1830   : > { %v3894_v15 = vpop.xlane.xlu0 %3893 }
0x1831   : > { %v3898_v55 = vmul.f32 0.0078125, %v3894_v15 }
0x1833   : > { %v3900_v16 = vsub.f32 %v3889_v14, %v3898_v55 }
0x1835   : > { %v3897_v18 = vpop.xlane.xlu1 %3896  ;;  %v3902_v23 = vmul.f32 %v3900_v16, %v3900_v16 }
0x1836   : > { %v3899_v24 = vmul.f32 0.0078125, %v3897_v18 }
0x1837   : > { %3904 = vadd.xlane.f32.xlu0 %v3902_v23 }
0x1838   : > { %v3901_v25 = vsub.f32 %v3890_v35, %v3899_v24 }
0x183a   : > { %v3903_v6 = vmul.f32 %v3901_v25, %v3901_v25 }
0x183c   : > { %v3906_v42 = vsel %vm816_vm1, %v3903_v6, 0.0 }
0x183d   : > { %3907 = vadd.xlane.f32.xlu1 %v3906_v42 }
0x18c4   : > { %v3905_v7 = vpop.xlane.xlu0 %3904 }
0x18c5   : > { %v3909_v31 = vmul.f32 0.0078125, %v3905_v7 }
0x18c7   : > { %v3911_v33 = vadd.f32 1e-05, %v3909_v31 }
0x18c9   : > { %5664 = vrsqrt.f32 %v3911_v33 }
0x18ca   : > { %v3908_v36 = vpop.xlane.xlu1 %3907 }
0x18cb   : > { %v3910_v37 = vmul.f32 0.0078125, %v3908_v36 }
0x18cd   : > { %v3912_v12 = vadd.f32 1e-05, %v3910_v37 }
0x18cf   : > { %5666 = vrsqrt.f32 %v3912_v12 }
0x18d3   : > { %v5665_v11 = vpop.eup %5664 }
0x18d4   : > { %v3915_v43 = vmul.f32 %v5665_v11, %v3900_v16 }
0x18d6   : > { %v3923_v44 = vmul.f32 %v4412_v29, %v3915_v43 }
0x18d8   : > { %v3931_v45 = vadd.f32 %v4413_v40, %v3923_v44 }
0x18d9   : > { %v5667_v41 = vpop.eup %5666 }
0x18da   : > { %v3916_v46 = vmul.f32 %v5667_v41, %v3901_v25  ;;  %4984 = vmatprep.mubr.f32.mxu1 %v3931_v45 }
0x18dc   : > { %v3924_v51 = vmul.f32 %v4412_v29, %v3916_v46 }
0x18de   : > { %v3932_v17 = vadd.f32 %v4413_v40, %v3924_v51 }
0x18e0   : > { %4985 = vmatmul.mubr.f32.vlgmr.msra.gmra.mrb[36].mxu1 %v3932_v17 }
0x19b3   : > { %v4986_v48 = vpop.f32.mrb[36].mxu1 }
0x19b4   : > { %v4015_v58 = vpop.f32.mrb[37].mxu1  ;;  %4025 = vst [vmem:[%s720_s0 + $0x8] sm:$0x1] %v4986_v48  ;;  %v4030_v21 = vsel %vm816_vm1, %v4986_v48, -inf  ;;  %v4051_v47 = vmul.f32 %v4986_v48, %v4027_v19 }
0x19b5   : > { %4024 = vst [vmem:[%s720_s0] sm:$0xff] %v4015_v58  ;;  %4031 = vmax.xlane.f32.xlu0 %v4030_v21  ;;  %4028 = vmax.xlane.f32.xlu1 %v4015_v58  ;;  %v4050_v59 = vmul.f32 %v4026_v54, %v4015_v58 }
0x19b6   : > { %v4054_v63 = vsel %vm816_vm1, %v4051_v47, 0.0 }
0x1a42   : > { %v4032_v60 = vpop.xlane.xlu0 %4031  ;;  %v4029_v56 = vpop.xlane.xlu1 %4028 }
0x1a43   : > { %v4034_v57 = vsub.f32 %v4986_v48, %v4032_v60  ;;  %v4033_v13 = vsub.f32 %v4015_v58, %v4029_v56 }
0x1a45   : > { %v4037_v14 = vmul.f32 1.442695, %v4034_v57  ;;  %v4035_v8 = vmul.f32 1.442695, %v4033_v13 }
0x1a47   : > { %5668 = vpow2.f32 %v4037_v14 }
0x1a48   : > { %5670 = vpow2.f32 %v4035_v8 }
0x1a51   : > { %v5669_v35 = vpop.eup %5668 }
0x1a52   : > { %v5671_v61 = vpop.eup %5670  ;;  %v4041_v50 = vsel %vm816_vm1, %v5669_v35, 0.0 }
0x1a53   : > { %4039 = vadd.xlane.f32.xlu0 %v5671_v61  ;;  %4042 = vadd.xlane.f32.xlu1 %v4041_v50 }
0x1a57   : > { %4052 = vadd.xlane.f32.xlu0 %v4050_v59  ;;  %4055 = vadd.xlane.f32.xlu1 %v4054_v63 }
0x1a5b   : > { %4060 = vadd.xlane.f32.xlu1 %v4059_v49  ;;  %4057 = vadd.xlane.f32.xlu0 %v4026_v54 }
0x1ae0   : > { %v4040_v34 = vpop.xlane.xlu0 %4039  ;;  %v4043_v62 = vpop.xlane.xlu1 %4042 }
0x1ae1   : > { %5672 = vlog2.f32 %v4040_v34 }
0x1ae2   : > { %5674 = vlog2.f32 %v4043_v62 }
0x1ae4   : > { %v4053_v32 = vpop.xlane.xlu0 %4052  ;;  %v4056_v0 = vpop.xlane.xlu1 %4055 }
0x1ae8   : > { %v4061_v1 = vpop.xlane.xlu1 %4060  ;;  %v4058_v2 = vpop.xlane.xlu0 %4057 }
0x1ae9   : > { %v4082_v5 = vsel %vm4068_vm12, %v4061_v1, 0.0  ;;  %v4081_v9 = vsel %vm4066_vm13, %v4058_v2, 0.0 }
0x1aea   : > { %v4083_v10 = vadd.f32 %v4082_v5, %v4081_v9 }
0x1aeb   : > { %v5673_v52 = vpop.eup %5672 }
0x1aec   : > { %v5675_v38 = vpop.eup %5674  ;;  %v4045_v39 = vmul.f32 0.6931472, %v5673_v52  ;;  %4084 = vadd.xlane.f32.xlu1 %v4083_v10 }
0x1aed   : > { %v4047_v15 = vmul.f32 0.6931472, %v5675_v38 }
0x1aee   : > { %v4048_v55 = vadd.f32 %v4045_v39, %v4029_v56 }
0x1aef   : > { %v4049_v16 = vadd.f32 %v4047_v15, %v4032_v60 }
0x1af0   : > { %v4062_v18 = vsub.f32 %v4048_v55, %v4053_v32 }
0x1af1   : > { %v4063_v23 = vsub.f32 %v4049_v16, %v4056_v0 }
0x1af2   : > { %v4064_v24 = vmul.f32 %v4062_v18, %v4058_v2 }
0x1af3   : > { %v4065_v25 = vmul.f32 %v4063_v23, %v4061_v1 }
0x1af4   : > { %v4067_v6 = vsel %vm4066_vm13, %v4064_v24, 0.0 }
0x1af5   : > { %v4069_v42 = vsel %vm4068_vm12, %v4065_v25, 0.0 }
0x1af6   : > { %v4070_v22 = vadd.f32 %v4069_v42, %v4067_v6 }
0x1af8   : > { %4071 = vadd.xlane.f32.xlu0 %v4070_v22 }
0x1b79   : > { %v4085_v3 = vpop.xlane.xlu1 %4084 }
0x1b7a   : > { %v4086_v53 = vrot.slane %v4085_v3, 4 }
0x1b7c   : > { %v4087_v20 = vadd.f32 %v4086_v53, %v4085_v3 }
0x1b7e   : > { %v4088_v26 = vrot.slane %v4087_v20, 2 }
0x1b80   : > { %v4089_v30 = vadd.f32 %v4088_v26, %v4087_v20 }
0x1b82   : > { %v4090_v33 = vrot.slane %v4089_v30, 1 }
0x1b84   : > { %v4091_v12 = vadd.f32 %v4090_v33, %v4089_v30 }
0x1b85   : > { %v4072_v4 = vpop.xlane.xlu0 %4071 }
0x1b86   : > { %v4073_v27 = vrot.slane %v4072_v4, 4 }
0x1b88   : > { %v4074_v28 = vadd.f32 %v4073_v27, %v4072_v4 }
0x1b8a   : > { %v4075_v7 = vrot.slane %v4074_v28, 2 }
0x1b8c   : > { %v4076_v31 = vadd.f32 %v4075_v7, %v4074_v28 }
0x1b8e   : > { %v4077_v36 = vrot.slane %v4076_v31, 1 }
0x1b90   : > { %v4078_v37 = vadd.f32 %v4077_v36, %v4076_v31 }
0x1b92   : > { %5459 = vpush %v4078_v37 }
0x1b93   : > { %5461 = vpush %v4091_v12 }
0x1bc3   : > { %s5460_s27 = spop %5459 }
0x1bc4   : > { %v4080_v11 = vstv %s5460_s27  ;;  %s5462_s3 = spop %5461 }
0x1bc5   : > { %v4093_v29 = vstv %s5462_s3 }
0x1bc6   : > { %v4094_v43 = vsel %vm4066_vm13, %v4080_v11, %v4093_v29 }
0x1bc7   : > { %4096 = vst.msk [vmem:[%s723_s2] sm:$0x1] %vm4095_vm14, %v4094_v43 }
0x1bc8 PF: > { %s7225_s5 = sld [smem:[#allocation2_spill]] }
0x1bce   : > { %s33_s3 = sadd.s32 1, %s7225_s5  }
0x1bcf   : > { %p30_p4 = scmp.ge.s32.totalorder %s33_s3, 4  }
0x1bd1   :  { %32 = sbr.rel (!%p30_p4) target bundleno = 8 (0x8), region = 164 }

</bundles_post_ra>
